<compile_context>
chip_gen: v6e
topology: v6e:2x2x1
jax: 0.10.0
libtpu: 0.0.40
codegen_flags: <defaults>
</compile_context>

<pallas_src>
import functools

import jax
import jax.numpy as jnp
from jax.experimental import pallas as pl
from jax.experimental.pallas import tpu as pltpu


# ----------------------------- VGG16 topology ------------------------------

VGG_LAYER_NAMES = [
    'conv1_1', 'relu1_1', 'conv1_2', 'relu1_2', 'maxpool1',
    'conv2_1', 'relu2_1', 'conv2_2', 'relu2_2', 'maxpool2',
    'conv3_1', 'relu3_1', 'conv3_2', 'relu3_2', 'conv3_3', 'relu3_3', 'maxpool3',
    'conv4_1', 'relu4_1', 'conv4_2', 'relu4_2', 'conv4_3', 'relu4_3', 'maxpool4',
    'conv5_1', 'relu5_1', 'conv5_2', 'relu5_2', 'conv5_3', 'relu5_3', 'maxpool5',
]

VGG_CONV_CFG = {
    'conv1_1': (3, 64),    'conv1_2': (64, 64),
    'conv2_1': (64, 128),  'conv2_2': (128, 128),
    'conv3_1': (128, 256), 'conv3_2': (256, 256), 'conv3_3': (256, 256),
    'conv4_1': (256, 512), 'conv4_2': (512, 512), 'conv4_3': (512, 512),
    'conv5_1': (512, 512), 'conv5_2': (512, 512), 'conv5_3': (512, 512),
}


def build_extractor_layer_list(layers):
    """Same truncation semantics as the torch module's __init__ loop."""
    l_partial = list(layers)
    names = []
    for name in VGG_LAYER_NAMES:
        if len(l_partial) == 0:
            break
        names.append(name)
        if name in l_partial:
            l_partial.remove(name)
    return names


# ------------------------- tiling / hardware helpers -------------------------

_ACC_CAP_BYTES = 128 * 1024   # f32 accumulator budget per grid step
_CIN_ALIGN = 16               # bf16 sublane packing granule


def _vmem_capacity_bytes():
    """Generation-aware VMEM capacity (fallback = v7x per-TensorCore 64 MiB)."""
    try:
        info = pltpu.get_tpu_info()
        cap = getattr(info, "vmem_capacity_bytes", None)
        if cap:
            return int(cap)
    except Exception:
        pass
    return 64 << 20


def _largest_divisor_leq(n, cap, multiple_of=1):
    best = 0
    for d in range(1, n + 1):
        if n % d == 0 and d <= cap and d % multiple_of == 0:
            best = d
    return best


def _pick_tiles(H, W, cout, need_even_rows):
    """Cout tile <= 128, row tile TH so the f32 acc stays <= ~128 KiB."""
    tc = _largest_divisor_leq(cout, 128)
    if tc == 0:
        tc = cout
    cap_rows = max(1, _ACC_CAP_BYTES // (4 * W * tc))
    th = _largest_divisor_leq(H, cap_rows,
                              multiple_of=(2 if need_even_rows else 1))
    if th == 0:
        # Fallback (very wide layers with awkward H); may slightly exceed cap.
        th = 2 if need_even_rows else 1
    return th, tc


# ------------------------------ Pallas kernels ------------------------------

def _conv3x3_kernel(x_ref, w_ref, b_ref, *rest, TH, W,
                    apply_relu, pool, want_prerelu, want_prepool):
    """Fused 3x3 conv (+bias)(+relu)(+2x2 pool), with in-kernel zero padding.

    x_ref : (1, H, W, Cin)  bf16 full (UNPADDED) image for one batch element.
    w_ref : (3, 3, Cin, TC) bf16 Cout-tile of the weights.
    b_ref : (1, TC)         f32 bias tile.
    rest  : output refs (main [+pre-relu] [+pre-pool]) then the
            (TH+2, W+2, Cin) bf16 halo scratch.
    """
    xpad = rest[-1]
    out_refs = rest[:-1]

    cin = x_ref.shape[-1]
    tc = w_ref.shape[-1]
    r = pl.program_id(2)
    nr = pl.num_programs(2)
    row0 = pl.multiple_of(r * TH, TH)
    dt = xpad.dtype

    # ---- build the zero-padded row tile in VMEM (replaces wrapper jnp.pad) ----
    zrow = jnp.zeros((1, W + 2, cin), dt)
    zcol = jnp.zeros((TH, 1, cin), dt)
    xpad[pl.ds(0, 1), :, :] = zrow                   # top halo row (default zero)
    xpad[pl.ds(TH + 1, 1), :, :] = zrow              # bottom halo row
    xpad[pl.ds(1, TH), pl.ds(0, 1), :] = zcol        # left halo column
    xpad[pl.ds(1, TH), pl.ds(W + 1, 1), :] = zcol    # right halo column
    xpad[pl.ds(1, TH), pl.ds(1, W), :] = (
        x_ref[:, pl.ds(row0, TH), :, :].reshape(TH, W, cin))

    @pl.when(r > 0)
    def _():  # real image rows exist above this tile
        xpad[pl.ds(0, 1), pl.ds(1, W), :] = (
            x_ref[:, pl.ds(row0 - 1, 1), :, :].reshape(1, W, cin))

    @pl.when(r < nr - 1)
    def _():  # real image rows exist below this tile
        xpad[pl.ds(TH + 1, 1), pl.ds(1, W), :] = (
            x_ref[:, pl.ds(row0 + TH, 1), :, :].reshape(1, W, cin))

    # ---- 9-tap matmul accumulation; small f32 accumulator, bf16 operands ----
    acc = jnp.zeros((TH * W, tc), jnp.float32)
    for kh in range(3):
        for kw in range(3):
            patch = xpad[pl.ds(kh, TH), pl.ds(kw, W), :].reshape(TH * W, cin)
            acc = acc + jnp.dot(patch, w_ref[kh, kw],
                                preferred_element_type=jnp.float32)

    acc = acc + b_ref[...]                           # (1, TC) broadcast, f32

    oi = 1
    if want_prerelu:                                 # hook on the conv output
        out_refs[oi][0] = acc.reshape(TH, W, tc).astype(out_refs[oi].dtype)
        oi += 1
    if apply_relu:
        acc = jnp.maximum(acc, 0.0)
    if want_prepool:                                 # hook on the relu output
        out_refs[oi][0] = acc.reshape(TH, W, tc).astype(out_refs[oi].dtype)
        oi += 1

    if pool is None:
        out_refs[0][0] = acc.reshape(TH, W, tc).astype(out_refs[0].dtype)
    else:
        y = acc.reshape(TH // 2, 2, W, tc)
        if pool == 'max':
            y = jnp.maximum(y[:, 0], y[:, 1])                 # (TH/2, W, C)
            y = y.reshape(TH // 2, W // 2, 2, tc)
            y = jnp.maximum(y[:, :, 0, :], y[:, :, 1, :])     # (TH/2, W/2, C)
        else:  # avg
            y = y[:, 0] + y[:, 1]
            y = y.reshape(TH // 2, W // 2, 2, tc)
            y = (y[:, :, 0, :] + y[:, :, 1, :]) * 0.25
        out_refs[0][0] = y.astype(out_refs[0].dtype)


def _relu_kernel(x_ref, o_ref):
    o_ref[...] = jnp.maximum(x_ref[...], 0).astype(o_ref.dtype)


def _pool2x2_kernel(x_ref, o_ref, *, reduce):
    """2x2 stride-2 pooling. x_ref: (1, 2*THo, 2*Wo, C) -> o_ref: (1, THo, Wo, C)."""
    _, THo, Wo, C = o_ref.shape
    x = x_ref[0]
    if reduce == 'avg':
        x = x.astype(jnp.float32)
    x = x.reshape(THo, 2, 2 * Wo, C)
    if reduce == 'max':
        x = jnp.maximum(x[:, 0], x[:, 1])
        x = x.reshape(THo, Wo, 2, C)
        x = jnp.maximum(x[:, :, 0, :], x[:, :, 1, :])
    else:
        x = x[:, 0] + x[:, 1]
        x = x.reshape(THo, Wo, 2, C)
        x = (x[:, :, 0, :] + x[:, :, 1, :]) * 0.25
    o_ref[0] = x.astype(o_ref.dtype)


# ------------------------------ op wrappers ---------------------------------

def conv3x3(x, w, b, *, apply_relu=False, pool=None,
            want_prerelu=False, want_prepool=False):
    """Fused 3x3/s1/p1 conv block.

    x: (N,H,W,Cin) activations (stored bf16).  w: (3,3,Cin,Cout) HWIO.
    b: (Cout,) f32.  Returns a tuple (main, [pre-relu], [pre-pool]); `main`
    is (N,H,W,Cout) bf16, or (N,H/2,W/2,Cout) bf16 when the pool is fused.
    """
    N, H, W, Cin = x.shape
    Cout = w.shape[-1]
    if pool is not None:
        assert H % 2 == 0 and W % 2 == 0
        assert apply_relu  # VGG pools always follow a relu
    want_prerelu = bool(want_prerelu and apply_relu)
    want_prepool = bool(want_prepool and pool is not None)

    x = x.astype(jnp.bfloat16)             # bf16 activation storage
    w = w.astype(jnp.bfloat16)             # bf16 MXU operands
    b2 = b.reshape(1, Cout).astype(jnp.float32)

    # Pad Cin to the bf16 packing granule (only hits the 3-channel RGB stem).
    cin_pad = (-Cin) % _CIN_ALIGN
    if cin_pad:
        x = jnp.pad(x, ((0, 0), (0, 0), (0, 0), (0, cin_pad)))
        w = jnp.pad(w, ((0, 0), (0, 0), (0, cin_pad), (0, 0)))
        Cin += cin_pad

    TH, TC = _pick_tiles(H, W, Cout, need_even_rows=(pool is not None))
    n_r, n_co = H // TH, Cout // TC

    if pool is not None:
        Ho, Wo = H // 2, W // 2
        main_shape = (N, Ho, Wo, Cout)
        main_block = (1, TH // 2, Wo, TC)
    else:
        Ho, Wo = H, W
        main_shape = (N, H, W, Cout)
        main_block = (1, TH, W, TC)

    out_shapes = [jax.ShapeDtypeStruct(main_shape, jnp.bfloat16)]
    out_specs = [pl.BlockSpec(main_block, lambda n, co, r: (n, r, 0, co))]
    for flag in (want_prerelu, want_prepool):          # order matches kernel
        if flag:
            out_shapes.append(jax.ShapeDtypeStruct((N, H, W, Cout), jnp.bfloat16))
            out_specs.append(pl.BlockSpec((1, TH, W, TC),
                                          lambda n, co, r: (n, r, 0, co)))

    kernel = functools.partial(
        _conv3x3_kernel, TH=TH, W=W, apply_relu=apply_relu, pool=pool,
        want_prerelu=want_prerelu, want_prepool=want_prepool)

    # VMEM budget (generation-aware): double-buffered blocks + scratch + acc.
    in_blk = H * W * Cin * 2
    w_blk = 9 * Cin * TC * 2
    b_blk = TC * 4
    out_blk = (main_block[1] * main_block[2] * TC
               + TH * W * TC * (int(want_prerelu) + int(want_prepool))) * 2
    scratch_bytes = (TH + 2) * (W + 2) * Cin * 2
    acc_bytes = TH * W * TC * 4
    vmem_est = (2 * (in_blk + w_blk + b_blk + out_blk)
                + scratch_bytes + 3 * acc_bytes + (4 << 20))
    cap = _vmem_capacity_bytes()
    vmem_limit = int(min(max(vmem_est, 32 << 20), max(cap - (16 << 20), 24 << 20)))

    flops = 2 * N * H * W * 9 * Cin * Cout
    bytes_out = N * Ho * Wo * Cout * 2
    bytes_out += N * H * W * Cout * 2 * (int(want_prerelu) + int(want_prepool))
    bytes_accessed = N * H * W * Cin * 2 + 9 * Cin * Cout * 2 + Cout * 4 + bytes_out

    outs = pl.pallas_call(
        kernel,
        out_shape=tuple(out_shapes),
        grid=(N, n_co, n_r),
        in_specs=[
            # Full (unpadded) image per batch element; constant block index
            # along co/r -> DMA'd once per n, halo handled in-kernel.
            # TODO(synk): on v7x, row-tile this input with a (TH+2)-row halo via
            # memory_space=pl.ANY + manual make_async_copy and single-buffer the
            # weights (pl.Buffered(1)) to further cut resident VMEM.
            pl.BlockSpec((1, H, W, Cin), lambda n, co, r: (n, 0, 0, 0)),
            pl.BlockSpec((3, 3, Cin, TC), lambda n, co, r: (0, 0, 0, co)),
            pl.BlockSpec((1, TC), lambda n, co, r: (0, co)),
        ],
        out_specs=tuple(out_specs),
        scratch_shapes=[pltpu.VMEM((TH + 2, W + 2, Cin), jnp.bfloat16)],
        compiler_params=pltpu.CompilerParams(
            dimension_semantics=("parallel", "parallel", "parallel"),
            vmem_limit_bytes=vmem_limit),
        cost_estimate=pl.CostEstimate(flops=flops, transcendentals=0,
                                      bytes_accessed=bytes_accessed),
    )(x, w, b2)
    if not isinstance(outs, (list, tuple)):
        outs = (outs,)
    return tuple(outs)


def relu(x):
    """Standalone ReLU (kept for safety; unused when relu fuses into conv)."""
    N, H, W, C = x.shape
    bpr = W * C * x.dtype.itemsize
    cap = max(1, (4 << 20) // bpr)
    TH = _largest_divisor_leq(H, cap) or 1
    return pl.pallas_call(
        _relu_kernel,
        out_shape=jax.ShapeDtypeStruct((N, H, W, C), x.dtype),
        grid=(N, H // TH),
        in_specs=[pl.BlockSpec((1, TH, W, C), lambda n, r: (n, r, 0, 0))],
        out_specs=pl.BlockSpec((1, TH, W, C), lambda n, r: (n, r, 0, 0)),
        compiler_params=pltpu.CompilerParams(
            dimension_semantics=("parallel", "parallel")),
    )(x)


def pool2x2(x, reduce='max'):
    """Standalone 2x2/2 pool (used only when pool fusion is not possible)."""
    N, H, W, C = x.shape
    Ho, Wo = H // 2, W // 2
    x = x[:, :2 * Ho, :2 * Wo, :]
    bpr = 2 * 2 * Wo * C * x.dtype.itemsize
    cap = max(1, (2 << 20) // bpr)
    THo = _largest_divisor_leq(Ho, cap) or 1
    kernel = functools.partial(_pool2x2_kernel, reduce=reduce)
    return pl.pallas_call(
        kernel,
        out_shape=jax.ShapeDtypeStruct((N, Ho, Wo, C), x.dtype),
        grid=(N, Ho // THo),
        in_specs=[pl.BlockSpec((1, 2 * THo, 2 * Wo, C), lambda n, r: (n, r, 0, 0))],
        out_specs=pl.BlockSpec((1, THo, Wo, C), lambda n, r: (n, r, 0, 0)),
        compiler_params=pltpu.CompilerParams(
            dimension_semantics=("parallel", "parallel")),
    )(x)


# --------------------------- feature extractor ------------------------------

def init_vgg16_params(layers, key):
    """Deterministic synthetic weights for every conv layer in the prefix."""
    params = {}
    for name in build_extractor_layer_list(layers):
        if name.startswith('conv'):
            cin, cout = VGG_CONV_CFG[name]
            key, k_w, k_b = jax.random.split(key, 3)
            w = 0.05 * jax.random.normal(k_w, (3, 3, cin, cout), jnp.float32)  # HWIO
            b = 0.01 * jax.random.normal(k_b, (cout,), jnp.float32)
            params[name] = (w.astype(jnp.bfloat16), b)
    return params


def _to_nchw(h):
    return jnp.transpose(h, (0, 3, 1, 2)).astype(jnp.float32)


def vgg16_feature_extractor(x_nchw, params, layers, *,
                            normalize=False, use_avg_pool=False):
    """Forward pass. x_nchw: (N,3,H,W). Returns dict name -> activation (NCHW f32)."""
    # TODO(synk): rescale_img (F.interpolate to 224x224, nearest) and
    # random_crop_image are not implemented (module defaults are False).
    x = jnp.transpose(x_nchw, (0, 2, 3, 1)).astype(jnp.float32)   # NCHW -> NHWC
    if normalize:
        mean = jnp.array([0.485, 0.456, 0.406], jnp.float32)
        std = jnp.array([0.229, 0.224, 0.225], jnp.float32)
        x = (x - mean) / std
    h = x.astype(jnp.bfloat16)                    # bf16 activation storage

    layers = list(layers)
    names = build_extractor_layer_list(layers)
    pool_mode = 'avg' if use_avg_pool else 'max'
    activations = {}
    i = 0
    while i < len(names):
        name = names[i]
        if name.startswith('conv'):
            w, b = params[name]
            relu_name = (names[i + 1]
                         if i + 1 < len(names) and names[i + 1].startswith('relu')
                         else None)
            pool_name = None
            if (relu_name is not None and i + 2 < len(names)
                    and names[i + 2].startswith('maxpool')
                    and h.shape[1] % 2 == 0 and h.shape[2] % 2 == 0):
                pool_name = names[i + 2]
            # Hooks on intermediate tensors come out as extra fused outputs.
            want_prerelu = (name in layers) and (relu_name is not None)
            want_prepool = (pool_name is not None) and (relu_name in layers)

            outs = conv3x3(h, w, b,
                           apply_relu=(relu_name is not None),
                           pool=(pool_mode if pool_name is not None else None),
                           want_prerelu=want_prerelu,
                           want_prepool=want_prepool)
            main = outs[0]
            oi = 1
            prerelu = prepool = None
            if want_prerelu:
                prerelu = outs[oi]; oi += 1
            if want_prepool:
                prepool = outs[oi]; oi += 1

            if name in layers:
                activations[name] = _to_nchw(prerelu if relu_name is not None else main)
            if relu_name is not None and relu_name in layers:
                activations[relu_name] = _to_nchw(
                    prepool if pool_name is not None else main)
            if pool_name is not None and pool_name in layers:
                activations[pool_name] = _to_nchw(main)

            h = main
            i += 1 + (1 if relu_name is not None else 0) \
                   + (1 if pool_name is not None else 0)
        elif name.startswith('relu'):             # unreachable in VGG topology
            h = relu(h)
            if name in layers:
                activations[name] = _to_nchw(h)
            i += 1
        else:                                     # maxpool* with no fusion possible
            h = pool2x2(h, reduce=pool_mode)
            if name in layers:
                activations[name] = _to_nchw(h)
            i += 1
    return activations


# ----------------------------------- main ------------------------------------

if __name__ == "__main__":
    key = jax.random.PRNGKey(0)
    k_x, k_p = jax.random.split(key)

    # Small input consistent with the module: NCHW, 3 channels.
    x = jax.random.uniform(k_x, (2, 3, 16, 16), jnp.float32)

    layers = ['relu1_2', 'relu2_2']                   # hooks on these layers
    params = init_vgg16_params(layers + ['maxpool2'], k_p)

    acts = vgg16_feature_extractor(x, params, layers,
                                   normalize=True, use_avg_pool=False)
    acts = jax.block_until_ready(acts)

    assert set(acts.keys()) == set(layers)
    assert acts['relu1_2'].shape == (2, 64, 16, 16)
    assert acts['relu2_2'].shape == (2, 128, 8, 8)
    assert all(bool(jnp.isfinite(v).all()) for v in acts.values())
    assert all(bool((v >= 0).all()) for v in acts.values())   # post-ReLU

    # Fully fused conv+relu+pool path, cross-checked against pooling the hooked
    # relu2_2 activation from the first run.
    acts2 = vgg16_feature_extractor(x, params, ['maxpool2'],
                                    normalize=True, use_avg_pool=False)
    acts2 = jax.block_until_ready(acts2)
    assert acts2['maxpool2'].shape == (2, 128, 4, 4)
    assert bool(jnp.isfinite(acts2['maxpool2']).all())
    ref_pool = jnp.max(acts['relu2_2'].reshape(2, 128, 4, 2, 4, 2), axis=(3, 5))
    assert bool(jnp.allclose(acts2['maxpool2'], ref_pool, atol=1e-3))

    # Cross-check the fused conv + in-kernel padding + bias + relu kernel
    # against an XLA reference on the first layer.
    mean = jnp.array([0.485, 0.456, 0.406], jnp.float32)
    std = jnp.array([0.229, 0.224, 0.225], jnp.float32)
    xn = ((jnp.transpose(x, (0, 2, 3, 1)) - mean) / std).astype(jnp.bfloat16)
    w0, b0 = params['conv1_1']
    got = conv3x3(xn, w0, b0, apply_relu=True)[0].astype(jnp.float32)
    want = jax.lax.conv_general_dilated(
        xn.astype(jnp.float32), w0.astype(jnp.float32), (1, 1), 'SAME',
        dimension_numbers=('NHWC', 'HWIO', 'NHWC')) + b0
    want = jnp.maximum(want, 0.0)
    assert bool(jnp.allclose(got, want, atol=5e-2, rtol=5e-2))

    print("KERNEL_OK")
</pallas_src>

<mosaic_0001>
module attributes {stable_mosaic.version = 11 : i64} {
  func.func @_conv3x3_kernel(%arg0: i32, %arg1: i32, %arg2: i32, %arg3: memref<1x16x16x16xbf16, #tpu.memory_space<vmem>>, %arg4: memref<3x3x16x64xbf16, #tpu.memory_space<vmem>>, %arg5: memref<1x64xf32, #tpu.memory_space<vmem>>, %arg6: memref<1x16x16x64xbf16, #tpu.memory_space<vmem>>, %arg7: memref<18x18x16xbf16, #tpu.memory_space<vmem>>) attributes {dimension_semantics = [#tpu.dimension_semantics<parallel>, #tpu.dimension_semantics<parallel>, #tpu.dimension_semantics<parallel>], iteration_bounds = array<i64: 2, 1, 1>, scalar_prefetch = 0 : i64, scratch_operands = 1 : i64, tpu.core_type = #tpu.core_type<tc>, window_params = [{transform_indices = @transform_0, window_bounds = array<i64: 1, 16, 16, 16>}, {transform_indices = @transform_1, window_bounds = array<i64: 3, 3, 16, 64>}, {transform_indices = @transform_2, window_bounds = array<i64: 1, 64>}, {transform_indices = @transform_3, window_bounds = array<i64: 1, 16, 16, 64>}]} {
    %c16_i32 = arith.constant 16 : i32
    %0 = arith.muli %arg2, %c16_i32 : i32
    %1 = tpu.assume_multiple %0, 16 : i32
    %cst = arith.constant 0.000000e+00 : bf16
    %2 = vector.broadcast %cst : bf16 to vector<1x18x16xbf16>
    %cst_0 = arith.constant 0.000000e+00 : bf16
    %3 = vector.broadcast %cst_0 : bf16 to vector<16x1x16xbf16>
    %c0 = arith.constant 0 : index
    %c0_1 = arith.constant 0 : index
    %c0_2 = arith.constant 0 : index
    %4 = vector.load %arg7[%c0, %c0_1, %c0_2] : memref<18x18x16xbf16, #tpu.memory_space<vmem>>, vector<1x18x16xbf16>
    tpu.vector_store %arg7[%c0, %c0_1, %c0_2], %2 {strides = array<i32>} : memref<18x18x16xbf16, #tpu.memory_space<vmem>>, vector<1x18x16xbf16>,
    %c17 = arith.constant 17 : index
    %c0_3 = arith.constant 0 : index
    %c0_4 = arith.constant 0 : index
    %5 = vector.load %arg7[%c17, %c0_3, %c0_4] : memref<18x18x16xbf16, #tpu.memory_space<vmem>>, vector<1x18x16xbf16>
    tpu.vector_store %arg7[%c17, %c0_3, %c0_4], %2 {strides = array<i32>} : memref<18x18x16xbf16, #tpu.memory_space<vmem>>, vector<1x18x16xbf16>,
    %c1 = arith.constant 1 : index
    %c0_5 = arith.constant 0 : index
    %c0_6 = arith.constant 0 : index
    %6 = vector.load %arg7[%c1, %c0_5, %c0_6] : memref<18x18x16xbf16, #tpu.memory_space<vmem>>, vector<16x1x16xbf16>
    tpu.vector_store %arg7[%c1, %c0_5, %c0_6], %3 {strides = array<i32>} : memref<18x18x16xbf16, #tpu.memory_space<vmem>>, vector<16x1x16xbf16>,
    %c1_7 = arith.constant 1 : index
    %c17_8 = arith.constant 17 : index
    %c0_9 = arith.constant 0 : index
    %7 = vector.load %arg7[%c1_7, %c17_8, %c0_9] : memref<18x18x16xbf16, #tpu.memory_space<vmem>>, vector<16x1x16xbf16>
    tpu.vector_store %arg7[%c1_7, %c17_8, %c0_9], %3 {strides = array<i32>} : memref<18x18x16xbf16, #tpu.memory_space<vmem>>, vector<16x1x16xbf16>,
    %c0_10 = arith.constant 0 : index
    %8 = arith.index_cast %1 : i32 to index
    %c0_11 = arith.constant 0 : index
    %c0_12 = arith.constant 0 : index
    %9 = vector.load %arg3[%c0_10, %8, %c0_11, %c0_12] : memref<1x16x16x16xbf16, #tpu.memory_space<vmem>>, vector<1x16x16x16xbf16>
    %10 = vector.shape_cast %9 : vector<1x16x16x16xbf16> to vector<16x16x16xbf16>
    %c1_13 = arith.constant 1 : index
    %c1_14 = arith.constant 1 : index
    %c0_15 = arith.constant 0 : index
    %11 = vector.load %arg7[%c1_13, %c1_14, %c0_15] : memref<18x18x16xbf16, #tpu.memory_space<vmem>>, vector<16x16x16xbf16>
    tpu.vector_store %arg7[%c1_13, %c1_14, %c0_15], %10 {strides = array<i32>} : memref<18x18x16xbf16, #tpu.memory_space<vmem>>, vector<16x16x16xbf16>,
    %c0_i32 = arith.constant 0 : i32
    %12 = arith.cmpi sgt, %arg2, %c0_i32 : i32
    %13 = arith.extui %12 : i1 to i32
    %c0_i32_16 = arith.constant 0 : i32
    %14 = arith.cmpi ne, %13, %c0_i32_16 : i32
    scf.if %14 {
      %c1_i32 = arith.constant 1 : i32
      %83 = arith.subi %1, %c1_i32 : i32
      %c0_98 = arith.constant 0 : index
      %84 = arith.index_cast %83 : i32 to index
      %c0_99 = arith.constant 0 : index
      %c0_100 = arith.constant 0 : index
      %85 = vector.load %arg3[%c0_98, %84, %c0_99, %c0_100] : memref<1x16x16x16xbf16, #tpu.memory_space<vmem>>, vector<1x1x16x16xbf16>
      %86 = vector.shape_cast %85 : vector<1x1x16x16xbf16> to vector<1x16x16xbf16>
      %c0_101 = arith.constant 0 : index
      %c1_102 = arith.constant 1 : index
      %c0_103 = arith.constant 0 : index
      %87 = vector.load %arg7[%c0_101, %c1_102, %c0_103] : memref<18x18x16xbf16, #tpu.memory_space<vmem>>, vector<1x16x16xbf16>
      tpu.vector_store %arg7[%c0_101, %c1_102, %c0_103], %86 {strides = array<i32>} : memref<18x18x16xbf16, #tpu.memory_space<vmem>>, vector<1x16x16xbf16>,
    } else {
    }
    %c0_i32_17 = arith.constant 0 : i32
    %15 = arith.cmpi slt, %arg2, %c0_i32_17 : i32
    %16 = arith.extui %15 : i1 to i32
    %c0_i32_18 = arith.constant 0 : i32
    %17 = arith.cmpi ne, %16, %c0_i32_18 : i32
    scf.if %17 {
      %c16_i32_98 = arith.constant 16 : i32
      %83 = arith.addi %1, %c16_i32_98 : i32
      %c0_99 = arith.constant 0 : index
      %84 = arith.index_cast %83 : i32 to index
      %c0_100 = arith.constant 0 : index
      %c0_101 = arith.constant 0 : index
      %85 = vector.load %arg3[%c0_99, %84, %c0_100, %c0_101] : memref<1x16x16x16xbf16, #tpu.memory_space<vmem>>, vector<1x1x16x16xbf16>
      %86 = vector.shape_cast %85 : vector<1x1x16x16xbf16> to vector<1x16x16xbf16>
      %c17_102 = arith.constant 17 : index
      %c1_103 = arith.constant 1 : index
      %c0_104 = arith.constant 0 : index
      %87 = vector.load %arg7[%c17_102, %c1_103, %c0_104] : memref<18x18x16xbf16, #tpu.memory_space<vmem>>, vector<1x16x16xbf16>
      tpu.vector_store %arg7[%c17_102, %c1_103, %c0_104], %86 {strides = array<i32>} : memref<18x18x16xbf16, #tpu.memory_space<vmem>>, vector<1x16x16xbf16>,
    } else {
    }
    %cst_19 = arith.constant 0.000000e+00 : f32
    %18 = vector.broadcast %cst_19 : f32 to vector<256x64xf32>
    %c0_20 = arith.constant 0 : index
    %c0_21 = arith.constant 0 : index
    %c0_22 = arith.constant 0 : index
    %19 = vector.load %arg7[%c0_20, %c0_21, %c0_22] : memref<18x18x16xbf16, #tpu.memory_space<vmem>>, vector<16x16x16xbf16>
    %20 = vector.shape_cast %19 : vector<16x16x16xbf16> to vector<256x16xbf16>
    %c0_23 = arith.constant 0 : index
    %c0_24 = arith.constant 0 : index
    %c0_25 = arith.constant 0 : index
    %c0_26 = arith.constant 0 : index
    %21 = vector.load %arg4[%c0_23, %c0_24, %c0_25, %c0_26] : memref<3x3x16x64xbf16, #tpu.memory_space<vmem>>, vector<1x1x16x64xbf16>
    %22 = vector.shape_cast %21 : vector<1x1x16x64xbf16> to vector<16x64xbf16>
    %cst_27 = arith.constant dense<0.000000e+00> : vector<256x64xf32>
    %23 = tpu.matmul %20, %22, %cst_27 {dimension_numbers = #tpu.dot_dimension_numbers<[1], [0], [0], [1], [0, 0, 1, 1], [], []>} : vector<256x16xbf16>, vector<16x64xbf16>, vector<256x64xf32> -> vector<256x64xf32>
    %24 = arith.addf %18, %23 : vector<256x64xf32>
    %c0_28 = arith.constant 0 : index
    %c1_29 = arith.constant 1 : index
    %c0_30 = arith.constant 0 : index
    %25 = vector.load %arg7[%c0_28, %c1_29, %c0_30] : memref<18x18x16xbf16, #tpu.memory_space<vmem>>, vector<16x16x16xbf16>
    %26 = vector.shape_cast %25 : vector<16x16x16xbf16> to vector<256x16xbf16>
    %c0_31 = arith.constant 0 : index
    %c1_32 = arith.constant 1 : index
    %c0_33 = arith.constant 0 : index
    %c0_34 = arith.constant 0 : index
    %27 = vector.load %arg4[%c0_31, %c1_32, %c0_33, %c0_34] : memref<3x3x16x64xbf16, #tpu.memory_space<vmem>>, vector<1x1x16x64xbf16>
    %28 = vector.shape_cast %27 : vector<1x1x16x64xbf16> to vector<16x64xbf16>
    %cst_35 = arith.constant dense<0.000000e+00> : vector<256x64xf32>
    %29 = tpu.matmul %26, %28, %cst_35 {dimension_numbers = #tpu.dot_dimension_numbers<[1], [0], [0], [1], [0, 0, 1, 1], [], []>} : vector<256x16xbf16>, vector<16x64xbf16>, vector<256x64xf32> -> vector<256x64xf32>
    %30 = arith.addf %24, %29 : vector<256x64xf32>
    %c0_36 = arith.constant 0 : index
    %c2 = arith.constant 2 : index
    %c0_37 = arith.constant 0 : index
    %31 = vector.load %arg7[%c0_36, %c2, %c0_37] : memref<18x18x16xbf16, #tpu.memory_space<vmem>>, vector<16x16x16xbf16>
    %32 = vector.shape_cast %31 : vector<16x16x16xbf16> to vector<256x16xbf16>
    %c0_38 = arith.constant 0 : index
    %c2_39 = arith.constant 2 : index
    %c0_40 = arith.constant 0 : index
    %c0_41 = arith.constant 0 : index
    %33 = vector.load %arg4[%c0_38, %c2_39, %c0_40, %c0_41] : memref<3x3x16x64xbf16, #tpu.memory_space<vmem>>, vector<1x1x16x64xbf16>
    %34 = vector.shape_cast %33 : vector<1x1x16x64xbf16> to vector<16x64xbf16>
    %cst_42 = arith.constant dense<0.000000e+00> : vector<256x64xf32>
    %35 = tpu.matmul %32, %34, %cst_42 {dimension_numbers = #tpu.dot_dimension_numbers<[1], [0], [0], [1], [0, 0, 1, 1], [], []>} : vector<256x16xbf16>, vector<16x64xbf16>, vector<256x64xf32> -> vector<256x64xf32>
    %36 = arith.addf %30, %35 : vector<256x64xf32>
    %c1_43 = arith.constant 1 : index
    %c0_44 = arith.constant 0 : index
    %c0_45 = arith.constant 0 : index
    %37 = vector.load %arg7[%c1_43, %c0_44, %c0_45] : memref<18x18x16xbf16, #tpu.memory_space<vmem>>, vector<16x16x16xbf16>
    %38 = vector.shape_cast %37 : vector<16x16x16xbf16> to vector<256x16xbf16>
    %c1_46 = arith.constant 1 : index
    %c0_47 = arith.constant 0 : index
    %c0_48 = arith.constant 0 : index
    %c0_49 = arith.constant 0 : index
    %39 = vector.load %arg4[%c1_46, %c0_47, %c0_48, %c0_49] : memref<3x3x16x64xbf16, #tpu.memory_space<vmem>>, vector<1x1x16x64xbf16>
    %40 = vector.shape_cast %39 : vector<1x1x16x64xbf16> to vector<16x64xbf16>
    %cst_50 = arith.constant dense<0.000000e+00> : vector<256x64xf32>
    %41 = tpu.matmul %38, %40, %cst_50 {dimension_numbers = #tpu.dot_dimension_numbers<[1], [0], [0], [1], [0, 0, 1, 1], [], []>} : vector<256x16xbf16>, vector<16x64xbf16>, vector<256x64xf32> -> vector<256x64xf32>
    %42 = arith.addf %36, %41 : vector<256x64xf32>
    %c1_51 = arith.constant 1 : index
    %c1_52 = arith.constant 1 : index
    %c0_53 = arith.constant 0 : index
    %43 = vector.load %arg7[%c1_51, %c1_52, %c0_53] : memref<18x18x16xbf16, #tpu.memory_space<vmem>>, vector<16x16x16xbf16>
    %44 = vector.shape_cast %43 : vector<16x16x16xbf16> to vector<256x16xbf16>
    %c1_54 = arith.constant 1 : index
    %c1_55 = arith.constant 1 : index
    %c0_56 = arith.constant 0 : index
    %c0_57 = arith.constant 0 : index
    %45 = vector.load %arg4[%c1_54, %c1_55, %c0_56, %c0_57] : memref<3x3x16x64xbf16, #tpu.memory_space<vmem>>, vector<1x1x16x64xbf16>
    %46 = vector.shape_cast %45 : vector<1x1x16x64xbf16> to vector<16x64xbf16>
    %cst_58 = arith.constant dense<0.000000e+00> : vector<256x64xf32>
    %47 = tpu.matmul %44, %46, %cst_58 {dimension_numbers = #tpu.dot_dimension_numbers<[1], [0], [0], [1], [0, 0, 1, 1], [], []>} : vector<256x16xbf16>, vector<16x64xbf16>, vector<256x64xf32> -> vector<256x64xf32>
    %48 = arith.addf %42, %47 : vector<256x64xf32>
    %c1_59 = arith.constant 1 : index
    %c2_60 = arith.constant 2 : index
    %c0_61 = arith.constant 0 : index
    %49 = vector.load %arg7[%c1_59, %c2_60, %c0_61] : memref<18x18x16xbf16, #tpu.memory_space<vmem>>, vector<16x16x16xbf16>
    %50 = vector.shape_cast %49 : vector<16x16x16xbf16> to vector<256x16xbf16>
    %c1_62 = arith.constant 1 : index
    %c2_63 = arith.constant 2 : index
    %c0_64 = arith.constant 0 : index
    %c0_65 = arith.constant 0 : index
    %51 = vector.load %arg4[%c1_62, %c2_63, %c0_64, %c0_65] : memref<3x3x16x64xbf16, #tpu.memory_space<vmem>>, vector<1x1x16x64xbf16>
    %52 = vector.shape_cast %51 : vector<1x1x16x64xbf16> to vector<16x64xbf16>
    %cst_66 = arith.constant dense<0.000000e+00> : vector<256x64xf32>
    %53 = tpu.matmul %50, %52, %cst_66 {dimension_numbers = #tpu.dot_dimension_numbers<[1], [0], [0], [1], [0, 0, 1, 1], [], []>} : vector<256x16xbf16>, vector<16x64xbf16>, vector<256x64xf32> -> vector<256x64xf32>
    %54 = arith.addf %48, %53 : vector<256x64xf32>
    %c2_67 = arith.constant 2 : index
    %c0_68 = arith.constant 0 : index
    %c0_69 = arith.constant 0 : index
    %55 = vector.load %arg7[%c2_67, %c0_68, %c0_69] : memref<18x18x16xbf16, #tpu.memory_space<vmem>>, vector<16x16x16xbf16>
    %56 = vector.shape_cast %55 : vector<16x16x16xbf16> to vector<256x16xbf16>
    %c2_70 = arith.constant 2 : index
    %c0_71 = arith.constant 0 : index
    %c0_72 = arith.constant 0 : index
    %c0_73 = arith.constant 0 : index
    %57 = vector.load %arg4[%c2_70, %c0_71, %c0_72, %c0_73] : memref<3x3x16x64xbf16, #tpu.memory_space<vmem>>, vector<1x1x16x64xbf16>
    %58 = vector.shape_cast %57 : vector<1x1x16x64xbf16> to vector<16x64xbf16>
    %cst_74 = arith.constant dense<0.000000e+00> : vector<256x64xf32>
    %59 = tpu.matmul %56, %58, %cst_74 {dimension_numbers = #tpu.dot_dimension_numbers<[1], [0], [0], [1], [0, 0, 1, 1], [], []>} : vector<256x16xbf16>, vector<16x64xbf16>, vector<256x64xf32> -> vector<256x64xf32>
    %60 = arith.addf %54, %59 : vector<256x64xf32>
    %c2_75 = arith.constant 2 : index
    %c1_76 = arith.constant 1 : index
    %c0_77 = arith.constant 0 : index
    %61 = vector.load %arg7[%c2_75, %c1_76, %c0_77] : memref<18x18x16xbf16, #tpu.memory_space<vmem>>, vector<16x16x16xbf16>
    %62 = vector.shape_cast %61 : vector<16x16x16xbf16> to vector<256x16xbf16>
    %c2_78 = arith.constant 2 : index
    %c1_79 = arith.constant 1 : index
    %c0_80 = arith.constant 0 : index
    %c0_81 = arith.constant 0 : index
    %63 = vector.load %arg4[%c2_78, %c1_79, %c0_80, %c0_81] : memref<3x3x16x64xbf16, #tpu.memory_space<vmem>>, vector<1x1x16x64xbf16>
    %64 = vector.shape_cast %63 : vector<1x1x16x64xbf16> to vector<16x64xbf16>
    %cst_82 = arith.constant dense<0.000000e+00> : vector<256x64xf32>
    %65 = tpu.matmul %62, %64, %cst_82 {dimension_numbers = #tpu.dot_dimension_numbers<[1], [0], [0], [1], [0, 0, 1, 1], [], []>} : vector<256x16xbf16>, vector<16x64xbf16>, vector<256x64xf32> -> vector<256x64xf32>
    %66 = arith.addf %60, %65 : vector<256x64xf32>
    %c2_83 = arith.constant 2 : index
    %c2_84 = arith.constant 2 : index
    %c0_85 = arith.constant 0 : index
    %67 = vector.load %arg7[%c2_83, %c2_84, %c0_85] : memref<18x18x16xbf16, #tpu.memory_space<vmem>>, vector<16x16x16xbf16>
    %68 = vector.shape_cast %67 : vector<16x16x16xbf16> to vector<256x16xbf16>
    %c2_86 = arith.constant 2 : index
    %c2_87 = arith.constant 2 : index
    %c0_88 = arith.constant 0 : index
    %c0_89 = arith.constant 0 : index
    %69 = vector.load %arg4[%c2_86, %c2_87, %c0_88, %c0_89] : memref<3x3x16x64xbf16, #tpu.memory_space<vmem>>, vector<1x1x16x64xbf16>
    %70 = vector.shape_cast %69 : vector<1x1x16x64xbf16> to vector<16x64xbf16>
    %cst_90 = arith.constant dense<0.000000e+00> : vector<256x64xf32>
    %71 = tpu.matmul %68, %70, %cst_90 {dimension_numbers = #tpu.dot_dimension_numbers<[1], [0], [0], [1], [0, 0, 1, 1], [], []>} : vector<256x16xbf16>, vector<16x64xbf16>, vector<256x64xf32> -> vector<256x64xf32>
    %72 = arith.addf %66, %71 : vector<256x64xf32>
    %c0_91 = arith.constant 0 : index
    %c0_92 = arith.constant 0 : index
    %73 = vector.load %arg5[%c0_91, %c0_92] : memref<1x64xf32, #tpu.memory_space<vmem>>, vector<1x64xf32>
    %74 = vector.broadcast %73 : vector<1x64xf32> to vector<256x64xf32>
    %75 = arith.addf %72, %74 : vector<256x64xf32>
    %cst_93 = arith.constant 0.000000e+00 : f32
    %76 = vector.broadcast %cst_93 : f32 to vector<256x64xf32>
    %77 = arith.maximumf %75, %76 : vector<256x64xf32>
    %78 = vector.shape_cast %77 : vector<256x64xf32> to vector<16x16x64xf32>
    %79 = arith.truncf %78 : vector<16x16x64xf32> to vector<16x16x64xbf16>
    %c0_94 = arith.constant 0 : index
    %c0_95 = arith.constant 0 : index
    %c0_96 = arith.constant 0 : index
    %c0_97 = arith.constant 0 : index
    %80 = vector.load %arg6[%c0_94, %c0_95, %c0_96, %c0_97] : memref<1x16x16x64xbf16, #tpu.memory_space<vmem>>, vector<1x16x16x64xbf16>
    %81 = vector.shape_cast %80 : vector<1x16x16x64xbf16> to vector<16x16x64xbf16>
    %82 = vector.shape_cast %79 : vector<16x16x64xbf16> to vector<1x16x16x64xbf16>
    tpu.vector_store %arg6[%c0_94, %c0_95, %c0_96, %c0_97], %82 {strides = array<i32>} : memref<1x16x16x64xbf16, #tpu.memory_space<vmem>>, vector<1x16x16x64xbf16>,
    return
  }
  func.func @transform_0(%arg0: i32, %arg1: i32, %arg2: i32) -> (i32, i32, i32, i32) {
    %c0_i32 = arith.constant 0 : i32
    %c0_i32_0 = arith.constant 0 : i32
    %c0_i32_1 = arith.constant 0 : i32
    %c0_i32_2 = arith.constant 0 : i32
    return %arg0, %c0_i32, %c0_i32_0, %c0_i32_1 : i32, i32, i32, i32
  }
  func.func @transform_1(%arg0: i32, %arg1: i32, %arg2: i32) -> (i32, i32, i32, i32) {
    %c0_i32 = arith.constant 0 : i32
    %c0_i32_0 = arith.constant 0 : i32
    %c0_i32_1 = arith.constant 0 : i32
    %c0_i32_2 = arith.constant 0 : i32
    return %c0_i32, %c0_i32_0, %c0_i32_1, %arg1 : i32, i32, i32, i32
  }
  func.func @transform_2(%arg0: i32, %arg1: i32, %arg2: i32) -> (i32, i32) {
    %c0_i32 = arith.constant 0 : i32
    %c0_i32_0 = arith.constant 0 : i32
    return %c0_i32, %arg1 : i32, i32
  }
  func.func @transform_3(%arg0: i32, %arg1: i32, %arg2: i32) -> (i32, i32, i32, i32) {
    %c0_i32 = arith.constant 0 : i32
    %c0_i32_0 = arith.constant 0 : i32
    return %arg0, %arg2, %c0_i32, %arg1 : i32, i32, i32, i32
  }
}

</mosaic_0001>

<bundles_post_ra>
// kernel: tpu_custom_call.1
= control target key start
LH: loop header
LB: loop body
LE: loop exit
PB: predicated region body
PF: predicated region fallthrough
CT: control target
= control target key end

     0   :  { %8 = vsyncpa [#allocation4], 0  ;;  %s9854_s0 = inlined_call_operand.hbm [shape: bf16[2,16,16,16], index: 0, kind: input, shape index: {}]   ;;  %s9855_s1 = inlined_call_operand.hbm [shape: bf16[3,3,16,64], index: 1, kind: input, shape index: {}]   ;;  %s9856_s2 = inlined_call_operand.vmem [shape: f32[1,64], index: 2, kind: input, shape index: {}]   ;;  %s9857_s3 = inlined_call_operand.hbm [shape: bf16[2,16,16,64], index: 3, kind: output, shape index: {}]  }
   0x1   :  { %10 = vsyncpa [#allocation4 + $0x1], 0 }
   0x2   :  { %11 = vsyncpa [#allocation7], 0 }
   0x3   :  { %12 = vsyncpa [#allocation5], 0 }
   0x4   :  { %14 = vsyncpa [#allocation5 + $0x1], 0  ;;  %s7075_s12 = smov 0   ;;  %s7077_s13 = smov 0  }
   0x5   :  { %s7079_s14 = smov 0   ;;  %s7081_s15 = smov 0  }
   0x6   :  { %s7083_s16 = smov 0   ;;  %s7085_s17 = smov 0  }
   0x7 LB: > { %s5870_s18 = sadd.s32 4294967295, %s7045_s17   ;;  %s5871_s19 = sadd.s32 4294967294, %s7045_s17   ;;  %s7045_s17 = sphi %s7085_s17, %s20_s17   ;;  %s7041_s16 = sphi %s7083_s16, %s10128_s16   ;;  %s7037_s15 = sphi %s7081_s15, %s10127_s15   ;;  %s7033_s14 = sphi %s7079_s14, %s10126_s14   ;;  %s7029_s13 = sphi %s7077_s13, %s10125_s13   ;;  %s7025_s12 = sphi %s7075_s12, %s10124_s12  }
   0x8   : > { %p59_p0 = scmp.ne.s32.totalorder %s7029_s13, %s7025_s12  ;;  %p7109_p1 = scmp.eq.s32.totalorder %s5870_s18, 0 }
   0x9   : > { %p7113_p2 = scmp.eq.s32.totalorder %s5870_s18, 1  ;;  %p145_p3 = scmp.eq.s32.totalorder %s5871_s19, 1 }
   0xa   : > { %p7119_p4 = por %p7109_p1, %p59_p0  ;;  %p5872_p5 = scmp.ge.s32.totalorder %s7045_s17, 1 }
   0xb   : > { %p7124_p6 = por %p145_p3, %p59_p0  ;;  %p152_p7 = scmp.lt.s32.totalorder %s7045_s17, 3 }
   0xc   : > { %s9875_s22 = scalar_select %p7119_p4, 1, 0 }
   0xd   : > { %s9876_s23 = scalar_select %p7124_p6, 1, 0 }
   0xe   : > { %p7129_p8 = pnand %p5872_p5, %p152_p7  ;;  %s7047_s25 = smov [#allocation6]  }
   0xf   : > { %s166_s26 = sshll.u32 %s7047_s25, 4  ;;  %s39_s28 = sadd.s32 1, %s7041_s16  ;;  %s167_s26 = int_to_ptr.vmem [resolvable:$true] %s166_s26 }
  0x10   : > { %p6773_p9 = pneg %p7129_p8  ;;  %s6918_s29 = scalar_lea.vmem %s167_s26, 1152 }
  0x11   : > { %p6919_p13 = scmp.ne.s32.totalorder %s167_s26, %s6918_s29  ;;  %p6926_p5 = scmp.lt.s32.totalorder %s167_s26, %s167_s26 }
  0x12   : > { %p7138_p11 = pnand %p6773_p9, %p7109_p1  ;;  %p6927_p7 = scmp.lt.s32.totalorder %s6918_s29, %s6918_s29 }
  0x14   : > { %p6909_p12 = pneg %p7138_p11  ;;  %p6928_p6 = por %p6927_p7, %p6926_p5 }
  0x16   : > { %p6921_p0 = pnand %p6919_p13, %p6909_p12 }
  0x18   : > { %p6922_p3 = pneg %p6921_p0 }
  0x1a   : > { %p6929_p4 = pnand %p6928_p6, %p6922_p3 }
  0x1c   : > { %6932 = shalt.err (!%p6929_p4)
}
  0x1d   : > { %s9859_s30 = smov 64   ;;  %s9860_s4 = smov 4  }
  0x1e   : > { %6776 = dma.hbm_to_vmem [thread:$0]  (!%p7138_p11), %s9855_s1, 1152, %s167_s26, [#allocation7], %s9859_s30, %s9859_s30, %s9860_s4  }
  0x1f   : > { %p41_p4 = scmp.ge.s32.totalorder %s39_s28, 2  ;;  %s46_s7 = sadd.s32 1, %s7033_s14 }
  0x20   : > { %p53_p6 = scmp.ne.s32.totalorder %s7033_s14, %s7029_s13  ;;  %p54_p9 = scmp.eq.s32.totalorder %s7045_s17, 0 }
  0x21   : > { %s10130_s28 = smov (%p41_p4, %s39_s28), 0  ;;  %p6786_p0 = scmp.lt.s32.totalorder %s7045_s17, 2 }
  0x22   : > { %p7159_p12 = por %p54_p9, %p53_p6  ;;  %p7165_p13 = por %p7113_p2, %p53_p6 }
  0x23   : > { %s43_s10 = ssub.s32 %s7041_s16, %s10130_s28  ;;  %s186_s11 = sand.u32 1, %s7033_s14  }
  0x24   : > { %p44_p11 = scmp.eq.s32.totalorder %s43_s10, 0  ;;  %s5876_s18 = sshll.u32 %s186_s11, 7 }
  0x25   : > { %s6270_s25 = sshll.u32 %s7041_s16, 11  ;;  %s190_s5 = scalar_lea.vmem [#allocation3], %s5876_s18 }
  0x26   : > { %s7174_s19 = scalar_select %p44_p11, %s7033_s14, %s46_s7  }
  0x27   : > { %s196_s29 = scalar_lea.hbm %s9854_s0, %s6270_s25  ;;  %s197_s6 = sshll.u32 %s190_s5, 4  ;;  %s198_s6 = int_to_ptr.vmem [resolvable:$true] %s197_s6 }
  0x28   : > { %p7182_p2 = pnand %p6786_p0, %p7159_p12  ;;  %s187_s30 = scalar_lea.sflag [#allocation4], %s186_s11 }
  0x29   : > { %s6946_s10 = scalar_lea.vmem %s198_s6, 2048  ;;  %s7050_s7 = smov [#allocation3]  }
  0x2a   : > { %p6935_p3 = pneg %p7182_p2  ;;  %p6947_p5 = scmp.ne.s32.totalorder %s198_s6, %s6946_s10 }
  0x2b   : > { %s6951_s4 = sshll.u32 %s7050_s7, 4  ;;  %s6952_s4 = int_to_ptr.vmem [resolvable:$false] %s6951_s4 }
  0x2c   : > { %p6949_p7 = pnand %p6947_p5, %p6935_p3  ;;  %s6953_s25 = scalar_lea.vmem %s6952_s4, 4096 }
  0x2d   : > { %p6954_p6 = scmp.lt.s32.totalorder %s198_s6, %s6952_s4  ;;  %p6955_p9 = scmp.lt.s32.totalorder %s6953_s25, %s6946_s10 }
  0x2e   : > { %p6950_p4 = pneg %p6949_p7 }
  0x2f   : > { %p6956_p11 = por %p6955_p9, %p6954_p6 }
  0x31   : > { %p6957_p10 = pnand %p6956_p11, %p6950_p4 }
  0x33   : > { %6960 = shalt.err (!%p6957_p10)
}
  0x34   : > { %s9882_s8 = smov 4   ;;  %s9883_s18 = smov 64  }
  0x35   : > { %6780 = dma.hbm_to_vmem [thread:$0]  (!%p7182_p2), %s196_s29, 2048, %s198_s6, %s187_s30, %s9883_s18, %s9883_s18, %s9882_s8  }
  0x36   : > { %209 = sbr.rel (%p7129_p8) target bundleno = 700 (0x2bc), region = 32 }
  0x3b   : > { %s7196_s11 = sand.u32 1, %s7029_s13   ;;  %p9884_p10 = scmp.ne.s32.totalorder %s9875_s22, 0 }
  0x3c   : > { %s5880_s4 = sshll.u32 %s7196_s11, 7  ;;  %s212_s26 = scalar_lea.sflag [#allocation4], %s7196_s11 }
  0x3d   : > { %s7202_s27 = scalar_lea.vmem [#allocation3], %s5880_s4 }
  0x3e   : > { %7012 = dma.done.wait (%p9884_p10), %s212_s26, 2048  }
  0x3f   : > { %7014 = vsyncadd (%p9884_p10), %s212_s26, 4294965248 }
  0x40   : > { %7016 = dma.done.wait (%p7109_p1), [#allocation7], 1152  }
  0x41   : > { %7018 = vsyncadd (%p7109_p1), [#allocation7], 4294966144  ;;  %vm251_vm0 = vcmask 125952   ;;  %vm254_vm1 = vcmask 122880   ;;  %v7051_v0 = vmov 0   ;;  %v9885_v1 = vmov 0 }
  0x42   : > { %252 = vst.msk [vmem:[#allocation2] sm:$0xf] %vm251_vm0, %v7051_v0  ;;  %253 = vst.msk [vmem:[#allocation2 + $0x4] sm:$0xf] %vm251_vm0, %v7051_v0  ;;  %vm262_vm2 = vsmask.f32 256 }
  0x43   : > { %255 = vst.msk [vmem:[#allocation2 + $0x8] sm:$0x1] %vm254_vm1, %v7051_v0  ;;  %259 = vst.msk [vmem:[#allocation2 + $0xd4] sm:$0x1] %vm254_vm1, %v7051_v0  ;;  %vm312_vm3 = vsmask.f32 7938 }
  0x44   : > { %257 = vst.msk [vmem:[#allocation2 + $0xcc] sm:$0xf] %vm251_vm0, %v7051_v0  ;;  %258 = vst.msk [vmem:[#allocation2 + $0xd0] sm:$0xf] %vm251_vm0, %v7051_v0  ;;  %vm957_vm5 = vsmask.f32 3328 }
  0x45   : > { %vm7220_vm4 = vmand %vm254_vm1, %vm262_vm2  ;;  %vm958_vm6 = vsmask.f32 7440  ;;  %vm397_vm7 = vsmask.f32 4368  ;;  %v6843_v2 = vld [vmem:[#allocation6 + $0x8] sm:$0xff]   ;;  %v9888_v6 = vmov 0 }
  0x46   : > { %v9886_v1 = vsel %vm7220_vm4, 4294967295, %v9885_v1  ;;  %6457 = vmatprep.subr.bf16.mxu0 %v6843_v2  ;;  %6763 = vmatprep.subr.bf16.mxu1 %v6843_v2  ;;  %vm7232_vm8 = vmand %vm254_vm1, %vm312_vm3  ;;  %v264_v11 = vld [vmem:[#allocation2 + $0xc] sm:$0x1]  ;;  %vm1401_vm9 = vcmask 130048   ;;  %v314_v14 = vld [vmem:[#allocation2 + $0x14] sm:$0x1] }
  0x47   : > { %9887 = vst [vmem:[#allocation12_spill] sm:$0xff] %v9886_v1  ;;  %v9889_v6 = vsel %vm7232_vm8, 4294967295, %v9888_v6  ;;  %6458 = vmatpush3.bf16.msra.mxu0 %v6843_v2  ;;  %6764 = vmatpush3.bf16.msra.mxu1 %v6843_v2  ;;  %v265_v13 = vsel %vm7220_vm4, 0, %v264_v11  ;;  %v7243_v15 = vld [vmem:[#allocation6] sm:$0xff]   ;;  %v315_v22 = vsel %vm7232_vm8, 0, %v314_v14  ;;  %vm7252_vm10 = vmor %vm957_vm5, %vm958_vm6  ;;  %v7261_v37 = vld [vmem:[#allocation6 + $0x10] sm:$0xff]  }
  0x48   : > { %9890 = vst [vmem:[#allocation13_spill] sm:$0xff] %v9889_v6  ;;  %266 = vst [vmem:[#allocation2 + $0xc] sm:$0x1] %v265_v13  ;;  %v365_v20 = vld [vmem:[%s7202_s27] sm:$0xf]  ;;  %6491 = vmatprep.subr.bf16.mxu1 %v7243_v15  ;;  %v9893_v38 = vmov 0  ;;  %6525 = vmatprep.subr.bf16.mxu0 %v7261_v37 }
  0x49   : > { %v7224_v3 = vld [vmem:[#allocation2] sm:$0xf]  ;;  %v7226_v4 = vld [vmem:[#allocation2 + $0x4] sm:$0xf]  ;;  %v366_v23 = vld [vmem:[%s7202_s27 + $0x4] sm:$0xf] }
  0x4a   : > { %v7228_v5 = vld [vmem:[#allocation2 + $0x8] sm:$0x1]  ;;  %v961_v7 = vshrl.u32 %v7224_v3, 16  ;;  %v964_v8 = vshll.u32 %v7224_v3, 16  ;;  %v970_v9 = vshll.u32 %v7226_v4, 16  ;;  %v974_v10 = vshrl.u32 %v7226_v4, 16  ;;  %vm7265_vm11 = vmand %vm251_vm0, %vm312_vm3 }
  0x4b   : > { %v980_v12 = vshll.u32 %v7228_v5, 16  ;;  %v400_v24 = vshrl.u32 %v365_v20, 16  ;;  %v403_v25 = vshll.u32 %v365_v20, 16  ;;  %316 = vst [vmem:[#allocation2 + $0x14] sm:$0x1] %v315_v22  ;;  %v408_v28 = vshrl.u32 %v366_v23, 16  ;;  %vm7272_vm12 = vmor %vm262_vm2, %vm397_vm7 }
  0x4c   : > { %v963_v16 = vrot.slane %v961_v7, 4  ;;  %v966_v17 = vrot.slane %v964_v8, 5  ;;  %v972_v18 = vrot.slane %v970_v9, 5  ;;  %v976_v19 = vrot.slane %v974_v10, 4  ;;  %v285_v30 = vld [vmem:[#allocation2 + $0x60] sm:$0x1] }
  0x4d   : > { %v982_v21 = vrot.slane %v980_v12, 5  ;;  %v411_v29 = vshll.u32 %v366_v23, 16  ;;  %v335_v31 = vld [vmem:[#allocation2 + $0x68] sm:$0x1]  ;;  %v402_v33 = vrot.slane %v400_v24, 7  ;;  %v286_v34 = vsel %vm7220_vm4, 0, %v285_v30 }
  0x4e   : > { %v967_v26 = vor.u32 %v966_v17, %v963_v16  ;;  %v977_v27 = vor.u32 %v976_v19, %v972_v18  ;;  %v336_v35 = vsel %vm7232_vm8, 0, %v335_v31  ;;  %v379_v36 = vld [vmem:[%s7202_s27 + $0x38] sm:$0xf]  ;;  %v9894_v38 = vsel %vm7265_vm11, 4294967295, %v9893_v38  ;;  %287 = vst [vmem:[#allocation2 + $0x60] sm:$0x1] %v286_v34 }
  0x4f   : > { %9895 = vst [vmem:[#allocation14_spill] sm:$0xff] %v9894_v38  ;;  %v410_v41 = vrot.slane %v408_v28, 7  ;;  %337 = vst [vmem:[#allocation2 + $0x68] sm:$0x1] %v336_v35  ;;  %v380_v42 = vld [vmem:[%s7202_s27 + $0x3c] sm:$0xf]  ;;  %v405_v45 = vor.u32 %v403_v25, %v402_v33 }
  0x50   : > { %v968_v39 = vrot.slane %v967_v26, 4  ;;  %v978_v40 = vrot.slane %v977_v27, 4  ;;  %v519_v43 = vshrl.u32 %v379_v36, 16  ;;  %v9896_v44 = vmov 0  ;;  %v288_v53 = vld [vmem:[#allocation2 + $0x6c] sm:$0x1] }
  0x51   : > { %v9897_v44 = vsel %vm7272_vm12, 4294967295, %v9896_v44  ;;  %v406_v46 = vrot.slane %v402_v33, 4  ;;  %v522_v47 = vshll.u32 %v379_v36, 16  ;;  %v527_v48 = vshrl.u32 %v380_v42, 16  ;;  %v721_v55 = vld [vmem:[#allocation2 + $0xc] sm:$0xf] }
  0x52   : > { %9898 = vst [vmem:[#allocation15_spill] sm:$0xff] %v9897_v44  ;;  %v973_v49 = vsel %vm7252_vm10, %v968_v39, %v972_v18  ;;  %v983_v50 = vsel %vm7252_vm10, %v978_v40, %v982_v21  ;;  %v413_v51 = vor.u32 %v411_v29, %v410_v41  ;;  %v415_v52 = vrot.slane %v410_v41, 4  ;;  %v338_v63 = vld [vmem:[#allocation2 + $0x74] sm:$0x1]  ;;  %v381_v0 = vld [vmem:[%s7202_s27 + $0x40] sm:$0xf] }
  0x53   : > { %v5887_v54 = vcombine.low %v973_v49, %v983_v50  ;;  %v521_v56 = vrot.slane %v519_v43, 7  ;;  %v529_v57 = vrot.slane %v527_v48, 7  ;;  %v530_v58 = vshll.u32 %v380_v42, 16  ;;  %v725_v2 = vld [vmem:[#allocation2 + $0x14] sm:$0x1]  ;;  %s9588_s24 = scalar_lea.vmem [#allocation8], %s5880_s4 }
  0x54   : > { %v1962_v59 = vrot.slane %v7228_v5, 5  ;;  %v414_v60 = vsel %vm7272_vm12, %v406_v46, %v413_v51  ;;  %v722_v61 = vsel %vm7265_vm11, %v405_v45, %v721_v55  ;;  %v289_v62 = vsel %vm7220_vm4, 0, %v288_v53  ;;  %v382_v11 = vld [vmem:[%s7202_s27 + $0x44] sm:$0xf]  ;;  %v267_v26 = vld [vmem:[#allocation2 + $0x18] sm:$0x1] }
  0x55   : > { %6459 = vmatprep.mubr.msk.bf16.mxu0 %vm1401_vm9, %v5887_v54  ;;  %723 = vst [vmem:[#allocation2 + $0xc] sm:$0xf] %v722_v61  ;;  %724 = vst.msk [vmem:[#allocation2 + $0x10] sm:$0xf] %vm251_vm0, %v414_v60  ;;  %v524_v7 = vor.u32 %v522_v47, %v521_v56  ;;  %v525_v8 = vrot.slane %v521_v56, 4  ;;  %v532_v9 = vor.u32 %v530_v58, %v529_v57  ;;  %v534_v10 = vrot.slane %v529_v57, 4 }
  0x56   : > { %290 = vst [vmem:[#allocation2 + $0x6c] sm:$0x1] %v289_v62  ;;  %v726_v12 = vsel %vm7220_vm4, %v415_v52, %v725_v2  ;;  %v339_v13 = vsel %vm7232_vm8, 0, %v338_v63  ;;  %v536_v14 = vshrl.u32 %v381_v0, 16  ;;  %v539_v16 = vshll.u32 %v381_v0, 16  ;;  %s6303_s30 = sshll.u32 %s7037_s15, 11 }
  0x57   : > { %727 = vst [vmem:[#allocation2 + $0x14] sm:$0x1] %v726_v12  ;;  %v533_v17 = vsel %vm7272_vm12, %v525_v8, %v532_v9  ;;  %v770_v18 = vld [vmem:[#allocation2 + $0x60] sm:$0xf]  ;;  %v774_v19 = vld [vmem:[#allocation2 + $0x68] sm:$0x1]  ;;  %s9800_s21 = scalar_lea.hbm %s9857_s3, %s6303_s30 }
  0x58   : > { %340 = vst [vmem:[#allocation2 + $0x74] sm:$0x1] %v339_v13  ;;  %v544_v20 = vshrl.u32 %v382_v11, 16  ;;  %v547_v21 = vshll.u32 %v382_v11, 16  ;;  %v771_v23 = vsel %vm7265_vm11, %v524_v7, %v770_v18  ;;  %773 = vst.msk [vmem:[#allocation2 + $0x64] sm:$0xf] %vm251_vm0, %v533_v17  ;;  %v775_v24 = vsel %vm7220_vm4, %v534_v10, %v774_v19 }
  0x59   : > { %v538_v25 = vrot.slane %v536_v14, 7  ;;  %v1959_v27 = vrot.slane %v7226_v4, 5  ;;  %772 = vst [vmem:[#allocation2 + $0x60] sm:$0xf] %v771_v23  ;;  %776 = vst [vmem:[#allocation2 + $0x68] sm:$0x1] %v775_v24 }
  0x5a   : > { %v546_v28 = vrot.slane %v544_v20, 7  ;;  %v268_v29 = vsel %vm7220_vm4, 0, %v267_v26  ;;  %v317_v30 = vld [vmem:[#allocation2 + $0x20] sm:$0x1]  ;;  %v7312_v36 = vld [vmem:[%s7202_s27 + $0xc] sm:$0xf] }
  0x5b   : > { %v367_v31 = vld [vmem:[%s7202_s27 + $0x8] sm:$0xf]  ;;  %v541_v33 = vor.u32 %v539_v16, %v538_v25  ;;  %v542_v34 = vrot.slane %v538_v25, 4  ;;  %269 = vst [vmem:[#allocation2 + $0x18] sm:$0x1] %v268_v29  ;;  %v318_v35 = vsel %vm7232_vm8, 0, %v317_v30 }
  0x5c   : > { %v417_v39 = vshrl.u32 %v367_v31, 16  ;;  %v549_v40 = vor.u32 %v547_v21, %v546_v28  ;;  %v551_v41 = vrot.slane %v546_v28, 4  ;;  %319 = vst [vmem:[#allocation2 + $0x20] sm:$0x1] %v318_v35  ;;  %v420_v42 = vshll.u32 %v367_v31, 16  ;;  %s5750_s29 = sshll.u32 %s9588_s24, 4  ;;  %s9802_s29 = int_to_ptr.vmem [resolvable:$true] %s5750_s29 }
  0x5d   : > { %v425_v43 = vshrl.u32 %v7312_v36, 16  ;;  %v7315_v45 = vld [vmem:[#allocation2 + $0xc] sm:$0xf]  ;;  %v7317_v46 = vld [vmem:[#allocation2 + $0x10] sm:$0xf]  ;;  %vm1954_vm13 = vcmask 1042432  }
  0x5e   : > { %v777_v47 = vld [vmem:[#allocation2 + $0x6c] sm:$0xf]  ;;  %v985_v48 = vshrl.u32 %v7315_v45, 16  ;;  %v988_v49 = vshll.u32 %v7315_v45, 16  ;;  %v994_v50 = vshll.u32 %v7317_v46, 16  ;;  %v998_v51 = vshrl.u32 %v7317_v46, 16 }
  0x5f   : > { %v7323_v52 = vld [vmem:[#allocation2 + $0x14] sm:$0x1]  ;;  %v1966_v53 = vrot.slane %v7317_v46, 5  ;;  %v550_v54 = vsel %vm7272_vm12, %v542_v34, %v549_v40  ;;  %v778_v55 = vsel %vm7265_vm11, %v541_v33, %v777_v47  ;;  %v7330_v57 = vrot.slane %v417_v39, 7  ;;  %v924_v63 = vld [vmem:[#allocation2 + $0x64] sm:$0xf] }
  0x60   : > { %v781_v56 = vld [vmem:[#allocation2 + $0x74] sm:$0x1]  ;;  %v987_v58 = vrot.slane %v985_v48, 4  ;;  %v990_v60 = vrot.slane %v988_v49, 5  ;;  %v996_v61 = vrot.slane %v994_v50, 5  ;;  %v1000_v62 = vrot.slane %v998_v51, 4 }
  0x61   : > { %779 = vst [vmem:[#allocation2 + $0x6c] sm:$0xf] %v778_v55  ;;  %780 = vst.msk [vmem:[#allocation2 + $0x70] sm:$0xf] %vm251_vm0, %v550_v54  ;;  %v1004_v0 = vshll.u32 %v7323_v52, 16  ;;  %v1969_v2 = vrot.slane %v7323_v52, 5  ;;  %v782_v9 = vsel %vm7220_vm4, %v551_v41, %v781_v56  ;;  %v422_v28 = vor.u32 %v420_v42, %v7330_v57 }
  0x62   : > { %v923_v7 = vld [vmem:[#allocation2 + $0x60] sm:$0xf]  ;;  %v949_v8 = vld [vmem:[#allocation2 + $0x68] sm:$0x1]  ;;  %v991_v10 = vor.u32 %v990_v60, %v987_v58  ;;  %v1001_v11 = vor.u32 %v1000_v62, %v996_v61  ;;  %783 = vst [vmem:[#allocation2 + $0x74] sm:$0x1] %v782_v9 }
  0x63   : > { %v1153_v12 = vshrl.u32 %v923_v7, 16  ;;  %v1156_v13 = vshll.u32 %v923_v7, 16  ;;  %v1006_v14 = vrot.slane %v1004_v0, 5  ;;  %v1162_v16 = vshll.u32 %v924_v63, 16  ;;  %v6847_v34 = vld [vmem:[#allocation6 + $0x20] sm:$0xff]   ;;  %s5733_s15 = scalar_lea.sflag [#allocation5], %s7196_s11 }
  0x64   : > { %v1166_v17 = vshrl.u32 %v924_v63, 16  ;;  %v1172_v18 = vshll.u32 %v949_v8, 16  ;;  %v992_v19 = vrot.slane %v991_v10, 4  ;;  %v1002_v20 = vrot.slane %v1001_v11, 4  ;;  %v728_v49 = vld [vmem:[#allocation2 + $0x18] sm:$0xf] }
  0x65   : > { %v1155_v21 = vrot.slane %v1153_v12, 4  ;;  %v1158_v23 = vrot.slane %v1156_v13, 5  ;;  %v1164_v24 = vrot.slane %v1162_v16, 5  ;;  %v423_v33 = vrot.slane %v7330_v57, 4  ;;  %v732_v55 = vld [vmem:[#allocation2 + $0x20] sm:$0x1] }
  0x66   : > { %v1168_v25 = vrot.slane %v1166_v17, 4  ;;  %v1174_v26 = vrot.slane %v1172_v18, 5  ;;  %v997_v29 = vsel %vm7252_vm10, %v992_v19, %v996_v61  ;;  %v1007_v30 = vsel %vm7252_vm10, %v1002_v20, %v1006_v14  ;;  %v270_v56 = vld [vmem:[#allocation2 + $0x24] sm:$0x1]  ;;  %v320_v7 = vld [vmem:[#allocation2 + $0x2c] sm:$0x1] }
  0x67   : > { %v1159_v31 = vor.u32 %v1158_v23, %v1155_v21  ;;  %v5888_v35 = vcombine.low %v997_v29, %v1007_v30  ;;  %v427_v47 = vrot.slane %v425_v43, 7  ;;  %v428_v48 = vshll.u32 %v7312_v36, 16  ;;  %v369_v12 = vld [vmem:[%s7202_s27 + $0x10] sm:$0xf]  ;;  %v370_v13 = vld [vmem:[%s7202_s27 + $0x14] sm:$0xf] }
  0x68   : > { %v1169_v39 = vor.u32 %v1168_v25, %v1164_v24  ;;  %v925_v40 = vld [vmem:[#allocation2 + $0x6c] sm:$0xf]  ;;  %v926_v41 = vld [vmem:[#allocation2 + $0x70] sm:$0xf]  ;;  %v729_v17 = vsel %vm7265_vm11, %v422_v28, %v728_v49  ;;  %v291_v18 = vld [vmem:[#allocation2 + $0x78] sm:$0x1] }
  0x69   : > { %v1160_v50 = vrot.slane %v1159_v31, 4  ;;  %v1177_v42 = vshrl.u32 %v925_v40, 16  ;;  %v1180_v51 = vshll.u32 %v925_v40, 16  ;;  %v1186_v54 = vshll.u32 %v926_v41, 16  ;;  %6460 = vmatmul.mubr.msk.bf16.vlgmr.msra.gmra.mxu0 %vm1401_vm9, %v5888_v35  ;;  %v950_v57 = vld [vmem:[#allocation2 + $0x74] sm:$0x1] }
  0x6a   : > { %v1170_v58 = vrot.slane %v1169_v39, 4  ;;  %v1190_v60 = vshrl.u32 %v926_v41, 16  ;;  %v430_v61 = vor.u32 %v428_v48, %v427_v47  ;;  %v432_v62 = vrot.slane %v427_v47, 4  ;;  %6526 = vmatpush3.bf16.msra.mxu0 %v7261_v37  ;;  %v341_v19 = vld [vmem:[#allocation2 + $0x80] sm:$0x1]  ;;  %s6961_s10 = scalar_lea.vmem %s9802_s29, 2048 }
  0x6b   : > { %v1165_v43 = vsel %vm7252_vm10, %v1160_v50, %v1164_v24  ;;  %v1179_v36 = vrot.slane %v1177_v42, 4  ;;  %v1182_v63 = vrot.slane %v1180_v51, 5  ;;  %v1188_v0 = vrot.slane %v1186_v54, 5  ;;  %6593 = vmatprep.subr.bf16.mxu0 %v6847_v34  ;;  %730 = vst [vmem:[#allocation2 + $0x18] sm:$0xf] %v729_v17  ;;  %p6962_p1 = scmp.ne.s32.totalorder %s9802_s29, %s6961_s10  ;;  %s7052_s7 = smov [#allocation8]  }
  0x6c   : > { %v1175_v8 = vsel %vm7252_vm10, %v1170_v58, %v1174_v26  ;;  %v1192_v9 = vrot.slane %v1190_v60, 4  ;;  %v1196_v10 = vshll.u32 %v950_v57, 16  ;;  %v431_v11 = vsel %vm7272_vm12, %v423_v33, %v430_v61  ;;  %v383_v25 = vld [vmem:[%s7202_s27 + $0x48] sm:$0xf]  ;;  %v384_v31 = vld [vmem:[%s7202_s27 + $0x4c] sm:$0xf] }
  0x6d   : > { %v5895_v14 = vcombine.low %v1165_v43, %v1175_v8  ;;  %v1183_v16 = vor.u32 %v1182_v63, %v1179_v36  ;;  %731 = vst.msk [vmem:[#allocation2 + $0x1c] sm:$0xf] %vm251_vm0, %v431_v11  ;;  %v733_v37 = vsel %vm7220_vm4, %v432_v62, %v732_v55  ;;  %v271_v23 = vsel %vm7220_vm4, 0, %v270_v56  ;;  %v294_v49 = vld [vmem:[#allocation2 + $0x84] sm:$0x1]  ;;  %v6846_v60 = vld [vmem:[#allocation6 + $0x18] sm:$0xff]   ;;  %p6963_p8 = pnand %p6962_p1, %p7165_p13 }
  0x6e   : > { %v1193_v20 = vor.u32 %v1192_v9, %v1188_v0  ;;  %v1198_v21 = vrot.slane %v1196_v10, 5  ;;  %734 = vst [vmem:[#allocation2 + $0x20] sm:$0x1] %v733_v37  ;;  %v321_v24 = vsel %vm7232_vm8, 0, %v320_v7  ;;  %272 = vst [vmem:[#allocation2 + $0x24] sm:$0x1] %v271_v23 }
  0x6f   : > { %6475 = vmatprep.mubr.msk.bf16.mxu1 %vm1401_vm9, %v5895_v14  ;;  %v1184_v26 = vrot.slane %v1183_v16, 4  ;;  %322 = vst [vmem:[#allocation2 + $0x2c] sm:$0x1] %v321_v24  ;;  %v434_v28 = vshrl.u32 %v369_v12, 16  ;;  %v437_v29 = vshll.u32 %v369_v12, 16  ;;  %v442_v30 = vshrl.u32 %v370_v13, 16  ;;  %p6964_p12 = pneg %p6963_p8 }
  0x70   : > { %v1194_v33 = vrot.slane %v1193_v20, 4  ;;  %v445_v34 = vshll.u32 %v370_v13, 16  ;;  %v292_v35 = vsel %vm7220_vm4, 0, %v291_v18  ;;  %v342_v39 = vsel %vm7232_vm8, 0, %v341_v19  ;;  %v344_v11 = vld [vmem:[#allocation2 + $0x8c] sm:$0x1] }
  0x71   : > { %v1189_v40 = vsel %vm7252_vm10, %v1184_v26, %v1188_v0  ;;  %v436_v41 = vrot.slane %v434_v28, 7  ;;  %v444_v47 = vrot.slane %v442_v30, 7  ;;  %293 = vst [vmem:[#allocation2 + $0x78] sm:$0x1] %v292_v35  ;;  %343 = vst [vmem:[#allocation2 + $0x80] sm:$0x1] %v342_v39 }
  0x72   : > { %v553_v48 = vshrl.u32 %v383_v25, 16  ;;  %v1199_v50 = vsel %vm7252_vm10, %v1194_v33, %v1198_v21  ;;  %v556_v42 = vshll.u32 %v383_v25, 16  ;;  %v561_v51 = vshrl.u32 %v384_v31, 16  ;;  %v911_v0 = vld [vmem:[#allocation2 + $0x18] sm:$0xf]  ;;  %s6965_s25 = sshll.u32 %s7052_s7, 4  ;;  %s6966_s25 = int_to_ptr.vmem [resolvable:$false] %s6965_s25 }
  0x73   : > { %v564_v54 = vshll.u32 %v384_v31, 16  ;;  %v5896_v55 = vcombine.low %v1189_v40, %v1199_v50  ;;  %v439_v56 = vor.u32 %v437_v29, %v436_v41  ;;  %v440_v58 = vrot.slane %v436_v41, 4  ;;  %v385_v12 = vld [vmem:[%s7202_s27 + $0x50] sm:$0xf]  ;;  %v386_v19 = vld [vmem:[%s7202_s27 + $0x54] sm:$0xf]  ;;  %p6968_p0 = scmp.lt.s32.totalorder %s9802_s29, %s6966_s25 }
  0x74   : > { %v447_v57 = vor.u32 %v445_v34, %v444_v47  ;;  %v912_v61 = vld [vmem:[#allocation2 + $0x1c] sm:$0xf]  ;;  %v449_v62 = vrot.slane %v444_v47, 4  ;;  %v555_v43 = vrot.slane %v553_v48, 7  ;;  %v563_v36 = vrot.slane %v561_v51, 7  ;;  %s6967_s8 = scalar_lea.vmem %s6966_s25, 4096 }
  0x75   : > { %v295_v63 = vsel %vm7220_vm4, 0, %v294_v49  ;;  %6476 = vmatmul.mubr.msk.bf16.vlgmr.msra.gmra.mxu1 %vm1401_vm9, %v5896_v55  ;;  %v943_v7 = vld [vmem:[#allocation2 + $0x20] sm:$0x1]  ;;  %v1018_v8 = vshll.u32 %v912_v61, 16  ;;  %v1022_v9 = vshrl.u32 %v912_v61, 16  ;;  %v1009_v14 = vshrl.u32 %v911_v0, 16  ;;  %p6969_p2 = scmp.lt.s32.totalorder %s6967_s8, %s6961_s10 }
  0x76   : > { %v448_v10 = vsel %vm7272_vm12, %v440_v58, %v447_v57  ;;  %296 = vst [vmem:[#allocation2 + $0x84] sm:$0x1] %v295_v63  ;;  %6492 = vmatpush3.bf16.msra.mxu1 %v7243_v15  ;;  %v1012_v16 = vshll.u32 %v911_v0, 16  ;;  %v1028_v17 = vshll.u32 %v943_v7, 16  ;;  %v735_v37 = vld [vmem:[#allocation2 + $0x24] sm:$0xf]  ;;  %v558_v18 = vor.u32 %v556_v42, %v555_v43 }
  0x77   : > { %738 = vst.msk [vmem:[#allocation2 + $0x28] sm:$0xf] %vm251_vm0, %v448_v10  ;;  %v1020_v20 = vrot.slane %v1018_v8, 5  ;;  %v1024_v21 = vrot.slane %v1022_v9, 4  ;;  %v736_v23 = vsel %vm7265_vm11, %v439_v56, %v735_v37  ;;  %v739_v24 = vld [vmem:[#allocation2 + $0x2c] sm:$0x1]  ;;  %6559 = vmatprep.subr.bf16.mxu1 %v6846_v60  ;;  %v566_v34 = vor.u32 %v564_v54, %v563_v36  ;;  %p6970_p3 = por %p6969_p2, %p6968_p0 }
  0x78   : > { %v559_v25 = vrot.slane %v555_v43, 4  ;;  %v273_v26 = vld [vmem:[#allocation2 + $0x30] sm:$0x1]  ;;  %v1011_v28 = vrot.slane %v1009_v14, 4  ;;  %v1014_v29 = vrot.slane %v1012_v16, 5  ;;  %v1030_v15 = vrot.slane %v1028_v17, 5 }
  0x79   : > { %737 = vst [vmem:[#allocation2 + $0x24] sm:$0xf] %v736_v23  ;;  %v740_v30 = vsel %vm7220_vm4, %v449_v62, %v739_v24  ;;  %v784_v31 = vld [vmem:[#allocation2 + $0x78] sm:$0xf]  ;;  %v1025_v33 = vor.u32 %v1024_v21, %v1020_v20  ;;  %v568_v35 = vrot.slane %v563_v36, 4  ;;  %v345_v48 = vsel %vm7232_vm8, 0, %v344_v11  ;;  %p6971_p5 = pnand %p6970_p3, %p6964_p12 }
  0x7a   : > { %741 = vst [vmem:[#allocation2 + $0x2c] sm:$0x1] %v740_v30  ;;  %v785_v39 = vsel %vm7265_vm11, %v558_v18, %v784_v31  ;;  %v788_v40 = vld [vmem:[#allocation2 + $0x80] sm:$0x1]  ;;  %v323_v41 = vld [vmem:[#allocation2 + $0x38] sm:$0x1]  ;;  %v1015_v47 = vor.u32 %v1014_v29, %v1011_v28  ;;  %v567_v55 = vsel %vm7272_vm12, %v559_v25, %v566_v34 }
  0x7b   : > { %786 = vst [vmem:[#allocation2 + $0x78] sm:$0xf] %v785_v39  ;;  %v570_v49 = vshrl.u32 %v385_v12, 16  ;;  %v573_v50 = vshll.u32 %v385_v12, 16  ;;  %v7394_v42 = vld [vmem:[%s7202_s27 + $0x18] sm:$0xf]  ;;  %v789_v54 = vsel %vm7220_vm4, %v568_v35, %v788_v40 }
  0x7c   : > { %v1026_v51 = vrot.slane %v1025_v33, 4  ;;  %346 = vst [vmem:[#allocation2 + $0x8c] sm:$0x1] %v345_v48  ;;  %v578_v56 = vshrl.u32 %v386_v19, 16  ;;  %v1016_v58 = vrot.slane %v1015_v47, 4  ;;  %v581_v60 = vshll.u32 %v386_v19, 16 }
  0x7d   : > { %787 = vst.msk [vmem:[#allocation2 + $0x7c] sm:$0xf] %vm251_vm0, %v567_v55  ;;  %790 = vst [vmem:[#allocation2 + $0x80] sm:$0x1] %v789_v54  ;;  %v572_v57 = vrot.slane %v570_v49, 7  ;;  %v274_v61 = vsel %vm7220_vm4, 0, %v273_v26 }
  0x7e   : > { %v1031_v62 = vsel %vm7252_vm10, %v1026_v51, %v1030_v15  ;;  %v7405_v43 = vld [vmem:[#allocation2 + $0x28] sm:$0xf]  ;;  %v580_v36 = vrot.slane %v578_v56, 7  ;;  %275 = vst [vmem:[#allocation2 + $0x30] sm:$0x1] %v274_v61  ;;  %v324_v63 = vsel %vm7232_vm8, 0, %v323_v41  ;;  %v1021_v7 = vsel %vm7252_vm10, %v1016_v58, %v1020_v20 }
  0x7f   : > { %v451_v0 = vshrl.u32 %v7394_v42, 16  ;;  %v1042_v8 = vshll.u32 %v7405_v43, 16  ;;  %v1046_v9 = vshrl.u32 %v7405_v43, 16  ;;  %v575_v10 = vor.u32 %v573_v50, %v572_v57  ;;  %v791_v11 = vld [vmem:[#allocation2 + $0x84] sm:$0xf] }
  0x80   : > { %325 = vst [vmem:[#allocation2 + $0x38] sm:$0x1] %v324_v63  ;;  %v5889_v12 = vcombine.low %v1021_v7, %v1031_v62  ;;  %v913_v14 = vld [vmem:[#allocation2 + $0x24] sm:$0xf]  ;;  %v576_v16 = vrot.slane %v572_v57, 4  ;;  %v583_v17 = vor.u32 %v581_v60, %v580_v36  ;;  %v585_v37 = vrot.slane %v580_v36, 4 }
  0x81   : > { %v7414_v18 = vld [vmem:[#allocation2 + $0x2c] sm:$0x1]  ;;  %v1033_v19 = vshrl.u32 %v913_v14, 16  ;;  %v1036_v21 = vshll.u32 %v913_v14, 16  ;;  %v1044_v23 = vrot.slane %v1042_v8, 5  ;;  %v1048_v24 = vrot.slane %v1046_v9, 4 }
  0x82   : > { %6463 = vmatprep.mubr.msk.bf16.mxu0 %vm1401_vm9, %v5889_v12  ;;  %v1052_v20 = vshll.u32 %v7414_v18, 16  ;;  %v927_v25 = vld [vmem:[#allocation2 + $0x78] sm:$0xf]  ;;  %v584_v26 = vsel %vm7272_vm12, %v576_v16, %v583_v17  ;;  %v792_v28 = vsel %vm7265_vm11, %v575_v10, %v791_v11  ;;  %v7422_v29 = vrot.slane %v451_v0, 7  ;;  %v372_v55 = vld [vmem:[%s7202_s27 + $0x1c] sm:$0xf] }
  0x83   : > { %v1035_v15 = vrot.slane %v1033_v19, 4  ;;  %v1038_v30 = vrot.slane %v1036_v21, 5  ;;  %v1049_v31 = vor.u32 %v1048_v24, %v1044_v23  ;;  %v1201_v33 = vshrl.u32 %v927_v25, 16  ;;  %793 = vst [vmem:[#allocation2 + $0x84] sm:$0xf] %v792_v28 }
  0x84   : > { %794 = vst.msk [vmem:[#allocation2 + $0x88] sm:$0xf] %vm251_vm0, %v584_v26  ;;  %v795_v34 = vld [vmem:[#allocation2 + $0x8c] sm:$0x1]  ;;  %v1054_v35 = vrot.slane %v1052_v20, 5  ;;  %v1204_v41 = vshll.u32 %v927_v25, 16 }
  0x85   : > { %v928_v39 = vld [vmem:[#allocation2 + $0x7c] sm:$0xf]  ;;  %v951_v40 = vld [vmem:[#allocation2 + $0x80] sm:$0x1]  ;;  %v796_v47 = vsel %vm7220_vm4, %v585_v37, %v795_v34  ;;  %v1039_v48 = vor.u32 %v1038_v30, %v1035_v15  ;;  %v1050_v49 = vrot.slane %v1049_v31, 4  ;;  %v1203_v50 = vrot.slane %v1201_v33, 4 }
  0x86   : > { %v1210_v51 = vshll.u32 %v928_v39, 16  ;;  %797 = vst [vmem:[#allocation2 + $0x8c] sm:$0x1] %v796_v47  ;;  %v1206_v54 = vrot.slane %v1204_v41, 5  ;;  %v1214_v56 = vshrl.u32 %v928_v39, 16  ;;  %v1220_v58 = vshll.u32 %v951_v40, 16 }
  0x87   : > { %v454_v57 = vshll.u32 %v7394_v42, 16  ;;  %v276_v60 = vld [vmem:[#allocation2 + $0x3c] sm:$0x1]  ;;  %v1040_v61 = vrot.slane %v1039_v48, 4  ;;  %v1055_v62 = vsel %vm7252_vm10, %v1050_v49, %v1054_v35  ;;  %v457_v63 = vrot.slane %v7422_v29, 4 }
  0x88   : > { %v1212_v36 = vrot.slane %v1210_v51, 5  ;;  %v742_v0 = vld [vmem:[#allocation2 + $0x30] sm:$0xf]  ;;  %v1207_v7 = vor.u32 %v1206_v54, %v1203_v50  ;;  %v1216_v8 = vrot.slane %v1214_v56, 4  ;;  %v1222_v9 = vrot.slane %v1220_v58, 5 }
  0x89   : > { %v456_v10 = vor.u32 %v454_v57, %v7422_v29  ;;  %v1045_v11 = vsel %vm7252_vm10, %v1040_v61, %v1044_v23  ;;  %v459_v12 = vshrl.u32 %v372_v55, 16  ;;  %v462_v42 = vshll.u32 %v372_v55, 16  ;;  %v326_v16 = vld [vmem:[#allocation2 + $0x44] sm:$0x1]  ;;  %v373_v29 = vld [vmem:[%s7202_s27 + $0x20] sm:$0xf] }
  0x8a   : > { %v277_v14 = vsel %vm7220_vm4, 0, %v276_v60  ;;  %v5890_v17 = vcombine.low %v1045_v11, %v1055_v62  ;;  %v1208_v37 = vrot.slane %v1207_v7, 4  ;;  %v1217_v19 = vor.u32 %v1216_v8, %v1212_v36  ;;  %v929_v21 = vld [vmem:[#allocation2 + $0x84] sm:$0xf]  ;;  %v746_v47 = vld [vmem:[#allocation2 + $0x38] sm:$0x1] }
  0x8b   : > { %v930_v24 = vld [vmem:[#allocation2 + $0x88] sm:$0xf]  ;;  %v743_v20 = vsel %vm7265_vm11, %v456_v10, %v742_v0  ;;  %278 = vst [vmem:[#allocation2 + $0x3c] sm:$0x1] %v277_v14  ;;  %v1225_v25 = vshrl.u32 %v929_v21, 16  ;;  %v1228_v26 = vshll.u32 %v929_v21, 16 }
  0x8c   : > { %v1234_v28 = vshll.u32 %v930_v24, 16  ;;  %v1238_v23 = vshrl.u32 %v930_v24, 16  ;;  %744 = vst [vmem:[#allocation2 + $0x30] sm:$0xf] %v743_v20  ;;  %6464 = vmatmul.mubr.msk.bf16.gmra.mxu0 %vm1401_vm9, %v5890_v17  ;;  %v1213_v15 = vsel %vm7252_vm10, %v1208_v37, %v1212_v36  ;;  %v1218_v30 = vrot.slane %v1217_v19, 4 }
  0x8d   : > { %v952_v31 = vld [vmem:[#allocation2 + $0x8c] sm:$0x1]  ;;  %v461_v33 = vrot.slane %v459_v12, 7  ;;  %v327_v34 = vsel %vm7232_vm8, 0, %v326_v16  ;;  %v1227_v35 = vrot.slane %v1225_v25, 4  ;;  %v1230_v39 = vrot.slane %v1228_v26, 5 }
  0x8e   : > { %v1236_v40 = vrot.slane %v1234_v28, 5  ;;  %v1240_v41 = vrot.slane %v1238_v23, 4  ;;  %328 = vst [vmem:[#allocation2 + $0x44] sm:$0x1] %v327_v34  ;;  %v1223_v48 = vsel %vm7252_vm10, %v1218_v30, %v1222_v9  ;;  %v1244_v49 = vshll.u32 %v952_v31, 16 }
  0x8f   : > { %v464_v50 = vor.u32 %v462_v42, %v461_v33  ;;  %v466_v51 = vrot.slane %v461_v33, 4  ;;  %v374_v55 = vld [vmem:[%s7202_s27 + $0x24] sm:$0xf]  ;;  %v297_v54 = vld [vmem:[#allocation2 + $0x90] sm:$0x1]  ;;  %v5897_v56 = vcombine.low %v1213_v15, %v1223_v48  ;;  %v1231_v58 = vor.u32 %v1230_v39, %v1227_v35 }
  0x90   : > { %v1241_v57 = vor.u32 %v1240_v41, %v1236_v40  ;;  %v468_v60 = vshrl.u32 %v373_v29, 16  ;;  %v347_v61 = vld [vmem:[#allocation2 + $0x98] sm:$0x1]  ;;  %v387_v62 = vld [vmem:[%s7202_s27 + $0x58] sm:$0xf]  ;;  %v1246_v36 = vrot.slane %v1244_v49, 5 }
  0x91   : > { %v465_v0 = vsel %vm7272_vm12, %v457_v63, %v464_v50  ;;  %v747_v7 = vsel %vm7220_vm4, %v466_v51, %v746_v47  ;;  %v471_v8 = vshll.u32 %v373_v29, 16  ;;  %6479 = vmatprep.mubr.msk.bf16.mxu1 %vm1401_vm9, %v5897_v56  ;;  %v1232_v9 = vrot.slane %v1231_v58, 4  ;;  %v388_v25 = vld [vmem:[%s7202_s27 + $0x5c] sm:$0xf]  ;;  %v300_v15 = vld [vmem:[#allocation2 + $0x9c] sm:$0x1] }
  0x92   : > { %v1242_v10 = vrot.slane %v1241_v57, 4  ;;  %745 = vst.msk [vmem:[#allocation2 + $0x34] sm:$0xf] %vm251_vm0, %v465_v0  ;;  %748 = vst [vmem:[#allocation2 + $0x38] sm:$0x1] %v747_v7  ;;  %v470_v11 = vrot.slane %v468_v60, 7 }
  0x93   : > { %v476_v12 = vshrl.u32 %v374_v55, 16  ;;  %v7455_v42 = vld [vmem:[#allocation2 + $0x30] sm:$0xf]  ;;  %v479_v14 = vshll.u32 %v374_v55, 16  ;;  %v298_v63 = vsel %vm7220_vm4, 0, %v297_v54  ;;  %v348_v16 = vsel %vm7232_vm8, 0, %v347_v61 }
  0x94   : > { %v587_v17 = vshrl.u32 %v387_v62, 16  ;;  %v1237_v37 = vsel %vm7252_vm10, %v1232_v9, %v1236_v40  ;;  %v1247_v19 = vsel %vm7252_vm10, %v1242_v10, %v1246_v36  ;;  %v1057_v21 = vshrl.u32 %v7455_v42, 16  ;;  %v749_v20 = vld [vmem:[#allocation2 + $0x3c] sm:$0xf]  ;;  %299 = vst [vmem:[#allocation2 + $0x90] sm:$0x1] %v298_v63 }
  0x95   : > { %v1060_v24 = vshll.u32 %v7455_v42, 16  ;;  %349 = vst [vmem:[#allocation2 + $0x98] sm:$0x1] %v348_v16  ;;  %v5898_v26 = vcombine.low %v1237_v37, %v1247_v19  ;;  %v473_v28 = vor.u32 %v471_v8, %v470_v11  ;;  %v474_v23 = vrot.slane %v470_v11, 4  ;;  %v753_v33 = vld [vmem:[#allocation2 + $0x44] sm:$0x1] }
  0x96   : > { %v478_v29 = vrot.slane %v476_v12, 7  ;;  %v1059_v30 = vrot.slane %v1057_v21, 4  ;;  %v589_v34 = vrot.slane %v587_v17, 7  ;;  %v590_v35 = vshll.u32 %v387_v62, 16  ;;  %v350_v48 = vld [vmem:[#allocation2 + $0xa4] sm:$0x1] }
  0x97   : > { %v1062_v31 = vrot.slane %v1060_v24, 5  ;;  %6480 = vmatmul.mubr.msk.bf16.gmra.mxu1 %vm1401_vm9, %v5898_v26  ;;  %v750_v41 = vsel %vm7265_vm11, %v473_v28, %v749_v20  ;;  %v595_v47 = vshrl.u32 %v388_v25, 16  ;;  %v598_v55 = vshll.u32 %v388_v25, 16  ;;  %v389_v54 = vld [vmem:[%s7202_s27 + $0x60] sm:$0xf] }
  0x98   : > { %v481_v39 = vor.u32 %v479_v14, %v478_v29  ;;  %v483_v40 = vrot.slane %v478_v29, 4  ;;  %751 = vst [vmem:[#allocation2 + $0x3c] sm:$0xf] %v750_v41  ;;  %v592_v50 = vor.u32 %v590_v35, %v589_v34  ;;  %v593_v51 = vrot.slane %v589_v34, 4  ;;  %v390_v36 = vld [vmem:[%s7202_s27 + $0x64] sm:$0xf] }
  0x99   : > { %v1063_v49 = vor.u32 %v1062_v31, %v1059_v30  ;;  %v7472_v56 = vld [vmem:[#allocation2 + $0x34] sm:$0xf]  ;;  %v7474_v58 = vld [vmem:[#allocation2 + $0x38] sm:$0x1]  ;;  %v597_v61 = vrot.slane %v595_v47, 7  ;;  %v301_v62 = vsel %vm7220_vm4, 0, %v300_v15 }
  0x9a   : > { %v482_v57 = vsel %vm7272_vm12, %v474_v23, %v481_v39  ;;  %v754_v60 = vsel %vm7220_vm4, %v483_v40, %v753_v33  ;;  %v1066_v7 = vshll.u32 %v7472_v56, 16  ;;  %v1070_v8 = vshrl.u32 %v7472_v56, 16  ;;  %302 = vst [vmem:[#allocation2 + $0x9c] sm:$0x1] %v301_v62  ;;  %v279_v10 = vld [vmem:[#allocation2 + $0x48] sm:$0x1] }
  0x9b   : > { %v1064_v0 = vrot.slane %v1063_v49, 4  ;;  %v1076_v9 = vshll.u32 %v7474_v58, 16  ;;  %752 = vst.msk [vmem:[#allocation2 + $0x40] sm:$0xf] %vm251_vm0, %v482_v57  ;;  %755 = vst [vmem:[#allocation2 + $0x44] sm:$0x1] %v754_v60  ;;  %v600_v12 = vor.u32 %v598_v55, %v597_v61 }
  0x9c   : > { %v329_v11 = vld [vmem:[#allocation2 + $0x50] sm:$0x1]  ;;  %v602_v14 = vrot.slane %v597_v61, 4  ;;  %v802_v16 = vld [vmem:[#allocation2 + $0x98] sm:$0x1]  ;;  %v351_v17 = vsel %vm7232_vm8, 0, %v350_v48 }
  0x9d   : > { %v798_v63 = vld [vmem:[#allocation2 + $0x90] sm:$0xf]  ;;  %v1068_v37 = vrot.slane %v1066_v7, 5  ;;  %v1072_v19 = vrot.slane %v1070_v8, 4  ;;  %v1078_v21 = vrot.slane %v1076_v9, 5  ;;  %v601_v25 = vsel %vm7272_vm12, %v593_v51, %v600_v12 }
  0x9e   : > { %v799_v24 = vsel %vm7265_vm11, %v592_v50, %v798_v63  ;;  %352 = vst [vmem:[#allocation2 + $0xa4] sm:$0x1] %v351_v17  ;;  %v7492_v20 = vld [vmem:[%s7202_s27 + $0x28] sm:$0xf]  ;;  %v803_v26 = vsel %vm7220_vm4, %v602_v14, %v802_v16  ;;  %v604_v28 = vshrl.u32 %v389_v54, 16  ;;  %v607_v23 = vshll.u32 %v389_v54, 16 }
  0x9f   : > { %800 = vst [vmem:[#allocation2 + $0x90] sm:$0xf] %v799_v24  ;;  %v1069_v29 = vsel %vm7252_vm10, %v1064_v0, %v1068_v37  ;;  %v1073_v15 = vor.u32 %v1072_v19, %v1068_v37  ;;  %801 = vst.msk [vmem:[#allocation2 + $0x94] sm:$0xf] %vm251_vm0, %v601_v25  ;;  %v612_v30 = vshrl.u32 %v390_v36, 16  ;;  %v615_v31 = vshll.u32 %v390_v36, 16 }
  0xa0   : > { %804 = vst [vmem:[#allocation2 + $0x98] sm:$0x1] %v803_v26  ;;  %v7501_v33 = vld [vmem:[#allocation2 + $0x3c] sm:$0xf]  ;;  %v606_v34 = vrot.slane %v604_v28, 7  ;;  %v280_v35 = vsel %vm7220_vm4, 0, %v279_v10 }
  0xa1   : > { %v330_v39 = vsel %vm7232_vm8, 0, %v329_v11  ;;  %v485_v40 = vshrl.u32 %v7492_v20, 16  ;;  %v1074_v41 = vrot.slane %v1073_v15, 4  ;;  %v1081_v47 = vshrl.u32 %v7501_v33, 16  ;;  %281 = vst [vmem:[#allocation2 + $0x48] sm:$0x1] %v280_v35 }
  0xa2   : > { %v1084_v48 = vshll.u32 %v7501_v33, 16  ;;  %v614_v49 = vrot.slane %v612_v30, 7  ;;  %331 = vst [vmem:[#allocation2 + $0x50] sm:$0x1] %v330_v39  ;;  %v7510_v50 = vld [vmem:[#allocation2 + $0x40] sm:$0xf]  ;;  %v609_v55 = vor.u32 %v607_v23, %v606_v34 }
  0xa3   : > { %v7512_v51 = vld [vmem:[#allocation2 + $0x44] sm:$0x1]  ;;  %v610_v54 = vrot.slane %v606_v34, 4  ;;  %v7514_v57 = vrot.slane %v485_v40, 7  ;;  %v1079_v61 = vsel %vm7252_vm10, %v1074_v41, %v1078_v21  ;;  %v1083_v62 = vrot.slane %v1081_v47, 4 }
  0xa4   : > { %v1086_v36 = vrot.slane %v1084_v48, 5  ;;  %v1090_v0 = vshll.u32 %v7510_v50, 16  ;;  %v805_v7 = vld [vmem:[#allocation2 + $0x9c] sm:$0xf]  ;;  %v5891_v8 = vcombine.low %v1069_v29, %v1079_v61  ;;  %v1094_v9 = vshrl.u32 %v7510_v50, 16 }
  0xa5   : > { %v1100_v10 = vshll.u32 %v7512_v51, 16  ;;  %v617_v11 = vor.u32 %v615_v31, %v614_v49  ;;  %v619_v16 = vrot.slane %v614_v49, 4  ;;  %v806_v17 = vsel %vm7265_vm11, %v609_v55, %v805_v7  ;;  %v809_v37 = vld [vmem:[#allocation2 + $0xa4] sm:$0x1]  ;;  %v282_v55 = vld [vmem:[#allocation2 + $0x54] sm:$0x1] }
  0xa6   : > { %v1087_v12 = vor.u32 %v1086_v36, %v1083_v62  ;;  %v1092_v14 = vrot.slane %v1090_v0, 5  ;;  %v7523_v63 = vld [vmem:[#allocation2 + $0x90] sm:$0xf]  ;;  %6467 = vmatprep.mubr.msk.bf16.mxu0 %vm1401_vm9, %v5891_v8  ;;  %v1096_v19 = vrot.slane %v1094_v9, 4  ;;  %v7528_v24 = vld [vmem:[#allocation2 + $0x94] sm:$0xf] }
  0xa7   : > { %v1102_v21 = vrot.slane %v1100_v10, 5  ;;  %v7530_v25 = vld [vmem:[#allocation2 + $0x98] sm:$0x1]  ;;  %v618_v26 = vsel %vm7272_vm12, %v610_v54, %v617_v11  ;;  %807 = vst [vmem:[#allocation2 + $0x9c] sm:$0xf] %v806_v17  ;;  %v1249_v29 = vshrl.u32 %v7523_v63, 16  ;;  %v810_v39 = vsel %vm7220_vm4, %v619_v16, %v809_v37 }
  0xa8   : > { %v1088_v23 = vrot.slane %v1087_v12, 4  ;;  %v1252_v15 = vshll.u32 %v7523_v63, 16  ;;  %v1258_v30 = vshll.u32 %v7528_v24, 16  ;;  %808 = vst.msk [vmem:[#allocation2 + $0xa0] sm:$0xf] %vm251_vm0, %v618_v26  ;;  %v1097_v31 = vor.u32 %v1096_v19, %v1092_v14 }
  0xa9   : > { %v1262_v34 = vshrl.u32 %v7528_v24, 16  ;;  %v1268_v35 = vshll.u32 %v7530_v25, 16  ;;  %v376_v40 = vld [vmem:[%s7202_s27 + $0x2c] sm:$0xf]  ;;  %v1251_v47 = vrot.slane %v1249_v29, 4  ;;  %v488_v36 = vshll.u32 %v7492_v20, 16 }
  0xaa   : > { %v1093_v41 = vsel %vm7252_vm10, %v1088_v23, %v1092_v14  ;;  %v1254_v48 = vrot.slane %v1252_v15, 5  ;;  %v1260_v49 = vrot.slane %v1258_v30, 5  ;;  %811 = vst [vmem:[#allocation2 + $0xa4] sm:$0x1] %v810_v39  ;;  %v1098_v54 = vrot.slane %v1097_v31, 4 }
  0xab   : > { %v1264_v61 = vrot.slane %v1262_v34, 4  ;;  %v1270_v62 = vrot.slane %v1268_v35, 5  ;;  %v332_v0 = vld [vmem:[#allocation2 + $0x5c] sm:$0x1]  ;;  %v491_v8 = vrot.slane %v7514_v57, 4  ;;  %v493_v9 = vshrl.u32 %v376_v40, 16 }
  0xac   : > { %v1255_v7 = vor.u32 %v1254_v48, %v1251_v47  ;;  %v496_v10 = vshll.u32 %v376_v40, 16  ;;  %v756_v11 = vld [vmem:[#allocation2 + $0x48] sm:$0xf]  ;;  %v1103_v12 = vsel %vm7252_vm10, %v1098_v54, %v1102_v21  ;;  %v490_v16 = vor.u32 %v488_v36, %v7514_v57  ;;  %v378_v34 = vld [vmem:[%s7202_s27 + $0x34] sm:$0xf] }
  0xad   : > { %v1265_v14 = vor.u32 %v1264_v61, %v1260_v49  ;;  %v283_v17 = vsel %vm7220_vm4, 0, %v282_v55  ;;  %v5892_v37 = vcombine.low %v1093_v41, %v1103_v12  ;;  %v495_v26 = vrot.slane %v493_v9, 7  ;;  %v377_v29 = vld [vmem:[%s7202_s27 + $0x30] sm:$0xf]  ;;  %v760_v47 = vld [vmem:[#allocation2 + $0x50] sm:$0x1] }
  0xae   : > { %v1256_v20 = vrot.slane %v1255_v7, 4  ;;  %v7554_v19 = vld [vmem:[#allocation2 + $0x9c] sm:$0xf]  ;;  %284 = vst [vmem:[#allocation2 + $0x54] sm:$0x1] %v283_v17  ;;  %v333_v23 = vsel %vm7232_vm8, 0, %v332_v0  ;;  %v757_v31 = vsel %vm7265_vm11, %v490_v16, %v756_v11 }
  0xaf   : > { %v1266_v15 = vrot.slane %v1265_v14, 4  ;;  %v7559_v30 = vld [vmem:[#allocation2 + $0xa0] sm:$0xf]  ;;  %v1273_v21 = vshrl.u32 %v7554_v19, 16  ;;  %v1276_v57 = vshll.u32 %v7554_v19, 16  ;;  %6468 = vmatmul.mubr.msk.bf16.gmra.mxu0 %vm1401_vm9, %v5892_v37  ;;  %v498_v41 = vor.u32 %v496_v10, %v495_v26 }
  0xb0   : > { %334 = vst [vmem:[#allocation2 + $0x5c] sm:$0x1] %v333_v23  ;;  %v1261_v35 = vsel %vm7252_vm10, %v1256_v20, %v1260_v49  ;;  %v1282_v39 = vshll.u32 %v7559_v30, 16  ;;  %v1286_v40 = vshrl.u32 %v7559_v30, 16  ;;  %758 = vst [vmem:[#allocation2 + $0x48] sm:$0xf] %v757_v31 }
  0xb1   : > { %v303_v48 = vld [vmem:[#allocation2 + $0xa8] sm:$0x1]  ;;  %v1271_v55 = vsel %vm7252_vm10, %v1266_v15, %v1270_v62  ;;  %v7573_v54 = vld [vmem:[#allocation2 + $0xa4] sm:$0x1]  ;;  %v1275_v61 = vrot.slane %v1273_v21, 4  ;;  %v1278_v36 = vrot.slane %v1276_v57, 5  ;;  %v499_v10 = vsel %vm7272_vm12, %v491_v8, %v498_v41 }
  0xb2   : > { %v500_v0 = vrot.slane %v495_v26, 4  ;;  %v5899_v7 = vcombine.low %v1261_v35, %v1271_v55  ;;  %v1284_v9 = vrot.slane %v1282_v39, 5  ;;  %v1288_v49 = vrot.slane %v1286_v40, 4  ;;  %v353_v12 = vld [vmem:[#allocation2 + $0xb0] sm:$0x1] }
  0xb3   : > { %v1292_v11 = vshll.u32 %v7573_v54, 16  ;;  %v1279_v14 = vor.u32 %v1278_v36, %v1275_v61  ;;  %v502_v62 = vshrl.u32 %v377_v29, 16  ;;  %v391_v17 = vld [vmem:[%s7202_s27 + $0x68] sm:$0xf]  ;;  %759 = vst.msk [vmem:[#allocation2 + $0x4c] sm:$0xf] %vm251_vm0, %v499_v10 }
  0xb4   : > { %v761_v16 = vsel %vm7220_vm4, %v500_v0, %v760_v47  ;;  %6483 = vmatprep.mubr.msk.bf16.mxu1 %vm1401_vm9, %v5899_v7  ;;  %v1289_v37 = vor.u32 %v1288_v49, %v1284_v9  ;;  %v505_v26 = vshll.u32 %v377_v29, 16  ;;  %v510_v23 = vshrl.u32 %v378_v34, 16  ;;  %v392_v31 = vld [vmem:[%s7202_s27 + $0x6c] sm:$0xf]  ;;  %v1910_v22 = vld [vmem:[#allocation2 + $0x30] sm:$0xe] }
  0xb5   : > { %v1294_v20 = vrot.slane %v1292_v11, 5  ;;  %762 = vst [vmem:[#allocation2 + $0x50] sm:$0x1] %v761_v16  ;;  %v1280_v15 = vrot.slane %v1279_v14, 4  ;;  %v504_v21 = vrot.slane %v502_v62, 7  ;;  %v513_v57 = vshll.u32 %v378_v34, 16 }
  0xb6   : > { %v304_v8 = vsel %vm7220_vm4, 0, %v303_v48  ;;  %v1290_v35 = vrot.slane %v1289_v37, 4  ;;  %v512_v39 = vrot.slane %v510_v23, 7  ;;  %v763_v40 = vld [vmem:[#allocation2 + $0x54] sm:$0xf]  ;;  %v354_v41 = vsel %vm7232_vm8, 0, %v353_v12 }
  0xb7   : > { %305 = vst [vmem:[#allocation2 + $0xa8] sm:$0x1] %v304_v8  ;;  %v621_v47 = vshrl.u32 %v391_v17, 16  ;;  %v1285_v55 = vsel %vm7252_vm10, %v1280_v15, %v1284_v9  ;;  %v7590_v29 = vld [vmem:[#allocation2 + $0x48] sm:$0xf]  ;;  %v507_v61 = vor.u32 %v505_v26, %v504_v21  ;;  %v508_v36 = vrot.slane %v504_v21, 4 }
  0xb8   : > { %v767_v34 = vld [vmem:[#allocation2 + $0x5c] sm:$0x1]  ;;  %355 = vst [vmem:[#allocation2 + $0xb0] sm:$0x1] %v354_v41  ;;  %v624_v0 = vshll.u32 %v391_v17, 16  ;;  %v1295_v48 = vsel %vm7252_vm10, %v1290_v35, %v1294_v20  ;;  %v1105_v7 = vshrl.u32 %v7590_v29, 16  ;;  %v515_v11 = vor.u32 %v513_v57, %v512_v39 }
  0xb9   : > { %v1108_v49 = vshll.u32 %v7590_v29, 16  ;;  %v306_v12 = vld [vmem:[#allocation2 + $0xb4] sm:$0x1]  ;;  %v356_v14 = vld [vmem:[#allocation2 + $0xbc] sm:$0x1]  ;;  %v5900_v10 = vcombine.low %v1285_v55, %v1295_v48  ;;  %v517_v9 = vrot.slane %v512_v39, 4  ;;  %v764_v16 = vsel %vm7265_vm11, %v507_v61, %v763_v40 }
  0xba   : > { %v623_v62 = vrot.slane %v621_v47, 7  ;;  %v1107_v37 = vrot.slane %v1105_v7, 4  ;;  %v516_v17 = vsel %vm7272_vm12, %v508_v36, %v515_v11  ;;  %765 = vst [vmem:[#allocation2 + $0x54] sm:$0xf] %v764_v16  ;;  %v629_v20 = vshrl.u32 %v392_v31, 16 }
  0xbb   : > { %v1110_v26 = vrot.slane %v1108_v49, 5  ;;  %v393_v23 = vld [vmem:[%s7202_s27 + $0x70] sm:$0xf]  ;;  %6484 = vmatmul.mubr.msk.bf16.gmra.mxu1 %vm1401_vm9, %v5900_v10  ;;  %v7602_v15 = vld [vmem:[#allocation2 + $0x4c] sm:$0xf]  ;;  %v768_v57 = vsel %vm7220_vm4, %v517_v9, %v767_v34  ;;  %v632_v39 = vshll.u32 %v392_v31, 16 }
  0xbc   : > { %v7604_v21 = vld [vmem:[#allocation2 + $0x50] sm:$0x1]  ;;  %766 = vst.msk [vmem:[#allocation2 + $0x58] sm:$0xf] %vm251_vm0, %v516_v17  ;;  %v626_v8 = vor.u32 %v624_v0, %v623_v62  ;;  %v627_v35 = vrot.slane %v623_v62, 4  ;;  %v1114_v41 = vshll.u32 %v7602_v15, 16 }
  0xbd   : > { %v1111_v40 = vor.u32 %v1110_v26, %v1107_v37  ;;  %v1118_v47 = vshrl.u32 %v7602_v15, 16  ;;  %v1124_v55 = vshll.u32 %v7604_v21, 16  ;;  %769 = vst [vmem:[#allocation2 + $0x5c] sm:$0x1] %v768_v57  ;;  %v394_v61 = vld [vmem:[%s7202_s27 + $0x74] sm:$0xf] }
  0xbe   : > { %v631_v36 = vrot.slane %v629_v20, 7  ;;  %v812_v48 = vld [vmem:[#allocation2 + $0xa8] sm:$0xf]  ;;  %v307_v7 = vsel %vm7220_vm4, 0, %v306_v12  ;;  %v357_v34 = vsel %vm7232_vm8, 0, %v356_v14  ;;  %v638_v0 = vshrl.u32 %v393_v23, 16 }
  0xbf   : > { %v1112_v31 = vrot.slane %v1111_v40, 4  ;;  %v1116_v49 = vrot.slane %v1114_v41, 5  ;;  %v1120_v11 = vrot.slane %v1118_v47, 4  ;;  %v1126_v10 = vrot.slane %v1124_v55, 5  ;;  %v816_v9 = vld [vmem:[#allocation2 + $0xb0] sm:$0x1] }
  0xc0   : > { %308 = vst [vmem:[#allocation2 + $0xb4] sm:$0x1] %v307_v7  ;;  %358 = vst [vmem:[#allocation2 + $0xbc] sm:$0x1] %v357_v34  ;;  %v634_v16 = vor.u32 %v632_v39, %v631_v36  ;;  %v636_v62 = vrot.slane %v631_v36, 4  ;;  %v813_v37 = vsel %vm7265_vm11, %v626_v8, %v812_v48  ;;  %v640_v26 = vrot.slane %v638_v0, 7 }
  0xc1   : > { %v1117_v12 = vsel %vm7252_vm10, %v1112_v31, %v1116_v49  ;;  %v1121_v17 = vor.u32 %v1120_v11, %v1116_v49  ;;  %814 = vst [vmem:[#allocation2 + $0xa8] sm:$0xf] %v813_v37  ;;  %v641_v14 = vshll.u32 %v393_v23, 16  ;;  %v646_v20 = vshrl.u32 %v394_v61, 16  ;;  %v7621_v57 = vld [vmem:[#allocation2 + $0x54] sm:$0xf] }
  0xc2   : > { %v635_v40 = vsel %vm7272_vm12, %v627_v35, %v634_v16  ;;  %v817_v39 = vsel %vm7220_vm4, %v636_v62, %v816_v9  ;;  %v644_v41 = vrot.slane %v640_v26, 4  ;;  %v649_v47 = vshll.u32 %v394_v61, 16  ;;  %v1906_v9 = vld [vmem:[#allocation2] sm:$0xe]  ;;  %v2734_v38 = vld [vmem:[#allocation2 + $0x20] sm:$0x1] }
  0xc3   : > { %v1122_v55 = vrot.slane %v1121_v17, 4  ;;  %v7627_v8 = vld [vmem:[#allocation2 + $0x58] sm:$0xf]  ;;  %v1129_v36 = vshrl.u32 %v7621_v57, 16  ;;  %v1132_v48 = vshll.u32 %v7621_v57, 16  ;;  %v643_v23 = vor.u32 %v641_v14, %v640_v26 }
  0xc4   : > { %815 = vst.msk [vmem:[#allocation2 + $0xac] sm:$0xf] %vm251_vm0, %v635_v40  ;;  %818 = vst [vmem:[#allocation2 + $0xb0] sm:$0x1] %v817_v39  ;;  %v7632_v7 = vld [vmem:[#allocation2 + $0x5c] sm:$0x1] }
  0xc5   : > { %v1138_v35 = vshll.u32 %v7627_v8, 16  ;;  %v1142_v34 = vshrl.u32 %v7627_v8, 16  ;;  %v648_v0 = vrot.slane %v646_v20, 7  ;;  %vm1955_vm14 = vcmask 1046532   ;;  %v7889_v1 = vld [vmem:[#allocation2 + $0x28] sm:$0xf] }
  0xc6   : > { %v1127_v61 = vsel %vm7252_vm10, %v1122_v55, %v1126_v10  ;;  %v1131_v31 = vrot.slane %v1129_v36, 4  ;;  %v1134_v49 = vrot.slane %v1132_v48, 5  ;;  %v1148_v11 = vshll.u32 %v7632_v7, 16  ;;  %vm7643_vm15 = vmor %vm1954_vm13, %vm1955_vm14  ;;  %v1907_v55 = vld [vmem:[#allocation2 + $0xc] sm:$0xe] }
  0xc7   : > { %v5893_v16 = vcombine.low %v1117_v12, %v1127_v61  ;;  %v1140_v62 = vrot.slane %v1138_v35, 5  ;;  %v1144_v37 = vrot.slane %v1142_v34, 4  ;;  %v651_v26 = vor.u32 %v649_v47, %v648_v0  ;;  %v819_v17 = vld [vmem:[#allocation2 + $0xb4] sm:$0xf]  ;;  %v823_v14 = vld [vmem:[#allocation2 + $0xbc] sm:$0x1] }
  0xc8   : > { %v1135_v40 = vor.u32 %v1134_v49, %v1131_v31  ;;  %v1150_v39 = vrot.slane %v1148_v11, 5  ;;  %v653_v28 = vrot.slane %v648_v0, 4  ;;  %v820_v20 = vsel %vm7265_vm11, %v643_v23, %v819_v17  ;;  %v7648_v36 = vld [vmem:[#allocation2 + $0xa8] sm:$0xf] }
  0xc9   : > { %6471 = vmatprep.mubr.msk.bf16.mxu0 %vm1401_vm9, %v5893_v16  ;;  %v1145_v12 = vor.u32 %v1144_v37, %v1140_v62  ;;  %v652_v47 = vsel %vm7272_vm12, %v644_v41, %v651_v26  ;;  %821 = vst [vmem:[#allocation2 + $0xb4] sm:$0xf] %v820_v20  ;;  %v5953_v48 = vrot.slane %v1906_v9, 9  ;;  %v1961_v23 = vrot.slane %v1959_v27, 4 }
  0xca   : > { %v1136_v35 = vrot.slane %v1135_v40, 4  ;;  %v1297_v34 = vshrl.u32 %v7648_v36, 16  ;;  %v1300_v0 = vshll.u32 %v7648_v36, 16  ;;  %822 = vst.msk [vmem:[#allocation2 + $0xb8] sm:$0xf] %vm251_vm0, %v652_v47  ;;  %v824_v61 = vsel %vm7220_vm4, %v653_v28, %v823_v14 }
  0xcb   : > { %v1146_v31 = vrot.slane %v1145_v12, 4  ;;  %v7659_v49 = vld [vmem:[#allocation2 + $0xac] sm:$0xf]  ;;  %v7661_v11 = vld [vmem:[#allocation2 + $0xb0] sm:$0x1]  ;;  %v1960_v41 = vsel %vm7643_vm15, %v5953_v48, %v1959_v27  ;;  %v1963_v9 = vsel %vm7643_vm15, %v1961_v23, %v1962_v59  ;;  %v5954_v16 = vrot.slane %v1907_v55, 9 }
  0xcc   : > { %825 = vst [vmem:[#allocation2 + $0xbc] sm:$0x1] %v824_v61  ;;  %v1141_v28 = vsel %vm7252_vm10, %v1136_v35, %v1140_v62  ;;  %v1299_v37 = vrot.slane %v1297_v34, 4  ;;  %v1302_v26 = vrot.slane %v1300_v0, 5  ;;  %v1306_v17 = vshll.u32 %v7659_v49, 16 }
  0xcd   : > { %v1908_v14 = vld [vmem:[#allocation2 + $0x18] sm:$0xe]  ;;  %v1151_v40 = vsel %vm7252_vm10, %v1146_v31, %v1150_v39  ;;  %v1310_v20 = vshrl.u32 %v7659_v49, 16  ;;  %v1316_v27 = vshll.u32 %v7661_v11, 16  ;;  %v5969_v5 = vcombine.low %v1960_v41, %v1963_v9  ;;  %v1909_v12 = vld [vmem:[#allocation2 + $0x24] sm:$0xe] }
  0xce   : > { %v5894_v47 = vcombine.low %v1141_v28, %v1151_v40  ;;  %v1303_v59 = vor.u32 %v1302_v26, %v1299_v37  ;;  %v1308_v55 = vrot.slane %v1306_v17, 5  ;;  %v1967_v62 = vsel %vm7643_vm15, %v5954_v16, %v1966_v53  ;;  %v7687_v61 = vld [vmem:[#allocation2 + $0x1c] sm:$0xf]  ;;  %v6886_v41 = vld [vmem:[#allocation2 + $0x20] sm:$0x1] }
  0xcf   : > { %v1312_v48 = vrot.slane %v1310_v20, 4  ;;  %v1318_v23 = vrot.slane %v1316_v27, 5  ;;  %v1968_v35 = vrot.slane %v1966_v53, 4  ;;  %v5955_v39 = vrot.slane %v1908_v14, 9 }
  0xd0   : > { %6472 = vmatmul.mubr.msk.bf16.gmra.mxu0 %vm1401_vm9, %v5894_v47  ;;  %v1304_v34 = vrot.slane %v1303_v59, 4  ;;  %v7685_v0 = vld [vmem:[#allocation2 + $0xb4] sm:$0xf]  ;;  %v1973_v31 = vrot.slane %v7687_v61, 5  ;;  %v1976_v9 = vrot.slane %v6886_v41, 5  ;;  %v5956_v28 = vrot.slane %v1909_v12, 9 }
  0xd1   : > { %v1313_v37 = vor.u32 %v1312_v48, %v1308_v55  ;;  %v7690_v16 = vld [vmem:[#allocation2 + $0xb8] sm:$0xf]  ;;  %v1321_v26 = vshrl.u32 %v7685_v0, 16  ;;  %v1324_v53 = vshll.u32 %v7685_v0, 16  ;;  %6527 = vmatprep.mubr.msk.bf16.mxu0 %vm1401_vm9, %v5969_v5  ;;  %v1970_v17 = vsel %vm7643_vm15, %v1968_v35, %v1969_v2 }
  0xd2   : > { %v1309_v14 = vsel %vm7252_vm10, %v1304_v34, %v1308_v55  ;;  %v1330_v20 = vshll.u32 %v7690_v16, 16  ;;  %v1334_v27 = vshrl.u32 %v7690_v16, 16  ;;  %v5970_v12 = vcombine.low %v1967_v62, %v1970_v17  ;;  %v7714_v17 = vld [vmem:[#allocation6 + $0x30] sm:$0xff]  }
  0xd3   : > { %v7701_v40 = vld [vmem:[#allocation2 + $0xbc] sm:$0x1]  ;;  %v1314_v47 = vrot.slane %v1313_v37, 4  ;;  %v1323_v59 = vrot.slane %v1321_v26, 4  ;;  %v1326_v48 = vrot.slane %v1324_v53, 5  ;;  %v1974_v2 = vsel %vm7643_vm15, %v5955_v39, %v1973_v31 }
  0xd4   : > { %v1340_v5 = vshll.u32 %v7701_v40, 16  ;;  %v1332_v41 = vrot.slane %v1330_v20, 5  ;;  %v1336_v52 = vrot.slane %v1334_v27, 4  ;;  %v1975_v35 = vrot.slane %v1973_v31, 4 }
  0xd5   : > { %v1319_v55 = vsel %vm7252_vm10, %v1314_v47, %v1318_v23  ;;  %v1327_v34 = vor.u32 %v1326_v48, %v1323_v59  ;;  %v1980_v13 = vrot.slane %v7405_v43, 5  ;;  %v1983_v53 = vrot.slane %v7414_v18, 5  ;;  %v6887_v47 = vld [vmem:[#allocation6 + $0x20] sm:$0xff]  }
  0xd6   : > { %v1342_v60 = vrot.slane %v1340_v5, 5  ;;  %v5901_v62 = vcombine.low %v1309_v14, %v1319_v55  ;;  %v1337_v37 = vor.u32 %v1336_v52, %v1332_v41  ;;  %v1977_v26 = vsel %vm7643_vm15, %v1975_v35, %v1976_v9  ;;  %v1911_v48 = vld [vmem:[#allocation2 + $0x3c] sm:$0xe]  ;;  %v1912_v52 = vld [vmem:[#allocation2 + $0x48] sm:$0xe] }
  0xd7   : > { %v1328_v20 = vrot.slane %v1327_v34, 4  ;;  %v5971_v39 = vcombine.low %v1974_v2, %v1977_v26  ;;  %v1982_v31 = vrot.slane %v1980_v13, 4  ;;  %v5957_v27 = vrot.slane %v1910_v22, 9  ;;  %v1913_v55 = vld [vmem:[#allocation2 + $0x54] sm:$0xe] }
  0xd8   : > { %6487 = vmatprep.mubr.msk.bf16.mxu1 %vm1401_vm9, %v5901_v62  ;;  %v1338_v23 = vrot.slane %v1337_v37, 4  ;;  %6528 = vmatmul.mubr.msk.bf16.vlgmr.msra.gmra.mxu0 %vm1401_vm9, %v5970_v12  ;;  %v1987_v43 = vrot.slane %v7472_v56, 5  ;;  %v1990_v14 = vrot.slane %v7474_v58, 5  ;;  %v1981_v18 = vsel %vm7643_vm15, %v5956_v28, %v1980_v13 }
  0xd9   : > { %v1333_v9 = vsel %vm7252_vm10, %v1328_v20, %v1332_v41  ;;  %6594 = vmatpush3.bf16.msra.mxu0 %v6887_v47  ;;  %6531 = vmatprep.mubr.msk.bf16.mxu0 %vm1401_vm9, %v5971_v39  ;;  %v1984_v59 = vsel %vm7643_vm15, %v1982_v31, %v1983_v53  ;;  %v1994_v22 = vrot.slane %v7510_v50, 5  ;;  %v5958_v28 = vrot.slane %v1911_v48, 9  ;;  %v1914_v31 = vld [vmem:[#allocation2 + $0x60] sm:$0xe] }
  0xda   : > { %v1343_v12 = vsel %vm7252_vm10, %v1338_v23, %v1342_v60  ;;  %v1988_v58 = vsel %vm7643_vm15, %v5957_v27, %v1987_v43  ;;  %v1989_v5 = vrot.slane %v1987_v43, 4  ;;  %6661 = vmatprep.subr.bf16.mxu0 %v7714_v17  ;;  %v5972_v2 = vcombine.low %v1981_v18, %v1984_v59  ;;  %v7745_v43 = vld [vmem:[#allocation2 + $0x64] sm:$0xf]  ;;  %v6890_v18 = vld [vmem:[#allocation2 + $0x18] sm:$0xf] }
  0xdb   : > { %v5902_v41 = vcombine.low %v1333_v9, %v1343_v12  ;;  %v2001_v35 = vrot.slane %v7602_v15, 5  ;;  %v1996_v60 = vrot.slane %v1994_v22, 4  ;;  %v1997_v62 = vrot.slane %v7512_v51, 5 }
  0xdc   : > { %v1991_v13 = vsel %vm7643_vm15, %v1989_v5, %v1990_v14  ;;  %v9901_v37 = vcombine.low %v7224_v3, %v7226_v4  ;;  %v5959_v26 = vrot.slane %v1912_v52, 9  ;;  %v2004_v20 = vrot.slane %v7604_v21, 5  ;;  %v6889_v3 = vld [vmem:[#allocation2 + $0x68] sm:$0x1] }
  0xdd   : > { %6488 = vmatmul.mubr.msk.bf16.gmra.mxu1 %vm1401_vm9, %v5902_v41  ;;  %v5973_v34 = vcombine.low %v1988_v58, %v1991_v13  ;;  %v2003_v53 = vrot.slane %v2001_v35, 4  ;;  %v2008_v39 = vrot.slane %v7627_v8, 5  ;;  %v5960_v23 = vrot.slane %v1913_v55, 9  ;;  %v7759_v58 = vld [vmem:[#allocation2 + $0x6c] sm:$0xe] }
  0xde   : > { %6493 = vmatprep.mubr.msk.bf16.mxu1 %vm1401_vm9, %v9901_v37  ;;  %v2011_v27 = vrot.slane %v7632_v7, 5  ;;  %v2015_v14 = vrot.slane %v7745_v43, 5  ;;  %v2018_v4 = vrot.slane %v6889_v3, 5  ;;  %v1995_v21 = vsel %vm7643_vm15, %v5958_v28, %v1994_v22  ;;  %v7761_v5 = vld [vmem:[#allocation2 + $0x28] sm:$0xf] }
  0xdf   : > { %v2010_v51 = vrot.slane %v2008_v39, 4  ;;  %v1998_v9 = vsel %vm7643_vm15, %v1996_v60, %v1997_v62  ;;  %v5961_v47 = vrot.slane %v1914_v31, 9  ;;  %v5922_v7 = vcombine.low %v6890_v18, %v7687_v61  ;;  %v6892_v41 = vld [vmem:[#allocation2 + $0x24] sm:$0xf]  ;;  %v7778_v55 = vld [vmem:[#allocation2 + $0x70] sm:$0xf] }
  0xe0   : > { %6532 = vmatmul.mubr.msk.bf16.gmra.mxu0 %vm1401_vm9, %v5972_v2  ;;  %v2002_v59 = vsel %vm7643_vm15, %v5959_v26, %v2001_v35  ;;  %v2005_v48 = vsel %vm7643_vm15, %v2003_v53, %v2004_v20  ;;  %v2017_v12 = vrot.slane %v2015_v14, 4  ;;  %v5923_v22 = vcombine.low %v6892_v41, %v7761_v5  ;;  %v7772_v2 = vld [vmem:[#allocation6 + $0x28] sm:$0xff]   ;;  %v1916_v60 = vld [vmem:[#allocation2 + $0x78] sm:$0xe]  ;;  %v1918_v62 = vld [vmem:[#allocation2 + $0x90] sm:$0xe] }
  0xe1   : > { %6535 = vmatprep.mubr.msk.bf16.mxu0 %vm1401_vm9, %v5973_v34  ;;  %v7766_v52 = vsel %vm7643_vm15, %v5960_v23, %v2008_v39  ;;  %v7770_v61 = vsel %vm7643_vm15, %v2010_v51, %v2011_v27  ;;  %v5974_v13 = vcombine.low %v1995_v21, %v1998_v9  ;;  %v2022_v34 = vrot.slane %v7778_v55, 5  ;;  %v7789_v20 = vld [vmem:[#allocation2 + $0x60] sm:$0xf]  ;;  %v6895_v23 = vld [vmem:[#allocation6 + $0x18] sm:$0xff]   ;;  %v7801_v51 = vld [vmem:[#allocation2 + $0x6c] sm:$0xf] }
  0xe2   : > { %v9902_v37 = vcombine.low %v7315_v45, %v7317_v46  ;;  %v5975_v26 = vcombine.low %v2002_v59, %v2005_v48  ;;  %v7787_v53 = vsel %vm7643_vm15, %v5961_v47, %v2015_v14  ;;  %v5962_v31 = vrot.slane %v7759_v58, 9  ;;  %v6896_v27 = vld [vmem:[#allocation2 + $0x74] sm:$0x1]  ;;  %v1917_v21 = vld [vmem:[#allocation2 + $0x84] sm:$0xe] }
  0xe3   : > { %v5976_v45 = vcombine.low %v7766_v52, %v7770_v61  ;;  %v7799_v46 = vsel %vm7643_vm15, %v2017_v12, %v2018_v4  ;;  %v2025_v14 = vrot.slane %v6896_v27, 5  ;;  %v1919_v9 = vld [vmem:[#allocation2 + $0x9c] sm:$0xe]  ;;  %v5963_v47 = vrot.slane %v1916_v60, 9  ;;  %v6899_v12 = vld [vmem:[#allocation2 + $0x80] sm:$0x1] }
  0xe4   : > { %v7805_v18 = vld [vmem:[#allocation2 + $0x7c] sm:$0xf]  ;;  %v5965_v59 = vrot.slane %v1918_v62, 9  ;;  %v2043_v48 = vrot.slane %v7528_v24, 5  ;;  %v2024_v4 = vrot.slane %v2022_v34, 4  ;;  %v2032_v58 = vrot.slane %v6899_v12, 5 }
  0xe5   : > { %6494 = vmatmul.mubr.msk.bf16.vlgmr.msra.gmra.mxu1 %vm1401_vm9, %v9902_v37  ;;  %v7811_v5 = vld [vmem:[#allocation2 + $0x88] sm:$0xf]  ;;  %v2046_v52 = vrot.slane %v7530_v25, 5  ;;  %v5977_v37 = vcombine.low %v7787_v53, %v7799_v46  ;;  %v2053_v27 = vrot.slane %v7573_v54, 5  ;;  %v5964_v12 = vrot.slane %v1917_v21, 9 }
  0xe6   : > { %6560 = vmatpush3.bf16.msra.mxu1 %v6895_v23  ;;  %6497 = vmatprep.mubr.msk.bf16.mxu1 %vm1401_vm9, %v5922_v7  ;;  %v2029_v7 = vrot.slane %v7805_v18, 5  ;;  %v2036_v41 = vrot.slane %v7811_v5, 5  ;;  %v7818_v61 = vsel %vm7643_vm15, %v5965_v59, %v2043_v48  ;;  %v2045_v60 = vrot.slane %v2043_v48, 4  ;;  %v6901_v3 = vld [vmem:[#allocation2 + $0x8c] sm:$0x1] }
  0xe7   : > { %6627 = vmatprep.subr.bf16.mxu1 %v7772_v2  ;;  %v2050_v23 = vrot.slane %v7559_v30, 5  ;;  %v2039_v59 = vrot.slane %v6901_v3, 5  ;;  %v2729_v46 = vld [vmem:[#allocation2 + $0xc] sm:$0xf]  ;;  %v2023_v21 = vsel %vm7643_vm15, %v5962_v31, %v2022_v34  ;;  %v7851_v25 = vld [vmem:[#allocation2 + $0x10] sm:$0xf]  ;;  %v2026_v34 = vsel %vm7643_vm15, %v2024_v4, %v2025_v14 }
  0xe8   : > { %6536 = vmatmul.mubr.msk.bf16.gmra.mxu0 %vm1401_vm9, %v5974_v13  ;;  %v5966_v13 = vrot.slane %v1919_v9, 9  ;;  %v7830_v48 = vsel %vm7643_vm15, %v2045_v60, %v2046_v52  ;;  %v2038_v62 = vrot.slane %v2036_v41, 4  ;;  %v7843_v3 = vsel %vm7643_vm15, %v5963_v47, %v2029_v7  ;;  %v7845_v52 = vld [vmem:[#allocation2 + $0x78] sm:$0xf]  ;;  %v1920_v47 = vld [vmem:[#allocation2 + $0xa8] sm:$0xe] }
  0xe9   : > { %6539 = vmatprep.mubr.msk.bf16.mxu0 %vm1401_vm9, %v5975_v26  ;;  %v2031_v26 = vrot.slane %v2029_v7, 4  ;;  %v2052_v54 = vrot.slane %v2050_v23, 4  ;;  %v2057_v7 = vrot.slane %v7659_v49, 5  ;;  %v2778_v14 = vshrl.u32 %v2729_v46, 16  ;;  %v2732_v60 = vld [vmem:[#allocation2 + $0x18] sm:$0xf] }
  0xea   : > { %v7836_v53 = vsel %vm7643_vm15, %v5966_v13, %v2050_v23  ;;  %v7866_v13 = vld [vmem:[#allocation2 + $0x84] sm:$0xf]  ;;  %v2781_v4 = vshll.u32 %v2729_v46, 16  ;;  %v7881_v23 = vsel %vm7643_vm15, %v2038_v62, %v2039_v59  ;;  %v2733_v9 = vld [vmem:[#allocation2 + $0x1c] sm:$0xf]  ;;  %v5967_v46 = vrot.slane %v1920_v47, 9 }
  0xeb   : > { %v7861_v31 = vsel %vm7643_vm15, %v2052_v54, %v2053_v27  ;;  %v2033_v27 = vsel %vm7643_vm15, %v2031_v26, %v2032_v58  ;;  %v7877_v54 = vsel %vm7643_vm15, %v5964_v12, %v2036_v41  ;;  %v2780_v39 = vrot.slane %v2778_v14, 4  ;;  %v2735_v58 = vld [vmem:[#allocation2 + $0x24] sm:$0xf] }
  0xec   : > { %v2791_v35 = vshrl.u32 %v7851_v25, 16  ;;  %v5978_v26 = vcombine.low %v2023_v21, %v2026_v34  ;;  %v2059_v28 = vrot.slane %v2057_v7, 4  ;;  %v2060_v41 = vrot.slane %v7661_v11, 5  ;;  %v2738_v34 = vld [vmem:[#allocation2 + $0x30] sm:$0xf] }
  0xed   : > { %6498 = vmatmul.mubr.msk.bf16.gmra.mxu1 %vm1401_vm9, %v5923_v22  ;;  %v9903_v22 = vcombine.low %v7455_v42, %v7472_v56  ;;  %v1921_v42 = vld [vmem:[#allocation2 + $0xb4] sm:$0xe]  ;;  %v2787_v56 = vshll.u32 %v7851_v25, 16  ;;  %v2064_v12 = vrot.slane %v7690_v16, 5  ;;  %v5979_v62 = vcombine.low %v7843_v3, %v2033_v27 }
  0xee   : > { %v2802_v44 = vshrl.u32 %v2732_v60, 16  ;;  %v2805_v6 = vshll.u32 %v2732_v60, 16  ;;  %v2793_v14 = vrot.slane %v2791_v35, 4  ;;  %v9904_v11 = vcombine.low %v7501_v33, %v7510_v50 }
  0xef   : > { %6501 = vmatprep.mubr.msk.bf16.mxu1 %vm1401_vm9, %v9903_v22  ;;  %v2731_v22 = vld [vmem:[#allocation2 + $0x14] sm:$0x1]  ;;  %v7893_v47 = vrot.slane %v2787_v56, 5  ;;  %v5968_v3 = vrot.slane %v1921_v42, 9  ;;  %v2811_v60 = vshll.u32 %v2733_v9, 16  ;;  %v2066_v35 = vrot.slane %v2064_v12, 4 }
  0xf0   : > { %6540 = vmatmul.mubr.msk.bf16.gmra.mxu0 %vm1401_vm9, %v5976_v45  ;;  %v2783_v45 = vrot.slane %v2781_v4, 5  ;;  %v2797_v21 = vshll.u32 %v2731_v22, 16  ;;  %v2815_v4 = vshrl.u32 %v2733_v9, 16  ;;  %v2067_v56 = vrot.slane %v7701_v40, 5 }
  0xf1   : > { %6543 = vmatprep.mubr.msk.bf16.mxu0 %vm1401_vm9, %v5977_v37  ;;  %v5980_v37 = vcombine.low %v7877_v54, %v7881_v23  ;;  %v9905_v23 = vcombine.low %v7590_v29, %v7602_v15  ;;  %v2826_v22 = vshrl.u32 %v2735_v58, 16  ;;  %v2829_v27 = vshll.u32 %v2735_v58, 16  ;;  %v7918_v54 = vld [vmem:[#allocation2 + $0x2c] sm:$0x1] }
  0xf2   : > { %v2784_v59 = vor.u32 %v2783_v45, %v2780_v39  ;;  %v7901_v39 = vsel %vm7643_vm15, %v5967_v46, %v2057_v7  ;;  %v7910_v33 = vsel %vm7643_vm15, %v2059_v28, %v2060_v41  ;;  %v2804_v7 = vrot.slane %v2802_v44, 4  ;;  %v7925_v44 = vld [vmem:[#allocation2 + $0x34] sm:$0xf] }
  0xf3   : > { %v2807_v42 = vrot.slane %v2805_v6, 5  ;;  %v2794_v9 = vor.u32 %v2793_v14, %v7893_v47  ;;  %v7916_v29 = vrot.slane %v2797_v21, 5  ;;  %v2821_v15 = vshll.u32 %v2734_v38, 16  ;;  %9906 = vst [vmem:[#allocation16_spill] sm:$0xff] %v7925_v44 }
  0xf4   : > { %v7912_v50 = vrot.slane %v2784_v59, 4  ;;  %v2835_v40 = vshll.u32 %v7889_v1, 16  ;;  %v7922_v46 = vrot.slane %v2811_v60, 5  ;;  %v2817_v28 = vrot.slane %v2815_v4, 4  ;;  %v7935_v59 = vld [vmem:[#allocation2 + $0x38] sm:$0x1] }
  0xf5   : > { %6502 = vmatmul.mubr.msk.bf16.gmra.mxu1 %vm1401_vm9, %v9904_v11  ;;  %v2839_v45 = vshrl.u32 %v7889_v1, 16  ;;  %v2850_v6 = vshrl.u32 %v2738_v34, 16  ;;  %v7929_v58 = vsel %vm7643_vm15, %v5968_v3, %v2064_v12  ;;  %v7933_v38 = vsel %vm7643_vm15, %v2066_v35, %v2067_v56  ;;  %9907 = vst [vmem:[#allocation17_spill] sm:$0xff] %v7935_v59  ;;  %v2741_v60 = vld [vmem:[#allocation2 + $0x3c] sm:$0xf] }
  0xf6   : > { %6505 = vmatprep.mubr.msk.bf16.mxu1 %vm1401_vm9, %v9905_v23  ;;  %v2831_v41 = vrot.slane %v2829_v27, 5  ;;  %v2808_v14 = vor.u32 %v2807_v42, %v2804_v7  ;;  %v7941_v21 = vrot.slane %v2835_v40, 5  ;;  %v7943_v12 = vld [vmem:[#allocation2 + $0x40] sm:$0xf]  ;;  %v2795_v3 = vrot.slane %v2794_v9, 4 }
  0xf7   : > { %v2841_v11 = vrot.slane %v2839_v45, 4  ;;  %9908 = vst [vmem:[#allocation18_spill] sm:$0xff] %v7943_v12  ;;  %v2852_v4 = vrot.slane %v2850_v6, 4  ;;  %v2853_v23 = vshll.u32 %v2738_v34, 16  ;;  %v2859_v35 = vshll.u32 %v7925_v44, 16 }
  0xf8   : > { %6544 = vmatmul.mubr.msk.bf16.gmra.mxu0 %vm1401_vm9, %v5978_v26  ;;  %v2828_v26 = vrot.slane %v2826_v22, 4  ;;  %v9909_v56 = vcombine.low %v7621_v57, %v7627_v8  ;;  %v2818_v22 = vor.u32 %v2817_v28, %v7922_v46  ;;  %v2845_v27 = vshll.u32 %v7918_v54, 16  ;;  %v2744_v8 = vld [vmem:[#allocation2 + $0x48] sm:$0xf] }
  0xf9   : > { %6547 = vmatprep.mubr.msk.bf16.mxu0 %vm1401_vm9, %v5979_v62  ;;  %v2790_v62 = vsel %vm7252_vm10, %v7912_v50, %v7893_v47  ;;  %v7951_v47 = vrot.slane %v2821_v15, 5  ;;  %v2863_v50 = vshrl.u32 %v7925_v44, 16  ;;  %v9910_v7 = vcombine.low %v7789_v20, %v7745_v43 }
  0xfa   : > { %v2832_v34 = vor.u32 %v2831_v41, %v2828_v26  ;;  %v2855_v42 = vrot.slane %v2853_v23, 5  ;;  %v7959_v9 = vrot.slane %v2859_v35, 5  ;;  %v2874_v57 = vshrl.u32 %v2741_v60, 16  ;;  %v7966_v26 = vld [vmem:[#allocation2 + $0x4c] sm:$0xf] }
  0xfb   : > { %v2842_v40 = vor.u32 %v2841_v11, %v7941_v21  ;;  %v2865_v28 = vrot.slane %v2863_v50, 4  ;;  %v2869_v15 = vshll.u32 %v7935_v59, 16  ;;  %v2877_v45 = vshll.u32 %v2741_v60, 16 }
  0xfc   : > { %v2809_v6 = vrot.slane %v2808_v14, 4  ;;  %v2883_v43 = vshll.u32 %v7943_v12, 16  ;;  %v2887_v20 = vshrl.u32 %v7943_v12, 16  ;;  %v9911_v41 = vcombine.low %v7818_v61, %v7830_v48  ;;  %v7976_v14 = vld [vmem:[#allocation2 + $0x44] sm:$0x1] }
  0xfd   : > { %6506 = vmatmul.mubr.msk.bf16.gmra.mxu1 %vm1401_vm9, %v9909_v56  ;;  %v2856_v56 = vor.u32 %v2855_v42, %v2852_v4  ;;  %v2800_v11 = vsel %vm7252_vm10, %v2795_v3, %v7916_v29  ;;  %v2819_v60 = vrot.slane %v2818_v22, 4  ;;  %v2847_v23 = vrot.slane %v2845_v27, 5 }
  0xfe   : > { %6509 = vmatprep.mubr.msk.bf16.mxu1 %vm1401_vm9, %v9910_v7  ;;  %v2876_v4 = vrot.slane %v2874_v57, 4  ;;  %v2879_v35 = vrot.slane %v2877_v45, 5  ;;  %v7978_v50 = vrot.slane %v2883_v43, 5  ;;  %v2889_v7 = vrot.slane %v2887_v20, 4 }
  0xff   : > { %v2833_v42 = vrot.slane %v2832_v34, 4  ;;  %v2843_v12 = vrot.slane %v2842_v40, 4  ;;  %v2871_v61 = vrot.slane %v2869_v15, 5  ;;  %v2898_v48 = vshrl.u32 %v2744_v8, 16  ;;  %v2747_v40 = vld [vmem:[#allocation2 + $0x54] sm:$0xf] }
 0x100   : > { %6548 = vmatmul.mubr.msk.bf16.gmra.mxu0 %vm1401_vm9, %v5980_v37  ;;  %v2866_v37 = vor.u32 %v2865_v28, %v7959_v9  ;;  %v2901_v44 = vshll.u32 %v2744_v8, 16  ;;  %v2907_v29 = vshll.u32 %v7966_v26, 16  ;;  %v9912_v3 = vcombine.low %v7801_v51, %v7778_v55  ;;  %v2750_v28 = vld [vmem:[#allocation2 + $0x60] sm:$0xf]  ;;  %v8013_v15 = vld [vmem:[#allocation2 + $0x64] sm:$0xf] }
 0x101   : > { %6551 = vmatprep.mubr.msk.bf16.mxu0 %vm1401_vm9, %v9911_v41  ;;  %v2857_v41 = vrot.slane %v2856_v56, 4  ;;  %v5983_v22 = vcombine.low %v7901_v39, %v7910_v33  ;;  %v5984_v27 = vcombine.low %v7929_v58, %v7933_v38  ;;  %v7989_v34 = vcombine.low %v2790_v62, %v2800_v11  ;;  %v8001_v58 = vld [vmem:[#allocation2 + $0x58] sm:$0xf]  ;;  %v8011_v62 = vld [vmem:[#allocation2 + $0x50] sm:$0x1] }
 0x102   : > { %v2867_v59 = vrot.slane %v2866_v37, 4  ;;  %v2911_v57 = vshrl.u32 %v7966_v26, 16  ;;  %v9913_v8 = vcombine.low %v7845_v52, %v7805_v18  ;;  %v2814_v55 = vsel %vm7252_vm10, %v2809_v6, %v7922_v46 }
 0x103   : > { %v2880_v51 = vor.u32 %v2879_v35, %v2876_v4  ;;  %v2890_v39 = vor.u32 %v2889_v7, %v7978_v50  ;;  %v2893_v33 = vshll.u32 %v7976_v14, 16  ;;  %v2824_v38 = vsel %vm7252_vm10, %v2819_v60, %v7951_v47  ;;  %v2753_v4 = vld [vmem:[#allocation2 + $0x6c] sm:$0xf] }
 0x104   : > { %v2838_v18 = vsel %vm7252_vm10, %v2833_v42, %v7941_v21  ;;  %v2848_v52 = vsel %vm7252_vm10, %v2843_v12, %v2847_v23  ;;  %v2900_v46 = vrot.slane %v2898_v48, 4  ;;  %v9914_v45 = vcombine.low %v7836_v53, %v7861_v31 }
 0x105   : > { %6510 = vmatmul.mubr.msk.bf16.gmra.mxu1 %vm1401_vm9, %v9912_v3  ;;  %v2862_v47 = vsel %vm7252_vm10, %v2857_v41, %v7959_v9  ;;  %v2872_v21 = vsel %vm7252_vm10, %v2867_v59, %v2871_v61  ;;  %v2903_v6 = vrot.slane %v2901_v44, 5  ;;  %v8024_v12 = vrot.slane %v2907_v29, 5  ;;  %v8036_v61 = vld [vmem:[#allocation2 + $0x5c] sm:$0x1] }
 0x106   : > { %6513 = vmatprep.mubr.msk.bf16.mxu1 %vm1401_vm9, %v9913_v8  ;;  %v2913_v56 = vrot.slane %v2911_v57, 4  ;;  %v2922_v43 = vshrl.u32 %v2747_v40, 16  ;;  %v2925_v20 = vshll.u32 %v2747_v40, 16  ;;  %v2931_v11 = vshll.u32 %v8001_v58, 16  ;;  %v8046_v40 = vld [vmem:[#allocation2 + $0x70] sm:$0xf] }
 0x107   : > { %v2881_v53 = vrot.slane %v2880_v51, 4  ;;  %v2891_v31 = vrot.slane %v2890_v39, 4  ;;  %v2895_v60 = vrot.slane %v2893_v33, 5  ;;  %v2935_v23 = vshrl.u32 %v8001_v58, 16  ;;  %v8057_v51 = vld [vmem:[#allocation2 + $0x68] sm:$0x1] }
 0x108   : > { %6552 = vmatmul.mubr.msk.bf16.gmra.mxu0 %vm1401_vm9, %v9914_v45  ;;  %v8029_v37 = vcombine.low %v2814_v55, %v2824_v38  ;;  %v8031_v9 = vcombine.low %v2838_v18, %v2848_v52  ;;  %v2946_v59 = vshrl.u32 %v2750_v28, 16  ;;  %v2949_v44 = vshll.u32 %v2750_v28, 16  ;;  %v8063_v28 = vld [vmem:[#allocation2 + $0x74] sm:$0x1] }
 0x109   : > { %6555 = vmatprep.mubr.msk.bf16.mxu0 %vm1401_vm9, %v5983_v22  ;;  %v8033_v35 = vcombine.low %v2862_v47, %v2872_v21  ;;  %v2904_v7 = vor.u32 %v2903_v6, %v2900_v46  ;;  %v2917_v42 = vshll.u32 %v8011_v62, 16  ;;  %v2955_v48 = vshll.u32 %v8013_v15, 16 }
 0x10a   : > { %v9915_v41 = vcombine.low %v7866_v13, %v7811_v5  ;;  %v2914_v29 = vor.u32 %v2913_v56, %v8024_v12  ;;  %v2924_v3 = vrot.slane %v2922_v43, 4  ;;  %v2927_v22 = vrot.slane %v2925_v20, 5 }
 0x10b   : > { %v8044_v57 = vrot.slane %v2931_v11, 5  ;;  %v9916_v8 = vcombine.low %v7523_v63, %v7528_v24  ;;  %v2886_v55 = vsel %vm7252_vm10, %v2881_v53, %v7978_v50  ;;  %v2896_v5 = vsel %vm7252_vm10, %v2891_v31, %v2895_v60  ;;  %v2756_v63 = vld [vmem:[#allocation2 + $0x78] sm:$0xf]  ;;  %v8072_v53 = vld [vmem:[#allocation2 + $0x7c] sm:$0xf] }
 0x10c   : > { %v2937_v13 = vrot.slane %v2935_v23, 4  ;;  %v2948_v39 = vrot.slane %v2946_v59, 4  ;;  %v2951_v33 = vrot.slane %v2949_v44, 5  ;;  %v8059_v38 = vrot.slane %v2955_v48, 5 }
 0x10d   : > { %6514 = vmatmul.mubr.msk.bf16.gmra.mxu1 %vm1401_vm9, %v9915_v41  ;;  %v2959_v18 = vshrl.u32 %v8013_v15, 16  ;;  %v2970_v52 = vshrl.u32 %v2753_v4, 16  ;;  %v2905_v24 = vrot.slane %v2904_v7, 4  ;;  %v2919_v46 = vrot.slane %v2917_v42, 5 }
 0x10e   : > { %6517 = vmatprep.mubr.msk.bf16.mxu1 %vm1401_vm9, %v9916_v8  ;;  %v2973_v50 = vshll.u32 %v2753_v4, 16  ;;  %v2979_v45 = vshll.u32 %v8046_v40, 16  ;;  %v2915_v47 = vrot.slane %v2914_v29, 4  ;;  %v2941_v21 = vshll.u32 %v8036_v61, 16 }
 0x10f   : > { %v2961_v6 = vrot.slane %v2959_v18, 4  ;;  %v2972_v56 = vrot.slane %v2970_v52, 4  ;;  %v2928_v43 = vor.u32 %v2927_v22, %v2924_v3  ;;  %v2938_v31 = vor.u32 %v2937_v13, %v8044_v57  ;;  %v8096_v13 = vld [vmem:[#allocation6 + $0x40] sm:$0xff]  }
 0x110   : > { %6556 = vmatmul.mubr.msk.bf16.gmra.mxu0 %vm1401_vm9, %v5984_v27  ;;  %v2975_v20 = vrot.slane %v2973_v50, 5  ;;  %v8069_v11 = vrot.slane %v2979_v45, 5  ;;  %v2983_v27 = vshrl.u32 %v8046_v40, 16  ;;  %v2952_v60 = vor.u32 %v2951_v33, %v2948_v39  ;;  %9919 = vst [vmem:[#allocation19_spill] sm:$0xff] %v8096_v13  ;;  %v8105_v45 = vld [vmem:[#allocation2 + $0x80] sm:$0x1] }
 0x111   : > { %6595 = vmatprep.mubr.msk.bf16.mxu0 %vm1401_vm9, %v7989_v34  ;;  %v2962_v23 = vor.u32 %v2961_v6, %v8059_v38  ;;  %v2965_v34 = vshll.u32 %v8057_v51, 16  ;;  %v2994_v4 = vshrl.u32 %v2756_v63, 16  ;;  %v2997_v7 = vshll.u32 %v2756_v63, 16  ;;  %v6849_v6 = vld [vmem:[#allocation2 + $0xc] sm:$0xff]  }
 0x112   : > { %v2976_v59 = vor.u32 %v2975_v20, %v2972_v56  ;;  %v2985_v44 = vrot.slane %v2983_v27, 4  ;;  %v9917_v42 = vcombine.low %v7554_v19, %v7559_v30  ;;  %v8081_v48 = vcombine.low %v2886_v55, %v2896_v5  ;;  %v2759_v5 = vld [vmem:[#allocation2 + $0x84] sm:$0xf]  ;;  %v2762_v27 = vld [vmem:[#allocation2 + $0x90] sm:$0xf] }
 0x113   : > { %v2989_v41 = vshll.u32 %v8063_v28, 16  ;;  %v3003_v29 = vshll.u32 %v8072_v53, 16  ;;  %v3007_v3 = vshrl.u32 %v8072_v53, 16  ;;  %v9918_v22 = vcombine.low %v7648_v36, %v7659_v49  ;;  %v8098_v36 = vld [vmem:[#allocation2 + $0x88] sm:$0xf] }
 0x114   : > { %v2910_v8 = vsel %vm7252_vm10, %v2905_v24, %v8024_v12  ;;  %v2920_v19 = vsel %vm7252_vm10, %v2915_v47, %v2919_v46  ;;  %v2943_v30 = vrot.slane %v2941_v21, 5  ;;  %v2986_v55 = vor.u32 %v2985_v44, %v8069_v11 }
 0x115   : > { %6518 = vmatmul.mubr.msk.bf16.gmra.mxu1 %vm1401_vm9, %v9917_v42  ;;  %v2929_v39 = vrot.slane %v2928_v43, 4  ;;  %v2939_v33 = vrot.slane %v2938_v31, 4  ;;  %v2953_v18 = vrot.slane %v2952_v60, 4  ;;  %v2967_v52 = vrot.slane %v2965_v34, 5  ;;  %v8137_v42 = vld [vmem:[#allocation2 + $0x8c] sm:$0x1] }
 0x116   : > { %6521 = vmatprep.mubr.msk.bf16.mxu1 %vm1401_vm9, %v9918_v22  ;;  %v2963_v49 = vrot.slane %v2962_v23, 4  ;;  %v2977_v12 = vrot.slane %v2976_v59, 4  ;;  %v2996_v63 = vrot.slane %v2994_v4, 4  ;;  %v2999_v24 = vrot.slane %v2997_v7, 5  ;;  %v8122_v23 = vld [vmem:[#allocation2 + $0x94] sm:$0xf] }
 0x117   : > { %v2987_v46 = vrot.slane %v2986_v55, 4  ;;  %v2991_v50 = vrot.slane %v2989_v41, 5  ;;  %v8107_v47 = vrot.slane %v3003_v29, 5  ;;  %v3009_v21 = vrot.slane %v3007_v3, 4 }
 0x118   : > { %6596 = vmatmul.mubr.msk.bf16.vlgmr.msra.gmra.mxu0 %vm1401_vm9, %v8029_v37  ;;  %v8109_v56 = vcombine.low %v2910_v8, %v2920_v19  ;;  %v3018_v37 = vshrl.u32 %v2759_v5, 16  ;;  %v3021_v43 = vshll.u32 %v2759_v5, 16  ;;  %v3027_v20 = vshll.u32 %v8098_v36, 16  ;;  %v8144_v5 = vld [vmem:[#allocation2 + $0xa0] sm:$0xf] }
 0x119   : > { %6662 = vmatpush3.bf16.msra.mxu0 %v7714_v17  ;;  %6599 = vmatprep.mubr.msk.bf16.mxu0 %vm1401_vm9, %v8031_v9  ;;  %v2934_v17 = vsel %vm7252_vm10, %v2929_v39, %v8044_v57  ;;  %v2944_v9 = vsel %vm7252_vm10, %v2939_v33, %v2943_v30  ;;  %v2958_v31 = vsel %vm7252_vm10, %v2953_v18, %v8059_v38  ;;  %v3031_v60 = vshrl.u32 %v8098_v36, 16  ;;  %v6851_v39 = vld [vmem:[#allocation2 + $0x18] sm:$0xff]  }
 0x11a   : > { %6729 = vmatprep.subr.bf16.mxu0 %v8096_v13  ;;  %v2968_v34 = vsel %vm7252_vm10, %v2963_v49, %v2967_v52  ;;  %v2982_v59 = vsel %vm7252_vm10, %v2977_v12, %v8069_v11  ;;  %v3000_v44 = vor.u32 %v2999_v24, %v2996_v63  ;;  %v3013_v57 = vshll.u32 %v8105_v45, 16  ;;  %v8153_v12 = vld [vmem:[#allocation2 + $0x98] sm:$0x1] }
 0x11b   : > { %v9920_v4 = vcombine.low %v7685_v0, %v7690_v16  ;;  %v2992_v38 = vsel %vm7252_vm10, %v2987_v46, %v2991_v50  ;;  %v3010_v7 = vor.u32 %v3009_v21, %v8107_v47  ;;  %v3042_v41 = vshrl.u32 %v2762_v27, 16  ;;  %v2765_v0 = vld [vmem:[#allocation2 + $0x9c] sm:$0xf]  ;;  %v2768_v21 = vld [vmem:[#allocation2 + $0xa8] sm:$0xf] }
 0x11c   : > { %v3045_v29 = vshll.u32 %v2762_v27, 16  ;;  %v3020_v11 = vrot.slane %v3018_v37, 4  ;;  %v3023_v3 = vrot.slane %v3021_v43, 5  ;;  %v8140_v22 = vrot.slane %v3027_v20, 5 }
 0x11d   : > { %6522 = vmatmul.mubr.msk.bf16.gmra.mxu1 %vm1401_vm9, %v9920_v4  ;;  %v3051_v8 = vshll.u32 %v8122_v23, 16  ;;  %v3033_v16 = vrot.slane %v3031_v60, 4  ;;  %v3044_v19 = vrot.slane %v3042_v41, 4  ;;  %v3055_v55 = vshrl.u32 %v8122_v23, 16  ;;  %v8170_v60 = vld [vmem:[#allocation6 + $0x38] sm:$0xff]  }
 0x11e   : > { %6561 = vmatprep.mubr.msk.bf16.mxu1 %vm1401_vm9, %v6849_v6  ;;  %v3047_v30 = vrot.slane %v3045_v29, 5  ;;  %v6041_v33 = vcombine.low %v2934_v17, %v2944_v9  ;;  %v8148_v18 = vcombine.low %v2958_v31, %v2968_v34  ;;  %v8150_v52 = vrot.slane %v3000_v44, 4  ;;  %v6853_v6 = vld [vmem:[#allocation2 + $0x24] sm:$0xff]   ;;  %v8168_v31 = vld [vmem:[#allocation2 + $0xac] sm:$0xf]  ;;  %9921 = vst [vmem:[#allocation20_spill] sm:$0xff] %v8170_v60 }
 0x11f   : > { %v3037_v49 = vshll.u32 %v8137_v42, 16  ;;  %v8157_v63 = vrot.slane %v3051_v8, 5  ;;  %v3057_v24 = vrot.slane %v3055_v55, 4  ;;  %v3066_v46 = vshrl.u32 %v2765_v0, 16 }
 0x120   : > { %6600 = vmatmul.mubr.msk.bf16.gmra.mxu0 %vm1401_vm9, %v8033_v35  ;;  %v3069_v50 = vshll.u32 %v2765_v0, 16  ;;  %v8159_v35 = vcombine.low %v2982_v59, %v2992_v38  ;;  %v8161_v37 = vrot.slane %v3013_v57, 5  ;;  %v3024_v43 = vor.u32 %v3023_v3, %v3020_v11  ;;  %v8181_v38 = vld [vmem:[#allocation2 + $0xa4] sm:$0x1] }
 0x121   : > { %6603 = vmatprep.mubr.msk.bf16.mxu0 %vm1401_vm9, %v8081_v48  ;;  %v3075_v20 = vshll.u32 %v8144_v5, 16  ;;  %v8164_v27 = vrot.slane %v3010_v7, 4  ;;  %v3034_v17 = vor.u32 %v3033_v16, %v8140_v22  ;;  %v3048_v9 = vor.u32 %v3047_v30, %v3044_v19  ;;  %v2771_v16 = vld [vmem:[#allocation2 + $0xb4] sm:$0xf] }
 0x122   : > { %v3061_v48 = vshll.u32 %v8153_v12, 16  ;;  %v8176_v59 = vrot.slane %v3037_v49, 5  ;;  %v3079_v44 = vshrl.u32 %v8144_v5, 16  ;;  %v3090_v57 = vshrl.u32 %v2768_v21, 16 }
 0x123   : > { %v3058_v4 = vor.u32 %v3057_v24, %v8157_v63  ;;  %v3068_v7 = vrot.slane %v3066_v46, 4  ;;  %v3071_v41 = vrot.slane %v3069_v50, 5  ;;  %v3093_v29 = vshll.u32 %v2768_v21, 16  ;;  %v8205_v21 = vld [vmem:[#allocation2 + $0xb8] sm:$0xf] }
 0x124   : > { %v8185_v11 = vrot.slane %v3024_v43, 4  ;;  %v8187_v3 = vrot.slane %v3075_v20, 5  ;;  %v3081_v8 = vrot.slane %v3079_v44, 4  ;;  %v3099_v0 = vshll.u32 %v8168_v31, 16  ;;  %9922 = vst [vmem:[#allocation21_spill] sm:$0xff] %v8205_v21 }
 0x125   : > { %6562 = vmatmul.mubr.msk.bf16.vlgmr.msra.gmra.mxu1 %vm1401_vm9, %v6851_v39  ;;  %v8190_v19 = vrot.slane %v3034_v17, 4  ;;  %v8192_v30 = vrot.slane %v3048_v9, 4  ;;  %v8194_v55 = vrot.slane %v3061_v48, 5  ;;  %v8196_v39 = vld [vmem:[#allocation2 + $0xb0] sm:$0x1]  ;;  %v3085_v49 = vshll.u32 %v8181_v38, 16 }
 0x126   : > { %6628 = vmatpush3.bf16.msra.mxu1 %v7772_v2  ;;  %6565 = vmatprep.mubr.msk.bf16.mxu1 %vm1401_vm9, %v6853_v6  ;;  %v3103_v2 = vshrl.u32 %v8168_v31, 16  ;;  %v3092_v24 = vrot.slane %v3090_v57, 4  ;;  %v3095_v46 = vrot.slane %v3093_v29, 5  ;;  %v8203_v50 = vrot.slane %v3099_v0, 5  ;;  %v6854_v6 = vld [vmem:[#allocation2 + $0x30] sm:$0xff]   ;;  %v6855_v48 = vld [vmem:[#allocation2 + $0x3c] sm:$0xff]  }
 0x127   : > { %6695 = vmatprep.subr.bf16.mxu1 %v8170_v60  ;;  %v3059_v43 = vrot.slane %v3058_v4, 4  ;;  %v3072_v20 = vor.u32 %v3071_v41, %v3068_v7  ;;  %v3114_v9 = vshrl.u32 %v2771_v16, 16  ;;  %v3082_v44 = vor.u32 %v3081_v8, %v8187_v3  ;;  %v359_v41 = vld [vmem:[#allocation2 + $0xc8] sm:$0x1]  ;;  %v396_v60 = vld [vmem:[%s7202_s27 + $0x7c] sm:$0xf] }
 0x128   : > { %6604 = vmatmul.mubr.msk.bf16.gmra.mxu0 %vm1401_vm9, %v8109_v56  ;;  %v3105_v17 = vrot.slane %v3103_v2, 4  ;;  %v3016_v56 = vsel %vm7252_vm10, %v8164_v27, %v8161_v37  ;;  %v3109_v57 = vshll.u32 %v8196_v39, 16  ;;  %v3117_v29 = vshll.u32 %v2771_v16, 16  ;;  %v309_v27 = vld [vmem:[#allocation2 + $0xc0] sm:$0x1] }
 0x129   : > { %6607 = vmatprep.mubr.msk.bf16.mxu0 %vm1401_vm9, %v6041_v33  ;;  %v3030_v33 = vsel %vm7252_vm10, %v8185_v11, %v8140_v22  ;;  %v3040_v4 = vsel %vm7252_vm10, %v8190_v19, %v8176_v59  ;;  %v3123_v7 = vshll.u32 %v8205_v21, 16  ;;  %v3127_v37 = vshrl.u32 %v8205_v21, 16  ;;  %v395_v11 = vld [vmem:[%s7202_s27 + $0x78] sm:$0xf] }
 0x12a   : > { %v3054_v8 = vsel %vm7252_vm10, %v8192_v30, %v8157_v63  ;;  %v3087_v0 = vrot.slane %v3085_v49, 5  ;;  %v3096_v16 = vor.u32 %v3095_v46, %v3092_v24  ;;  %v3106_v22 = vor.u32 %v3105_v17, %v8203_v50  ;;  %v8236_v63 = vld [vmem:[#allocation2 + $0xbc] sm:$0x1] }
 0x12b   : > { %v3064_v59 = vsel %vm7252_vm10, %v3059_v43, %v8194_v55  ;;  %v3073_v19 = vrot.slane %v3072_v20, 4  ;;  %v3116_v2 = vrot.slane %v3114_v9, 4  ;;  %v3119_v34 = vrot.slane %v3117_v29, 5 }
 0x12c   : > { %v3083_v13 = vrot.slane %v3082_v44, 4  ;;  %v3111_v21 = vrot.slane %v3109_v57, 5  ;;  %v310_v49 = vsel %vm7220_vm4, 0, %v309_v27  ;;  %v360_v46 = vsel %vm7232_vm8, 0, %v359_v41  ;;  %v6856_v57 = vld [vmem:[#allocation2 + $0x48] sm:$0xff]  }
 0x12d   : > { %6566 = vmatmul.mubr.msk.bf16.gmra.mxu1 %vm1401_vm9, %v6854_v6  ;;  %v8242_v6 = vrot.slane %v3123_v7, 5  ;;  %v3129_v17 = vrot.slane %v3127_v37, 4  ;;  %311 = vst [vmem:[#allocation2 + $0xc0] sm:$0x1] %v310_v49  ;;  %361 = vst [vmem:[#allocation2 + $0xc8] sm:$0x1] %v360_v46  ;;  %v9925_v29 = vsel %vm7252_vm10, %v8150_v52, %v8107_v47  ;;  %v3120_v37 = vor.u32 %v3119_v34, %v3116_v2 }
 0x12e   : > { %6569 = vmatprep.mubr.msk.bf16.mxu1 %vm1401_vm9, %v6855_v48  ;;  %v655_v55 = vshrl.u32 %v395_v11, 16  ;;  %v658_v43 = vshll.u32 %v395_v11, 16  ;;  %v3097_v20 = vrot.slane %v3096_v16, 4  ;;  %v3107_v9 = vrot.slane %v3106_v22, 4  ;;  %v6857_v11 = vld [vmem:[#allocation2 + $0x54] sm:$0xff]  }
 0x12f   : > { %v663_v48 = vshrl.u32 %v396_v60, 16  ;;  %v666_v44 = vshll.u32 %v396_v60, 16  ;;  %v6044_v7 = vcombine.low %v9925_v29, %v3016_v56  ;;  %v3133_v27 = vshll.u32 %v8236_v63, 16  ;;  %v3462_v56 = vld [vmem:[#allocation2 + $0x30] sm:$0xe] }
 0x130   : > { %6608 = vmatmul.mubr.msk.bf16.gmra.mxu0 %vm1401_vm9, %v8148_v18  ;;  %v657_v41 = vrot.slane %v655_v55, 7  ;;  %v6045_v18 = vcombine.low %v3030_v33, %v3040_v4  ;;  %v8254_v16 = vcombine.low %v3054_v8, %v3064_v59  ;;  %v3078_v60 = vsel %vm7252_vm10, %v3073_v19, %v8187_v3 }
 0x131   : > { %6611 = vmatprep.mubr.msk.bf16.mxu0 %vm1401_vm9, %v8159_v35  ;;  %v665_v22 = vrot.slane %v663_v48, 7  ;;  %v3461_v35 = vld [vmem:[#allocation2 + $0x24] sm:$0xe]  ;;  %v3088_v49 = vsel %vm7252_vm10, %v3083_v13, %v3087_v0  ;;  %v3130_v47 = vor.u32 %v3129_v17, %v8242_v6  ;;  %v3102_v33 = vsel %vm7252_vm10, %v3097_v20, %v8203_v50  ;;  %v3463_v0 = vld [vmem:[#allocation2 + $0x3c] sm:$0xe] }
 0x132   : > { %v660_v52 = vor.u32 %v658_v43, %v657_v41  ;;  %v661_v34 = vrot.slane %v657_v41, 4  ;;  %v3112_v4 = vsel %vm7252_vm10, %v3107_v9, %v3111_v21  ;;  %v3121_v3 = vrot.slane %v3120_v37, 4 }
 0x133   : > { %v668_v8 = vor.u32 %v666_v44, %v665_v22  ;;  %v670_v59 = vrot.slane %v665_v22, 4  ;;  %v3135_v19 = vrot.slane %v3133_v27, 5  ;;  %v6070_v2 = vrot.slane %v3461_v35, 9  ;;  %v9928_v27 = vld [vmem:[#allocation16_spill] sm:$0xff]  ;;  %v9930_v22 = vld [vmem:[#allocation18_spill] sm:$0xff] }
 0x134   : > { %v3539_v13 = vrot.slane %v7889_v1, 5  ;;  %v8270_v24 = vcombine.low %v3078_v60, %v3088_v49  ;;  %v826_v17 = vld [vmem:[#allocation2 + $0xc0] sm:$0xf]  ;;  %v830_v55 = vld [vmem:[#allocation2 + $0xc8] sm:$0x1]  ;;  %v3542_v21 = vrot.slane %v7918_v54, 5  ;;  %v8275_v20 = vcombine.low %v3102_v33, %v3112_v4 }
 0x135   : > { %6570 = vmatmul.mubr.msk.bf16.gmra.mxu1 %vm1401_vm9, %v6856_v57  ;;  %v669_v50 = vsel %vm7272_vm12, %v661_v34, %v668_v8  ;;  %v6071_v43 = vrot.slane %v3462_v56, 9  ;;  %v3131_v9 = vrot.slane %v3130_v47, 4  ;;  %v827_v44 = vsel %vm7265_vm11, %v660_v52, %v826_v17  ;;  %v6858_v57 = vld [vmem:[#allocation2 + $0x60] sm:$0xff]   ;;  %v3464_v49 = vld [vmem:[#allocation2 + $0x48] sm:$0xe]  ;;  %v6859_v47 = vld [vmem:[#allocation2 + $0x6c] sm:$0xff]  }
 0x136   : > { %6573 = vmatprep.mubr.msk.bf16.mxu1 %vm1401_vm9, %v6857_v11  ;;  %829 = vst.msk [vmem:[#allocation2 + $0xc4] sm:$0xf] %vm251_vm0, %v669_v50  ;;  %v831_v1 = vsel %vm7220_vm4, %v670_v59, %v830_v55  ;;  %828 = vst [vmem:[#allocation2 + $0xc0] sm:$0xf] %v827_v44  ;;  %v3525_v29 = vrot.slane %v7851_v25, 5  ;;  %v8286_v54 = vsel %vm7643_vm15, %v6070_v2, %v3539_v13  ;;  %v3541_v37 = vrot.slane %v3539_v13, 4 }
 0x137   : > { %832 = vst [vmem:[#allocation2 + $0xc8] sm:$0x1] %v831_v1  ;;  %v3546_v41 = vrot.slane %v9928_v27, 5  ;;  %v9929_v11 = vld [vmem:[#allocation17_spill] sm:$0xff]  ;;  %v6072_v30 = vrot.slane %v3463_v0, 9  ;;  %v3553_v35 = vrot.slane %v9930_v22, 5  ;;  %v3126_v52 = vsel %vm7252_vm10, %v3121_v3, %v8242_v6 }
 0x138   : > { %6612 = vmatmul.mubr.msk.bf16.gmra.mxu0 %vm1401_vm9, %v6044_v7  ;;  %v3549_v60 = vrot.slane %v9929_v11, 5  ;;  %v3556_v7 = vrot.slane %v7976_v14, 5  ;;  %v8298_v34 = vsel %vm7643_vm15, %v3541_v37, %v3542_v21  ;;  %v3465_v33 = vld [vmem:[#allocation2 + $0x54] sm:$0xe]  ;;  %v3136_v4 = vsel %vm7252_vm10, %v3131_v9, %v3135_v19  ;;  %v3466_v17 = vld [vmem:[#allocation2 + $0x60] sm:$0xe] }
 0x139   : > { %6615 = vmatprep.mubr.msk.bf16.mxu0 %vm1401_vm9, %v6045_v18  ;;  %v8302_v18 = vsel %vm7643_vm15, %v6071_v43, %v3546_v41  ;;  %v3548_v56 = vrot.slane %v3546_v41, 4  ;;  %v6086_v14 = vcombine.low %v8286_v54, %v8298_v34  ;;  %v8310_v8 = vsel %vm7643_vm15, %v6072_v30, %v3553_v35  ;;  %v3467_v37 = vld [vmem:[#allocation2 + $0x6c] sm:$0xe]  ;;  %v6860_v27 = vld [vmem:[#allocation2 + $0x78] sm:$0xff]   ;;  %v6861_v30 = vld [vmem:[#allocation2 + $0x84] sm:$0xff]  }
 0x13a   : > { %v3555_v6 = vrot.slane %v3553_v35, 4  ;;  %v6073_v3 = vrot.slane %v3464_v49, 9  ;;  %v3560_v2 = vrot.slane %v7966_v26, 5  ;;  %v3563_v13 = vrot.slane %v8011_v62, 5 }
 0x13b   : > { %v8314_v59 = vsel %vm7643_vm15, %v3548_v56, %v3549_v60  ;;  %v6074_v46 = vrot.slane %v3465_v33, 9  ;;  %v3567_v50 = vrot.slane %v8001_v58, 5  ;;  %v3570_v43 = vrot.slane %v8036_v61, 5 }
 0x13c   : > { %v6087_v19 = vcombine.low %v8302_v18, %v8314_v59  ;;  %v8323_v0 = vsel %vm7643_vm15, %v3555_v6, %v3556_v7  ;;  %v8333_v62 = vsel %vm7643_vm15, %v6073_v3, %v3560_v2  ;;  %v3562_v21 = vrot.slane %v3560_v2, 4 }
 0x13d   : > { %6574 = vmatmul.mubr.msk.bf16.gmra.mxu1 %vm1401_vm9, %v6858_v57  ;;  %v8327_v55 = vld [vmem:[#allocation2 + $0xc4] sm:$0xf]  ;;  %v6049_v9 = vcombine.low %v3126_v52, %v3136_v4  ;;  %v2774_v48 = vld [vmem:[#allocation2 + $0xc0] sm:$0xf]  ;;  %v8342_v57 = vsel %vm7643_vm15, %v6074_v46, %v3567_v50  ;;  %v3569_v49 = vrot.slane %v3567_v50, 4  ;;  %v6075_v56 = vrot.slane %v3466_v17, 9 }
 0x13e   : > { %6577 = vmatprep.mubr.msk.bf16.mxu1 %vm1401_vm9, %v6859_v47  ;;  %v8336_v44 = vld [vmem:[#allocation2 + $0xc8] sm:$0x1]  ;;  %v3147_v58 = vshll.u32 %v8327_v55, 16  ;;  %v3151_v1 = vshrl.u32 %v8327_v55, 16  ;;  %v3138_v41 = vshrl.u32 %v2774_v48, 16  ;;  %v3141_v11 = vshll.u32 %v2774_v48, 16 }
 0x13f   : > { %v3157_v61 = vshll.u32 %v8336_v44, 16  ;;  %v8349_v60 = vsel %vm7643_vm15, %v3562_v21, %v3563_v13  ;;  %v8357_v4 = vsel %vm7643_vm15, %v3569_v49, %v3570_v43  ;;  %v3574_v6 = vrot.slane %v8013_v15, 5  ;;  %v3469_v48 = vld [vmem:[#allocation2 + $0x84] sm:$0xe] }
 0x140   : > { %6616 = vmatmul.mubr.msk.bf16.gmra.mxu0 %vm1401_vm9, %v8254_v16  ;;  %v3149_v22 = vrot.slane %v3147_v58, 5  ;;  %v3153_v35 = vrot.slane %v3151_v1, 4  ;;  %v3140_v47 = vrot.slane %v3138_v41, 4  ;;  %v3143_v16 = vrot.slane %v3141_v11, 5  ;;  %v3470_v11 = vld [vmem:[#allocation2 + $0x90] sm:$0xe] }
 0x141   : > { %6619 = vmatprep.mubr.msk.bf16.mxu0 %vm1401_vm9, %v8270_v24  ;;  %v3159_v52 = vrot.slane %v3157_v61, 5  ;;  %v3577_v3 = vrot.slane %v8057_v51, 5  ;;  %v3468_v24 = vld [vmem:[#allocation2 + $0x78] sm:$0xe]  ;;  %v6076_v46 = vrot.slane %v3467_v37, 9  ;;  %v3581_v50 = vrot.slane %v8046_v40, 5 }
 0x142   : > { %v3154_v33 = vor.u32 %v3153_v35, %v3149_v22  ;;  %v3144_v2 = vor.u32 %v3143_v16, %v3140_v47  ;;  %v8367_v21 = vsel %vm7643_vm15, %v6075_v56, %v3574_v6  ;;  %v3576_v43 = vrot.slane %v3574_v6, 4  ;;  %v3471_v47 = vld [vmem:[#allocation2 + $0x9c] sm:$0xe]  ;;  %v6862_v16 = vld [vmem:[#allocation2 + $0x90] sm:$0xff]  }
 0x143   : > { %v3584_v15 = vrot.slane %v8063_v28, 5  ;;  %v8373_v58 = vsel %vm7643_vm15, %v6076_v46, %v3581_v50  ;;  %v3583_v1 = vrot.slane %v3581_v50, 4  ;;  %v6077_v40 = vrot.slane %v3468_v24, 9  ;;  %v3472_v50 = vld [vmem:[#allocation2 + $0xa8] sm:$0xe] }
 0x144   : > { %v3155_v17 = vrot.slane %v3154_v33, 4  ;;  %v3145_v51 = vrot.slane %v3144_v2, 4  ;;  %v3588_v41 = vrot.slane %v8072_v53, 5  ;;  %v3591_v28 = vrot.slane %v8105_v45, 5 }
 0x145   : > { %6578 = vmatmul.mubr.msk.bf16.gmra.mxu1 %vm1401_vm9, %v6860_v27  ;;  %v8379_v27 = vsel %vm7643_vm15, %v3576_v43, %v3577_v3  ;;  %v8391_v35 = vsel %vm7643_vm15, %v3583_v1, %v3584_v15  ;;  %v6078_v49 = vrot.slane %v3469_v48, 9  ;;  %v3595_v56 = vrot.slane %v8098_v36, 5  ;;  %v3473_v43 = vld [vmem:[#allocation2 + $0xb4] sm:$0xe] }
 0x146   : > { %6581 = vmatprep.mubr.msk.bf16.mxu1 %vm1401_vm9, %v6861_v30  ;;  %v3160_v37 = vsel %vm7252_vm10, %v3155_v17, %v3159_v52  ;;  %v3150_v61 = vsel %vm7252_vm10, %v3145_v51, %v3149_v22  ;;  %v3590_v22 = vrot.slane %v3588_v41, 4  ;;  %v6863_v52 = vld [vmem:[#allocation2 + $0x9c] sm:$0xff]   ;;  %v3598_v33 = vrot.slane %v8137_v42, 5 }
 0x147   : > { %v6050_v53 = vcombine.low %v3150_v61, %v3160_v37  ;;  %v6079_v6 = vrot.slane %v3470_v11, 9  ;;  %v3602_v3 = vrot.slane %v8122_v23, 5  ;;  %v3605_v24 = vrot.slane %v8153_v12, 5  ;;  %v6867_v12 = vld [vmem:[#allocation2 + $0x18] sm:$0xff]   ;;  %v3459_v11 = vld [vmem:[#allocation2 + $0xc] sm:$0xe] }
 0x148   : > { %6620 = vmatmul.mubr.msk.bf16.gmra.mxu0 %vm1401_vm9, %v8275_v20  ;;  %v8398_v20 = vsel %vm7643_vm15, %v6077_v40, %v3588_v41  ;;  %v6080_v2 = vrot.slane %v3471_v47, 9  ;;  %v3609_v46 = vrot.slane %v8144_v5, 5  ;;  %v8413_v36 = vsel %vm7643_vm15, %v6078_v49, %v3595_v56  ;;  %v4303_v61 = vld [vmem:[#allocation2 + $0x34] sm:$0xf] }
 0x149   : > { %6623 = vmatprep.mubr.msk.bf16.mxu0 %vm1401_vm9, %v6049_v9  ;;  %v8405_v9 = vsel %vm7643_vm15, %v3590_v22, %v3591_v28  ;;  %v3597_v42 = vrot.slane %v3595_v56, 4  ;;  %v8417_v23 = vsel %vm7643_vm15, %v6079_v6, %v3602_v3  ;;  %v3604_v15 = vrot.slane %v3602_v3, 4  ;;  %v3474_v28 = vld [vmem:[#allocation2 + $0xc0] sm:$0xe]  ;;  %v9931_v56 = vld [vmem:[#allocation21_spill] sm:$0xff] }
 0x14a   : > { %v8422_v5 = vsel %vm7643_vm15, %v6080_v2, %v3609_v46  ;;  %v3611_v48 = vrot.slane %v3609_v46, 4  ;;  %v3612_v51 = vrot.slane %v8181_v38, 5  ;;  %v6081_v40 = vrot.slane %v3472_v50, 9  ;;  %v6904_v46 = vld [vmem:[#allocation2 + $0x14] sm:$0x1] }
 0x14b   : > { %v8428_v1 = vsel %vm7643_vm15, %v3597_v42, %v3598_v33  ;;  %v3616_v37 = vrot.slane %v8168_v31, 5  ;;  %v3619_v41 = vrot.slane %v8196_v39, 5  ;;  %v8436_v49 = vsel %vm7643_vm15, %v3604_v15, %v3605_v24  ;;  %v6865_v24 = vld [vmem:[#allocation2 + $0xb4] sm:$0xff]   ;;  %v5027_v15 = vld [vmem:[#allocation2 + $0x24] sm:$0xe] }
 0x14c   : > { %v8440_v38 = vsel %vm7643_vm15, %v3611_v48, %v3612_v51  ;;  %v6082_v47 = vrot.slane %v3473_v43, 9  ;;  %v3623_v33 = vrot.slane %v9931_v56, 5  ;;  %v3626_v6 = vrot.slane %v8236_v63, 5  ;;  %v6868_v48 = vld [vmem:[#allocation2 + $0x24] sm:$0xff]   ;;  %v3460_v56 = vld [vmem:[#allocation2 + $0x18] sm:$0xe] }
 0x14d   : > { %6582 = vmatmul.mubr.msk.bf16.gmra.mxu1 %vm1401_vm9, %v6862_v16  ;;  %v8449_v16 = vsel %vm7643_vm15, %v6081_v40, %v3616_v37  ;;  %v3618_v22 = vrot.slane %v3616_v37, 4  ;;  %v6083_v3 = vrot.slane %v3474_v28, 9  ;;  %v6068_v2 = vrot.slane %v3459_v11, 9  ;;  %v4301_v39 = vld [vmem:[#allocation2 + $0x2c] sm:$0x1] }
 0x14e   : > { %6585 = vmatprep.mubr.msk.bf16.mxu1 %vm1401_vm9, %v6863_v52  ;;  %v6864_v52 = vld [vmem:[#allocation2 + $0xa8] sm:$0xff]   ;;  %v3528_v50 = vrot.slane %v6904_v46, 5  ;;  %v3633_v43 = vrot.slane %v8336_v44, 5  ;;  %v8466_v63 = vsel %vm7643_vm15, %v6082_v47, %v3623_v33  ;;  %v6871_v44 = vld [vmem:[#allocation2 + $0x30] sm:$0xff]   ;;  %v6906_v46 = vld [vmem:[#allocation2 + $0x20] sm:$0x1] }
 0x14f   : > { %v8457_v42 = vsel %vm7643_vm15, %v3618_v22, %v3619_v41  ;;  %v6905_v41 = vld [vmem:[#allocation2 + $0x1c] sm:$0xf]  ;;  %v3526_v22 = vsel %vm7643_vm15, %v6068_v2, %v3525_v29  ;;  %v6873_v2 = vld [vmem:[#allocation2 + $0x48] sm:$0xff]   ;;  %v6184_v34 = vrot.slane %v5027_v15, 9  ;;  %v5102_v45 = vrot.slane %v4301_v39, 5 }
 0x150   : > { %6624 = vmatmul.mubr.msk.bf16.gmra.mxu0 %vm1401_vm9, %v6050_v53  ;;  %v3630_v53 = vrot.slane %v8327_v55, 5  ;;  %v3625_v55 = vrot.slane %v3623_v33, 4  ;;  %v3532_v28 = vrot.slane %v6905_v41, 5  ;;  %vm5699_vm0 = vcmask 519168  }
 0x151   : > { %6663 = vmatprep.mubr.msk.bf16.mxu0 %vm1401_vm9, %v6867_v12  ;;  %v3527_v12 = vrot.slane %v3525_v29, 4  ;;  %v6872_v29 = vld [vmem:[#allocation2 + $0x3c] sm:$0xff]  }
 0x152   : > { %v8470_v51 = vsel %vm7643_vm15, %v6083_v3, %v3630_v53  ;;  %v3632_v40 = vrot.slane %v3630_v53, 4  ;;  %v8475_v37 = vsel %vm7643_vm15, %v3625_v55, %v3626_v6  ;;  %v6866_v6 = vld [vmem:[#allocation2 + $0xc0] sm:$0xff]   ;;  %v9933_v3 = vld [vmem:[#allocation19_spill] sm:$0xff]  ;;  %v3534_v25 = vrot.slane %v3532_v28, 4 }
 0x153   : > { %v4296_v55 = vld [vmem:[#allocation2 + $0x18] sm:$0xf] }
 0x154   : > { %v8482_v47 = vsel %vm7643_vm15, %v3632_v40, %v3633_v43  ;;  %v3535_v43 = vrot.slane %v6906_v46, 5  ;;  %v8502_v40 = vpop.f32.mrf.mxu0  ;;  %v4345_v41 = vshrl.u32 %v4296_v55, 16  ;;  %v4300_v46 = vld [vmem:[#allocation2 + $0x28] sm:$0xf] }
 0x155   : > { %6586 = vmatmul.mubr.msk.bf16.gmra.mxu1 %vm1401_vm9, %v6864_v52  ;;  %9932 = vst [vmem:[#allocation12_spill] sm:$0xff] %v8482_v47  ;;  %v3529_v52 = vsel %vm7643_vm15, %v3527_v12, %v3528_v50  ;;  %9934 = vst [vmem:[#allocation13_spill] sm:$0xff] %v8502_v40  ;;  %v4378_v30 = vshll.u32 %v4300_v46, 16 }
 0x156   : > { %6589 = vmatprep.mubr.msk.bf16.mxu1 %vm1401_vm9, %v6865_v24  ;;  %v6084_v53 = vcombine.low %v3526_v22, %v3529_v52  ;;  %v6069_v24 = vrot.slane %v3460_v56, 9  ;;  %v3536_v12 = vsel %vm7643_vm15, %v3534_v25, %v3535_v43  ;;  %v4348_v22 = vshll.u32 %v4296_v55, 16  ;;  %v5026_v43 = vld [vmem:[#allocation2 + $0x18] sm:$0xe] }
 0x158   : > { %6664 = vmatmul.mubr.msk.bf16.vlgmr.msra.gmra.mxu0 %vm1401_vm9, %v6868_v48  ;;  %v3533_v50 = vsel %vm7643_vm15, %v6069_v24, %v3532_v28  ;;  %v4297_v48 = vld [vmem:[#allocation2 + $0x1c] sm:$0xf]  ;;  %v8505_v28 = vpop.f32.mrf.mxu0  ;;  %v4298_v24 = vld [vmem:[#allocation2 + $0x20] sm:$0x1]  ;;  %v4350_v33 = vrot.slane %v4348_v22, 5 }
 0x159   : > { %6730 = vmatpush3.bf16.msra.mxu0 %v9933_v3  ;;  %6667 = vmatprep.mubr.msk.bf16.mxu0 %vm1401_vm9, %v6871_v44  ;;  %v6085_v44 = vcombine.low %v3533_v50, %v3536_v12  ;;  %v4354_v52 = vshll.u32 %v4297_v48, 16  ;;  %v4358_v56 = vshrl.u32 %v4297_v48, 16  ;;  %v6874_v3 = vld [vmem:[#allocation2 + $0x54] sm:$0xff]   ;;  %9935 = vst [vmem:[#allocation15_spill] sm:$0xff] %v8505_v28  ;;  %v5092_v25 = vrot.slane %v4297_v48, 5 }
 0x15a   : > { %v5099_v48 = vrot.slane %v4300_v46, 5  ;;  %v4364_v31 = vshll.u32 %v4298_v24, 16 }
 0x15b   : > { %v8513_v55 = vrot.slane %v4354_v52, 5  ;;  %v4360_v11 = vrot.slane %v4358_v56, 4  ;;  %v5094_v22 = vrot.slane %v5092_v25, 4 }
 0x15c   : > { %v5101_v17 = vrot.slane %v5099_v48, 4 }
 0x15d   : > { %6590 = vmatmul.mubr.msk.bf16.gmra.mxu1 %vm1401_vm9, %v6866_v6  ;;  %v4299_v6 = vld [vmem:[#allocation2 + $0x24] sm:$0xf]  ;;  %v4361_v56 = vor.u32 %v4360_v11, %v8513_v55  ;;  %v4406_v11 = vshrl.u32 %v4303_v61, 16 }
 0x15e   : > { %6629 = vmatprep.mubr.msk.bf16.mxu1 %vm1401_vm9, %v6084_v53  ;;  %v6875_v53 = vld [vmem:[#allocation2 + $0x60] sm:$0xff]   ;;  %v4369_v50 = vshrl.u32 %v4299_v6, 16  ;;  %v4372_v12 = vshll.u32 %v4299_v6, 16  ;;  %v5095_v6 = vrot.slane %v4298_v24, 5  ;;  %v8552_v59 = vsel %vm7643_vm15, %v5101_v17, %v5102_v45  ;;  %v4305_v17 = vld [vmem:[#allocation2 + $0x3c] sm:$0xf] }
 0x15f   : > { %v8548_v18 = vrot.slane %v4361_v56, 4 }
 0x160   : > { %6668 = vmatmul.mubr.msk.bf16.gmra.mxu0 %vm1401_vm9, %v6872_v29  ;;  %v4347_v29 = vrot.slane %v4345_v41, 4  ;;  %v6183_v41 = vrot.slane %v5026_v43, 9  ;;  %v4374_v52 = vrot.slane %v4372_v12, 5  ;;  %v6876_v43 = vld [vmem:[#allocation2 + $0x6c] sm:$0xff]   ;;  %v8528_v15 = vsel %vm7643_vm15, %v5094_v22, %v5095_v6 }
 0x161   : > { %6671 = vmatprep.mubr.msk.bf16.mxu0 %vm1401_vm9, %v6873_v2  ;;  %v9936_v2 = vld [vmem:[#allocation20_spill] sm:$0xff]  ;;  %v8538_v12 = vrot.slane %v4364_v31, 5  ;;  %v9940_v22 = vcombine.low %v8310_v8, %v8323_v0  ;;  %v4388_v31 = vshll.u32 %v4301_v39, 16  ;;  %v5106_v0 = vrot.slane %v4303_v61, 5 }
 0x162   : > { %v4351_v54 = vor.u32 %v4350_v33, %v4347_v29  ;;  %v8524_v24 = vsel %vm7643_vm15, %v6183_v41, %v5092_v25  ;;  %v5028_v33 = vld [vmem:[#allocation2 + $0x30] sm:$0xe]  ;;  %v8534_v29 = vpop.f32.mrf.mxu1  ;;  %v8542_v25 = vsel %vm7643_vm15, %v6184_v34, %v5099_v48 }
 0x163   : > { %9939 = vst [vmem:[#allocation17_spill] sm:$0xff] %v8534_v29  ;;  %v6185_v48 = vrot.slane %v5028_v33, 9  ;;  %v8580_v56 = vrot.slane %v4388_v31, 5  ;;  %v5108_v31 = vrot.slane %v5106_v0, 4  ;;  %v4420_v29 = vshll.u32 %v4305_v17, 16 }
 0x164   : > { %v8564_v45 = vpop.f32.mrf.mxu1 }
 0x165   : > { %6630 = vmatmul.mubr.msk.bf16.vlgmr.msra.gmra.mxu1 %vm1401_vm9, %v6085_v44  ;;  %v8516_v44 = vpop.f32.mrf.mxu0  ;;  %9942 = vst [vmem:[#allocation21_spill] sm:$0xff] %v8564_v45  ;;  %v4417_v45 = vshrl.u32 %v4305_v17, 16  ;;  %v9946_v17 = vcombine.low %v8342_v57, %v8357_v4  ;;  %v4422_v4 = vrot.slane %v4420_v29, 5 }
 0x166   : > { %6696 = vmatpush3.bf16.msra.mxu1 %v9936_v2  ;;  %6633 = vmatprep.mubr.msk.bf16.mxu1 %vm1401_vm9, %v6086_v14  ;;  %9937 = vst [vmem:[#allocation14_spill] sm:$0xff] %v8516_v44  ;;  %v4302_v2 = vld [vmem:[#allocation2 + $0x30] sm:$0xf]  ;;  %v4371_v14 = vrot.slane %v4369_v50, 4  ;;  %v8536_v50 = vrot.slane %v4351_v54, 4 }
 0x167   : > { %v4393_v13 = vshrl.u32 %v4302_v2, 16  ;;  %v4396_v7 = vshll.u32 %v4302_v2, 16  ;;  %v8520_v26 = vpop.f32.mrf.mxu0  ;;  %v8556_v2 = vld [vmem:[#allocation2 + $0x38] sm:$0x1]  ;;  %v4419_v57 = vrot.slane %v4417_v45, 4 }
 0x168   : > { %6672 = vmatmul.mubr.msk.bf16.gmra.mxu0 %vm1401_vm9, %v6874_v3  ;;  %v4382_v3 = vshrl.u32 %v4300_v46, 16  ;;  %9938 = vst [vmem:[#allocation16_spill] sm:$0xff] %v8520_v26  ;;  %v6877_v46 = vld [vmem:[#allocation2 + $0x78] sm:$0xff]   ;;  %v4375_v41 = vor.u32 %v4374_v52, %v4371_v14  ;;  %v4408_v52 = vrot.slane %v4406_v11, 4 }
 0x169   : > { %6675 = vmatprep.mubr.msk.bf16.mxu0 %vm1401_vm9, %v6875_v53  ;;  %v4402_v53 = vshll.u32 %v4303_v61, 16  ;;  %v4395_v54 = vrot.slane %v4393_v13, 4  ;;  %v4398_v34 = vrot.slane %v4396_v7, 5  ;;  %v8559_v8 = vpop.f32.mrf.mxu0  ;;  %v5029_v61 = vld [vmem:[#allocation2 + $0x3c] sm:$0xe] }
 0x16a   : > { %v4384_v6 = vrot.slane %v4382_v3, 4  ;;  %9941 = vst [vmem:[#allocation18_spill] sm:$0xff] %v8559_v8  ;;  %v8572_v13 = vrot.slane %v4375_v41, 4  ;;  %v5109_v3 = vrot.slane %v8556_v2, 5  ;;  %v8589_v41 = vld [vmem:[#allocation2 + $0x4c] sm:$0xf] }
 0x16b   : > { %v8561_v14 = vrot.slane %v4402_v53, 5  ;;  %v8586_v53 = vsel %vm7643_vm15, %v6185_v48, %v5106_v0  ;;  %v4399_v11 = vor.u32 %v4398_v34, %v4395_v54  ;;  %v8591_v7 = vpop.f32.mrf.mxu0  ;;  %v8598_v48 = vpop.f32.mrf.mxu1  ;;  %v8604_v34 = vld [vmem:[#allocation2 + $0x44] sm:$0x1] }
 0x16c   : > { %9943 = vst [vmem:[#allocation19_spill] sm:$0xff] %v8591_v7  ;;  %9945 = vst [vmem:[#allocation20_spill] sm:$0xff] %v8598_v48  ;;  %v4454_v48 = vshrl.u32 %v8589_v41, 16  ;;  %v5116_v28 = vrot.slane %v8604_v34, 5  ;;  %v8629_v45 = vsel %vm7643_vm15, %v5108_v31, %v5109_v3  ;;  %v9949_v3 = vcombine.low %v8367_v21, %v8379_v27 }
 0x16d   : > { %6634 = vmatmul.mubr.msk.bf16.gmra.mxu1 %vm1401_vm9, %v6087_v19  ;;  %v8554_v19 = vrot.slane %v4378_v30, 5  ;;  %v6878_v30 = vld [vmem:[#allocation2 + $0x84] sm:$0xff]   ;;  %v4409_v39 = vor.u32 %v4408_v52, %v8561_v14  ;;  %v4400_v26 = vrot.slane %v4399_v11, 4  ;;  %v9952_v21 = vsel %vm7252_vm10, %v8548_v18, %v8538_v12  ;;  %v5031_v12 = vld [vmem:[#allocation2 + $0x54] sm:$0xe] }
 0x16e   : > { %6637 = vmatprep.mubr.msk.bf16.mxu1 %vm1401_vm9, %v9940_v22  ;;  %v4308_v22 = vld [vmem:[#allocation2 + $0x48] sm:$0xf]  ;;  %v9953_v27 = vsel %vm7252_vm10, %v8536_v50, %v8513_v55 }
 0x16f   : > { %v4385_v33 = vor.u32 %v4384_v6, %v8554_v19  ;;  %v9944_v6 = vcombine.low %v8333_v62, %v8349_v60  ;;  %v4381_v54 = vsel %vm7252_vm10, %v8572_v13, %v8554_v19  ;;  %v4441_v62 = vshrl.u32 %v4308_v22, 16  ;;  %v8613_v13 = vpop.f32.mrf.mxu0  ;;  %v5030_v11 = vld [vmem:[#allocation2 + $0x48] sm:$0xe] }
 0x170   : > { %6676 = vmatmul.mubr.msk.bf16.gmra.mxu0 %vm1401_vm9, %v6876_v43  ;;  %v4306_v43 = vld [vmem:[#allocation2 + $0x40] sm:$0xf]  ;;  %v4444_v60 = vshll.u32 %v4308_v22, 16  ;;  %v6186_v19 = vrot.slane %v5029_v61, 9  ;;  %9947 = vst [vmem:[#allocation22_spill] sm:$0xff] %v8613_v13  ;;  %v5120_v61 = vrot.slane %v8589_v41, 5 }
 0x171   : > { %6679 = vmatprep.mubr.msk.bf16.mxu0 %vm1401_vm9, %v6877_v46  ;;  %v4412_v46 = vshll.u32 %v8556_v2, 16  ;;  %v6879_v2 = vld [vmem:[#allocation2 + $0x90] sm:$0xff]   ;;  %v5113_v0 = vrot.slane %v4306_v43, 5  ;;  %v4426_v52 = vshll.u32 %v4306_v43, 16  ;;  %v4430_v7 = vshrl.u32 %v4306_v43, 16 }
 0x172   : > { %v4386_v8 = vrot.slane %v4385_v33, 4  ;;  %v4410_v43 = vrot.slane %v4409_v39, 4  ;;  %v4446_v47 = vrot.slane %v4444_v60, 5  ;;  %v4456_v39 = vrot.slane %v4454_v48, 4 }
 0x173   : > { %v4414_v44 = vrot.slane %v4412_v46, 5  ;;  %v5115_v22 = vrot.slane %v5113_v0, 4  ;;  %v8619_v40 = vrot.slane %v4426_v52, 5  ;;  %v4432_v33 = vrot.slane %v4430_v7, 4  ;;  %v4310_v46 = vld [vmem:[#allocation2 + $0x50] sm:$0x1]  ;;  %v8638_v52 = vpop.f32.mrf.mxu0 }
 0x174   : > { %v4391_v29 = vsel %vm7252_vm10, %v4386_v8, %v8580_v56  ;;  %v4405_v7 = vsel %vm7252_vm10, %v4400_v26, %v8561_v14  ;;  %v4436_v8 = vshll.u32 %v8604_v34, 16  ;;  %v6187_v56 = vrot.slane %v5030_v11, 9  ;;  %v6881_v14 = vld [vmem:[#allocation2 + $0xa8] sm:$0xff]   ;;  %v8686_v11 = vld [vmem:[#allocation2 + $0x5c] sm:$0x1] }
 0x175   : > { %6638 = vmatmul.mubr.msk.bf16.gmra.mxu1 %vm1401_vm9, %v9944_v6  ;;  %v4450_v6 = vshll.u32 %v8589_v41, 16  ;;  %v8636_v41 = vsel %vm7643_vm15, %v6186_v19, %v5113_v0  ;;  %v4415_v48 = vsel %vm7252_vm10, %v4410_v43, %v4414_v44  ;;  %v8651_v31 = vsel %vm7643_vm15, %v5115_v22, %v5116_v28  ;;  %v8678_v55 = vpop.f32.mrf.mxu0 }
 0x176   : > { %6641 = vmatprep.mubr.msk.bf16.mxu1 %vm1401_vm9, %v9946_v17  ;;  %v8616_v17 = vpop.f32.mrf.mxu1  ;;  %v4433_v0 = vor.u32 %v4432_v33, %v8619_v40  ;;  %v5122_v60 = vrot.slane %v5120_v61, 4  ;;  %v5123_v44 = vrot.slane %v4310_v46, 5  ;;  %v9951_v34 = vcombine.low %v8373_v58, %v8391_v35  ;;  %v4311_v58 = vld [vmem:[#allocation2 + $0x54] sm:$0xf] }
 0x177   : > { %9948 = vst [vmem:[#allocation23_spill] sm:$0xff] %v8616_v17  ;;  %v8622_v13 = vrot.slane %v4450_v6, 5  ;;  %v8668_v28 = vcombine.low %v9953_v27, %v9952_v21  ;;  %v4460_v43 = vshll.u32 %v4310_v46, 16  ;;  %v8671_v35 = vcombine.low %v4381_v54, %v4391_v29  ;;  %v8688_v46 = vld [vmem:[#allocation2 + $0x64] sm:$0xf] }
 0x178   : > { %6680 = vmatmul.mubr.msk.bf16.gmra.mxu0 %vm1401_vm9, %v6878_v30  ;;  %v4443_v30 = vrot.slane %v4441_v62, 4  ;;  %v4423_v62 = vor.u32 %v4422_v4, %v4419_v57  ;;  %v8647_v26 = vpop.f32.mrf.mxu1  ;;  %v4312_v57 = vld [vmem:[#allocation2 + $0x58] sm:$0xf]  ;;  %v8675_v22 = vcombine.low %v4405_v7, %v4415_v48  ;;  %v4438_v33 = vrot.slane %v4436_v8, 5  ;;  %v4314_v48 = vld [vmem:[#allocation2 + $0x60] sm:$0xf]  ;;  %v8698_v4 = vpop.f32.mrf.mxu0 }
 0x179   : > { %6683 = vmatprep.mubr.msk.bf16.mxu0 %vm1401_vm9, %v6879_v2  ;;  %v6880_v2 = vld [vmem:[#allocation2 + $0x9c] sm:$0xff]   ;;  %9950 = vst [vmem:[#allocation24_spill] sm:$0xff] %v8647_v26  ;;  %v4457_v19 = vor.u32 %v4456_v39, %v8622_v13  ;;  %v5127_v18 = vrot.slane %v4312_v57, 5  ;;  %v8684_v54 = vsel %vm7643_vm15, %v6187_v56, %v5120_v61  ;;  %v4434_v39 = vrot.slane %v4433_v0, 4 }
 0x17a   : > { %v4447_v6 = vor.u32 %v4446_v47, %v4443_v30  ;;  %v4424_v50 = vrot.slane %v4423_v62, 4  ;;  %v8690_v30 = vpop.f32.mrf.mxu1  ;;  %v8695_v29 = vsel %vm7643_vm15, %v5122_v60, %v5123_v44  ;;  %v4465_v7 = vshrl.u32 %v4311_v58, 16  ;;  %v6882_v47 = vld [vmem:[#allocation2 + $0xb4] sm:$0xff]  }
 0x17b   : > { %9954 = vst [vmem:[#allocation25_spill] sm:$0xff] %v8690_v30  ;;  %v4458_v8 = vrot.slane %v4457_v19, 4  ;;  %v4462_v61 = vrot.slane %v4460_v43, 5  ;;  %v6188_v56 = vrot.slane %v5031_v12, 9  ;;  %v4474_v21 = vshll.u32 %v4312_v57, 16  ;;  %v6883_v43 = vld [vmem:[#allocation2 + $0xc0] sm:$0xff]  }
 0x17c   : > { %v4448_v62 = vrot.slane %v4447_v6, 4  ;;  %v4478_v27 = vshrl.u32 %v4312_v57, 16  ;;  %v4492_v0 = vshll.u32 %v4314_v48, 16  ;;  %v4498_v60 = vshll.u32 %v8688_v46, 16  ;;  %v8706_v19 = vpop.f32.mrf.mxu1 }
 0x17d   : > { %6642 = vmatmul.mubr.msk.bf16.gmra.mxu1 %vm1401_vm9, %v9949_v3  ;;  %v5129_v3 = vrot.slane %v5127_v18, 4  ;;  %v4502_v44 = vshrl.u32 %v8688_v46, 16  ;;  %v9955_v6 = vcombine.low %v8398_v20, %v8405_v9  ;;  %9956 = vst [vmem:[#allocation26_spill] sm:$0xff] %v8706_v19  ;;  %v4429_v57 = vsel %vm7252_vm10, %v4424_v50, %v8619_v40 }
 0x17e   : > { %6645 = vmatprep.mubr.msk.bf16.mxu1 %vm1401_vm9, %v9951_v34  ;;  %v5130_v34 = vrot.slane %v8686_v11, 5  ;;  %v4467_v12 = vrot.slane %v4465_v7, 4  ;;  %v9957_v30 = vcombine.low %v8413_v36, %v8428_v1  ;;  %v4453_v9 = vsel %vm7252_vm10, %v4448_v62, %v8622_v13  ;;  %v8738_v13 = vpop.f32.mrf.mxu0  ;;  %v8740_v62 = vld [vmem:[#allocation2 + $0x68] sm:$0x1] }
 0x17f   : > { %v4463_v40 = vsel %vm7252_vm10, %v4458_v8, %v4462_v61  ;;  %v8726_v50 = vsel %vm7643_vm15, %v6188_v56, %v5127_v18  ;;  %v8732_v1 = vrot.slane %v4474_v21, 5  ;;  %v4484_v7 = vshll.u32 %v8686_v11, 16  ;;  %9958 = vst [vmem:[#allocation27_spill] sm:$0xff] %v8738_v13 }
 0x180   : > { %6684 = vmatmul.mubr.msk.bf16.gmra.mxu0 %vm1401_vm9, %v6880_v2  ;;  %v4468_v2 = vshll.u32 %v4311_v58, 16  ;;  %v4439_v58 = vsel %vm7252_vm10, %v4434_v39, %v4438_v33  ;;  %v5032_v33 = vld [vmem:[#allocation2 + $0x60] sm:$0xe]  ;;  %v4317_v39 = vld [vmem:[#allocation2 + $0x6c] sm:$0xf]  ;;  %v8730_v36 = vsel %vm7643_vm15, %v5129_v3, %v5130_v34  ;;  %v4494_v8 = vrot.slane %v4492_v0, 5  ;;  %v8744_v3 = vpop.f32.mrf.mxu1 }
 0x181   : > { %6687 = vmatprep.mubr.msk.bf16.mxu0 %vm1401_vm9, %v6881_v14  ;;  %v4489_v14 = vshrl.u32 %v4314_v48, 16  ;;  %v8742_v61 = vrot.slane %v4498_v60, 5  ;;  %v4504_v56 = vrot.slane %v4502_v44, 4  ;;  %9959 = vst [vmem:[#allocation28_spill] sm:$0xff] %v8744_v3  ;;  %v6189_v21 = vrot.slane %v5032_v33, 9 }
 0x182   : > { %v4470_v48 = vrot.slane %v4468_v2, 5  ;;  %v8735_v2 = vld [vmem:[#allocation2 + $0x70] sm:$0xf]  ;;  %v4513_v11 = vshrl.u32 %v4317_v39, 16  ;;  %v8752_v0 = vcombine.low %v4453_v9, %v4463_v40  ;;  %v9961_v9 = vcombine.low %v8417_v23, %v8436_v49  ;;  %v8768_v40 = vpop.f32.mrf.mxu1  ;;  %v5033_v49 = vld [vmem:[#allocation2 + $0x6c] sm:$0xe] }
 0x183   : > { %v4491_v18 = vrot.slane %v4489_v14, 4  ;;  %v4522_v20 = vshll.u32 %v8735_v2, 16  ;;  %v4526_v14 = vshrl.u32 %v8735_v2, 16  ;;  %v4505_v33 = vor.u32 %v4504_v56, %v8742_v61  ;;  %9962 = vst [vmem:[#allocation30_spill] sm:$0xff] %v8768_v40 }
 0x184   : > { %v4471_v34 = vor.u32 %v4470_v48, %v4467_v12  ;;  %v8758_v12 = vpop.f32.mrf.mxu0  ;;  %v6884_v48 = vld [vmem:[#allocation2 + $0xcc] sm:$0xff]  }
 0x185   : > { %6646 = vmatmul.mubr.msk.bf16.gmra.mxu1 %vm1401_vm9, %v9955_v6  ;;  %v8747_v6 = vcombine.low %v4429_v57, %v4439_v58  ;;  %9960 = vst [vmem:[#allocation29_spill] sm:$0xff] %v8758_v12  ;;  %v8760_v57 = vrot.slane %v4484_v7, 5  ;;  %v4495_v58 = vor.u32 %v4494_v8, %v4491_v18  ;;  %v4515_v7 = vrot.slane %v4513_v11, 4 }
 0x186   : > { %6649 = vmatprep.mubr.msk.bf16.mxu1 %vm1401_vm9, %v9957_v30  ;;  %v4480_v30 = vrot.slane %v4478_v27, 4  ;;  %v4516_v27 = vshll.u32 %v4317_v39, 16  ;;  %v4320_v39 = vld [vmem:[#allocation2 + $0x78] sm:$0xf]  ;;  %v9963_v18 = vcombine.low %v8422_v5, %v8440_v38  ;;  %v5141_v8 = vrot.slane %v8735_v2, 5 }
 0x187   : > { %v8783_v56 = vrot.slane %v4522_v20, 5  ;;  %v4537_v19 = vshrl.u32 %v4320_v39, 16  ;;  %v4540_v11 = vshll.u32 %v4320_v39, 16  ;;  %v4496_v26 = vrot.slane %v4495_v58, 4 }
 0x188   : > { %6688 = vmatmul.mubr.msk.bf16.gmra.mxu0 %vm1401_vm9, %v6882_v47  ;;  %v5134_v47 = vrot.slane %v8688_v46, 5  ;;  %v4481_v44 = vor.u32 %v4480_v30, %v8732_v1  ;;  %v5137_v46 = vrot.slane %v8740_v62, 5  ;;  %v8770_v30 = vrot.slane %v4471_v34, 4 }
 0x189   : > { %6691 = vmatprep.mubr.msk.bf16.mxu0 %vm1401_vm9, %v6883_v43  ;;  %v4508_v43 = vshll.u32 %v8740_v62, 16  ;;  %v4518_v3 = vrot.slane %v4516_v27, 5  ;;  %v8776_v62 = vld [vmem:[#allocation2 + $0x7c] sm:$0xf]  ;;  %v4528_v34 = vrot.slane %v4526_v14, 4  ;;  %v4506_v5 = vrot.slane %v4505_v33, 4 }
 0x18a   : > { %v8774_v60 = vsel %vm7643_vm15, %v6189_v21, %v5134_v47  ;;  %v5136_v23 = vrot.slane %v5134_v47, 4  ;;  %v4319_v21 = vld [vmem:[#allocation2 + $0x74] sm:$0x1]  ;;  %v4546_v38 = vshll.u32 %v8776_v62, 16  ;;  %v4550_v47 = vshrl.u32 %v8776_v62, 16 }
 0x18b   : > { %v4510_v40 = vrot.slane %v4508_v43, 5  ;;  %v9966_v20 = vcombine.low %v8524_v24, %v8528_v15  ;;  %v4477_v2 = vsel %vm7252_vm10, %v8770_v30, %v8732_v1  ;;  %v6190_v14 = vrot.slane %v5033_v49, 9  ;;  %v4322_v43 = vld [vmem:[#allocation2 + $0x80] sm:$0x1]  ;;  %v5034_v24 = vld [vmem:[#allocation2 + $0x78] sm:$0xe] }
 0x18c   : > { %v5143_v33 = vrot.slane %v5141_v8, 4  ;;  %v5144_v39 = vrot.slane %v4319_v21, 5  ;;  %v4532_v17 = vshll.u32 %v4319_v21, 16  ;;  %v8809_v1 = vsel %vm7643_vm15, %v5136_v23, %v5137_v46 }
 0x18d   : > { %6650 = vmatmul.mubr.msk.bf16.gmra.mxu1 %vm1401_vm9, %v9961_v9  ;;  %v4482_v9 = vrot.slane %v4481_v44, 4  ;;  %v4519_v44 = vor.u32 %v4518_v3, %v4515_v7  ;;  %v4539_v3 = vrot.slane %v4537_v19, 4  ;;  %v4542_v30 = vrot.slane %v4540_v11, 5 }
 0x18e   : > { %6653 = vmatprep.mubr.msk.bf16.mxu1 %vm1401_vm9, %v9963_v18  ;;  %v8790_v18 = vpop.f32.mrf.mxu1  ;;  %v4511_v49 = vsel %vm7252_vm10, %v4506_v5, %v4510_v40  ;;  %v4552_v21 = vrot.slane %v4550_v47, 4  ;;  %v6191_v23 = vrot.slane %v5034_v24, 9  ;;  %v5151_v11 = vrot.slane %v4322_v43, 5 }
 0x18f   : > { %9965 = vst [vmem:[#allocation32_spill] sm:$0xff] %v8790_v18  ;;  %v4529_v18 = vor.u32 %v4528_v34, %v8783_v56  ;;  %v4487_v15 = vsel %vm7252_vm10, %v4482_v9, %v8760_v57  ;;  %v8818_v34 = vrot.slane %v4546_v38, 5  ;;  %v9969_v57 = vcombine.low %v8449_v16, %v8457_v42 }
 0x190   : > { %v8785_v27 = vpop.f32.mrf.mxu0  ;;  %6692 = vmatmul.mubr.msk.bf16.gmra.mxu0 %vm1401_vm9, %v6884_v48  ;;  %v5148_v48 = vrot.slane %v8776_v62, 5  ;;  %v4501_v62 = vsel %vm7252_vm10, %v4496_v26, %v8742_v61  ;;  %v8824_v19 = vpop.f32.mrf.mxu1  ;;  %v4520_v46 = vrot.slane %v4519_v44, 4  ;;  %v9971_v26 = vcombine.low %v8466_v63, %v8475_v37  ;;  %v4324_v44 = vld [vmem:[#allocation2 + $0x88] sm:$0xf]  ;;  %v5035_v63 = vld [vmem:[#allocation2 + $0x84] sm:$0xe] }
 0x191   : > { %9964 = vst [vmem:[#allocation31_spill] sm:$0xff] %v8785_v27  ;;  %6731 = vmatprep.mubr.msk.bf16.mxu0 %vm1401_vm9, %v9966_v20  ;;  %v4323_v20 = vld [vmem:[#allocation2 + $0x84] sm:$0xf]  ;;  %9970 = vst [vmem:[#allocation35_spill] sm:$0xff] %v8824_v19  ;;  %v8834_v40 = vsel %vm7643_vm15, %v6190_v14, %v5141_v8  ;;  %v8838_v16 = vsel %vm7643_vm15, %v5143_v33, %v5144_v39  ;;  %v4530_v42 = vrot.slane %v4529_v18, 4  ;;  %v4534_v5 = vrot.slane %v4532_v17, 5 }
 0x192   : > { %v8801_v58 = vpop.f32.mrf.mxu0  ;;  %v5150_v9 = vrot.slane %v5148_v48, 4  ;;  %v4543_v47 = vor.u32 %v4542_v30, %v4539_v3  ;;  %v4561_v37 = vshrl.u32 %v4323_v20, 16  ;;  %v4564_v24 = vshll.u32 %v4323_v20, 16  ;;  %v8853_v39 = vpop.f32.mrf.mxu1  ;;  %v4325_v20 = vld [vmem:[#allocation2 + $0x8c] sm:$0x1] }
 0x193   : > { %9967 = vst [vmem:[#allocation33_spill] sm:$0xff] %v8801_v58  ;;  %v9973_v8 = vcombine.low %v8542_v25, %v8552_v59  ;;  %v8848_v14 = vcombine.low %v4477_v2, %v4487_v15  ;;  %v8850_v33 = vcombine.low %v4501_v62, %v4511_v49  ;;  %v4553_v17 = vor.u32 %v4552_v21, %v8818_v34  ;;  %v8876_v21 = vld [vmem:[#allocation2 + $0x94] sm:$0xf]  ;;  %v4331_v19 = vld [vmem:[#allocation2 + $0xa4] sm:$0x1] }
 0x194   : > { %v8811_v7 = vpop.f32.mrf.mxu0  ;;  %v4556_v18 = vshll.u32 %v4322_v43, 16  ;;  %9974 = vst [vmem:[#allocation37_spill] sm:$0xff] %v8853_v39  ;;  %v9975_v3 = vcombine.low %v8586_v53, %v8629_v45  ;;  %v4525_v25 = vsel %vm7252_vm10, %v4520_v46, %v8783_v56  ;;  %v8866_v59 = vsel %vm7643_vm15, %v6191_v23, %v5148_v48  ;;  %v4326_v43 = vld [vmem:[#allocation2 + $0x90] sm:$0xf]  ;;  %v4328_v39 = vld [vmem:[#allocation2 + $0x98] sm:$0x1] }
 0x195   : > { %9968 = vst [vmem:[#allocation34_spill] sm:$0xff] %v8811_v7  ;;  %6654 = vmatmul.mubr.msk.bf16.gmra.mxu1 %vm1401_vm9, %v9969_v57  ;;  %v8870_v2 = vsel %vm7643_vm15, %v5150_v9, %v5151_v11  ;;  %v4535_v53 = vsel %vm7252_vm10, %v4530_v42, %v4534_v5  ;;  %v6192_v45 = vrot.slane %v5035_v63, 9  ;;  %v4570_v62 = vshll.u32 %v4324_v44, 16  ;;  %v9977_v42 = vld [vmem:[#allocation12_spill] sm:$0xff]  ;;  %v4332_v58 = vld [vmem:[#allocation2 + $0xa8] sm:$0xf] }
 0x196   : > { %6657 = vmatprep.mubr.msk.bf16.mxu1 %vm1401_vm9, %v9971_v26  ;;  %v8830_v61 = vpop.f32.mrf.mxu0  ;;  %v4574_v49 = vshrl.u32 %v4324_v44, 16  ;;  %v4544_v56 = vrot.slane %v4543_v47, 4  ;;  %v5155_v46 = vrot.slane %v4324_v44, 5  ;;  %v4563_v48 = vrot.slane %v4561_v37, 4 }
 0x197   : > { %9972 = vst [vmem:[#allocation36_spill] sm:$0xff] %v8830_v61  ;;  %v4566_v23 = vrot.slane %v4564_v24, 5  ;;  %v4554_v9 = vrot.slane %v4553_v17, 4  ;;  %v4558_v11 = vrot.slane %v4556_v18, 5  ;;  %v9978_v5 = vcombine.low %v8470_v51, %v9977_v42  ;;  %v5037_v61 = vld [vmem:[#allocation2 + $0x9c] sm:$0xe] }
 0x198   : > { %v8842_v57 = vpop.f32.mrf.mxu0  ;;  %6732 = vmatmul.mubr.msk.bf16.vlgmr.msra.gmra.mxu0 %vm1401_vm9, %v9973_v8  ;;  %v4585_v8 = vshrl.u32 %v4326_v43, 16  ;;  %v8886_v63 = vcombine.low %v4525_v25, %v4535_v53  ;;  %v4594_v44 = vshll.u32 %v8876_v21, 16  ;;  %v4598_v37 = vshrl.u32 %v8876_v21, 16 }
 0x199   : > { %6735 = vmatprep.mubr.msk.bf16.mxu0 %vm1401_vm9, %v9975_v3  ;;  %v4588_v3 = vshll.u32 %v4326_v43, 16  ;;  %v8898_v17 = vsel %vm7643_vm15, %v6192_v45, %v5155_v46  ;;  %v5158_v51 = vrot.slane %v4325_v20, 5  ;;  %v8900_v18 = vrot.slane %v4570_v62, 5  ;;  %v4329_v43 = vld [vmem:[#allocation2 + $0x9c] sm:$0xf] }
 0x19a   : > { %v8872_v15 = vpop.f32.mrf.mxu0  ;;  %9979 = vst [vmem:[#allocation12_spill] sm:$0xff] %v8886_v63  ;;  %v4576_v25 = vrot.slane %v4574_v49, 4  ;;  %v4549_v42 = vsel %vm7252_vm10, %v4544_v56, %v8818_v34  ;;  %v4567_v47 = vor.u32 %v4566_v23, %v4563_v48  ;;  %v5162_v38 = vrot.slane %v8876_v21, 5 }
 0x19b   : > { %v9981_v62 = vcombine.low %v8636_v41, %v8651_v31  ;;  %v4559_v49 = vsel %vm7252_vm10, %v4554_v9, %v4558_v11  ;;  %v4587_v34 = vrot.slane %v4585_v8, 4  ;;  %v4590_v56 = vrot.slane %v4588_v3, 5 }
 0x19c   : > { %v8878_v26 = vpop.f32.mrf.mxu0  ;;  %v9983_v21 = vcombine.low %v8684_v54, %v8695_v29  ;;  %v8924_v48 = vrot.slane %v4594_v44, 5  ;;  %v4600_v23 = vrot.slane %v4598_v37, 4  ;;  %v4609_v41 = vshrl.u32 %v4329_v43, 16 }
 0x19d   : > { %v8880_v30 = vpop.f32.mrf.mxu1  ;;  %6658 = vmatmul.mubr.msk.bf16.gmra.mxu1 %vm1401_vm9, %v9978_v5  ;;  %v5157_v5 = vrot.slane %v5155_v46, 4  ;;  %v4612_v31 = vshll.u32 %v4329_v43, 16  ;;  %v4577_v9 = vor.u32 %v4576_v25, %v8900_v18  ;;  %v8937_v29 = vrot.slane %v4567_v47, 4 }
 0x19e   : > { %9976 = vst [vmem:[#allocation38_spill] sm:$0xff] %v8880_v30  ;;  %6697 = vmatprep.mubr.msk.bf16.mxu1 %vm1401_vm9, %v8668_v28  ;;  %v8894_v24 = vpop.f32.mrf.mxu0  ;;  %v5036_v28 = vld [vmem:[#allocation2 + $0x90] sm:$0xe]  ;;  %v8908_v30 = vld [vmem:[#allocation2 + $0xa0] sm:$0xf]  ;;  %v5164_v44 = vrot.slane %v5162_v38, 4 }
 0x19f   : > { %v8902_v53 = vpop.f32.mrf.mxu1  ;;  %v4618_v11 = vshll.u32 %v8908_v30, 16  ;;  %v4622_v8 = vshrl.u32 %v8908_v30, 16  ;;  %v8935_v54 = vsel %vm7643_vm15, %v5157_v5, %v5158_v51  ;;  %v5165_v37 = vrot.slane %v4328_v39, 5 }
 0x1a0   : > { %9980 = vst [vmem:[#allocation39_spill] sm:$0xff] %v8902_v53  ;;  %v8910_v45 = vpop.f32.mrf.mxu0  ;;  %6736 = vmatmul.mubr.msk.bf16.gmra.mxu0 %vm1401_vm9, %v9981_v62  ;;  %v4580_v53 = vshll.u32 %v4325_v20, 16  ;;  %v6193_v20 = vrot.slane %v5036_v28, 9  ;;  %v4591_v28 = vor.u32 %v4590_v56, %v4587_v34  ;;  %v4601_v51 = vor.u32 %v4600_v23, %v8924_v48  ;;  %v4333_v34 = vld [vmem:[#allocation2 + $0xac] sm:$0xf] }
 0x1a1   : > { %v8918_v46 = vpop.f32.mrf.mxu1  ;;  %6739 = vmatprep.mubr.msk.bf16.mxu0 %vm1401_vm9, %v9983_v21  ;;  %v8941_v21 = vcombine.low %v4549_v42, %v4559_v49  ;;  %v5169_v47 = vrot.slane %v8908_v30, 5  ;;  %v4611_v5 = vrot.slane %v4609_v41, 4  ;;  %v8957_v49 = vrot.slane %v4618_v11, 5  ;;  %v5038_v41 = vld [vmem:[#allocation2 + $0xa8] sm:$0xe] }
 0x1a2   : > { %9982 = vst [vmem:[#allocation40_spill] sm:$0xff] %v8918_v46  ;;  %v8926_v62 = vpop.f32.mrf.mxu0  ;;  %v4582_v25 = vrot.slane %v4580_v53, 5  ;;  %v4604_v46 = vshll.u32 %v4328_v39, 16  ;;  %v4578_v39 = vrot.slane %v4577_v9, 4  ;;  %v8955_v42 = vsel %vm7643_vm15, %v6193_v20, %v5162_v38 }
 0x1a3   : > { %v8931_v3 = vpop.f32.mrf.mxu1  ;;  %9985 = vst [vmem:[#allocation42_spill] sm:$0xff] %v8941_v21  ;;  %v4573_v30 = vsel %vm7252_vm10, %v8937_v29, %v8900_v18  ;;  %v6194_v23 = vrot.slane %v5037_v61, 9  ;;  %v9986_v38 = vcombine.low %v8726_v50, %v8730_v36  ;;  %v4592_v20 = vrot.slane %v4591_v28, 4 }
 0x1a4   : > { %9984 = vst [vmem:[#allocation41_spill] sm:$0xff] %v8931_v3  ;;  %v8939_v43 = vpop.f32.mrf.mxu0  ;;  %v4614_v3 = vrot.slane %v4612_v31, 5  ;;  %v5176_v31 = vrot.slane %v4333_v34, 5  ;;  %v4606_v11 = vrot.slane %v4604_v46, 5  ;;  %v4633_v21 = vshrl.u32 %v4332_v58, 16 }
 0x1a5   : > { %v8943_v7 = vpop.f32.mrf.mxu1  ;;  %6698 = vmatmul.mubr.msk.bf16.vlgmr.msra.gmra.mxu1 %vm1401_vm9, %v8671_v35  ;;  %v4624_v35 = vrot.slane %v4622_v8, 4  ;;  %v8973_v8 = vld [vmem:[#allocation2 + $0xb0] sm:$0x1]  ;;  %v4636_v18 = vshll.u32 %v4332_v58, 16  ;;  %v4602_v61 = vrot.slane %v4601_v51, 4  ;;  %v5172_v27 = vrot.slane %v4331_v19, 5 }
 0x1a6   : > { %6701 = vmatprep.mubr.msk.bf16.mxu1 %vm1401_vm9, %v8675_v22  ;;  %v8951_v53 = vpop.f32.mrf.mxu0  ;;  %v8965_v22 = vsel %vm7643_vm15, %v5164_v44, %v5165_v37  ;;  %v9987_v44 = vcombine.low %v8774_v60, %v8809_v1  ;;  %v5171_v37 = vrot.slane %v5169_v47, 4  ;;  %v4615_v63 = vor.u32 %v4614_v3, %v4611_v5 }
 0x1a7   : > { %v1779_v56 = vpop.f32.mrf.mxu1  ;;  %v4583_v50 = vsel %vm7252_vm10, %v4578_v39, %v4582_v25  ;;  %v4625_v36 = vor.u32 %v4624_v35, %v8957_v49  ;;  %v4628_v46 = vshll.u32 %v4331_v19, 16  ;;  %v6195_v28 = vrot.slane %v5038_v41, 9 }
 0x1a8   : > { %v8967_v9 = vpop.f32.mrf.mxu0  ;;  %6740 = vmatmul.mubr.msk.bf16.gmra.mxu0 %vm1401_vm9, %v9986_v38  ;;  %v5178_v38 = vrot.slane %v5176_v31, 4  ;;  %v5179_v13 = vrot.slane %v8973_v8, 5  ;;  %v4642_v60 = vshll.u32 %v4333_v34, 16  ;;  %v4646_v1 = vshrl.u32 %v4333_v34, 16 }
 0x1a9   : > { %v6496_v29 = vpop.f32.mrf.mxu1  ;;  %6743 = vmatprep.mubr.msk.bf16.mxu0 %vm1401_vm9, %v9987_v44  ;;  %v6208_v3 = vcombine.low %v8898_v17, %v8935_v54  ;;  %v8991_v51 = vsel %vm7643_vm15, %v6194_v23, %v5169_v47  ;;  %v4635_v25 = vrot.slane %v4633_v21, 4  ;;  %v4638_v5 = vrot.slane %v4636_v18, 5 }
 0x1aa   : > { %v8979_v12 = vpop.f32.mrf.mxu0  ;;  %v4597_v19 = vsel %vm7252_vm10, %v4592_v20, %v8924_v48  ;;  %v4607_v35 = vsel %vm7252_vm10, %v4602_v61, %v4606_v11  ;;  %v9002_v34 = vsel %vm7643_vm15, %v5171_v37, %v5172_v27  ;;  %v9004_v41 = vrot.slane %v4615_v63, 4  ;;  %v9028_v11 = vld [vmem:[#allocation2 + $0xb4] sm:$0xe] }
 0x1ab   : > { %v1782_v58 = vpop.f32.mrf.mxu1  ;;  %v9010_v47 = vcombine.low %v4573_v30, %v4583_v50  ;;  %v9014_v48 = vrot.slane %v4625_v36, 4  ;;  %v9016_v23 = vrot.slane %v4628_v46, 5  ;;  %v9020_v27 = vsel %vm7643_vm15, %v6195_v28, %v5176_v31  ;;  %v9989_v36 = vld [vmem:[#allocation13_spill] sm:$0xff]  ;;  %v9990_v28 = vld [vmem:[#allocation15_spill] sm:$0xff] }
 0x1ac   : > { %v8985_v44 = vpop.f32.mrf.mxu0  ;;  %v9024_v63 = vsel %vm7643_vm15, %v5178_v38, %v5179_v13  ;;  %v4648_v30 = vrot.slane %v4646_v1, 4  ;;  %v9988_v61 = vcombine.low %v8834_v40, %v8838_v16  ;;  %v9036_v37 = vcombine.low %v4597_v19, %v4607_v35  ;;  %v9995_v35 = vld [vmem:[#allocation19_spill] sm:$0xff] }
 0x1ad   : > { %v6499_v39 = vpop.f32.mrf.mxu1  ;;  %6702 = vmatmul.mubr.msk.bf16.gmra.mxu1 %vm1401_vm9, %v8747_v6  ;;  %v4639_v50 = vor.u32 %v4638_v5, %v4635_v25  ;;  %v4652_v13 = vshll.u32 %v8973_v8, 16  ;;  %v1788_v46 = vadd.f32 %v8943_v7, %v9989_v36  ;;  %v1780_v38 = vadd.f32 %v1779_v56, %v9990_v28  ;;  %v9993_v25 = vld [vmem:[#allocation16_spill] sm:$0xff]  ;;  %v9996_v36 = vld [vmem:[#allocation22_spill] sm:$0xff] }
 0x1ae   : > { %6705 = vmatprep.mubr.msk.bf16.mxu1 %vm1401_vm9, %v8752_v0  ;;  %v9008_v21 = vpop.f32.mrf.mxu0  ;;  %v9026_v0 = vrot.slane %v4642_v60, 5  ;;  %v9991_v60 = vld [vmem:[#allocation14_spill] sm:$0xff]  ;;  %v9992_v40 = vcombine.low %v8866_v59, %v8870_v2  ;;  %v1783_v8 = vadd.f32 %v1782_v58, %v9993_v25  ;;  %v9062_v59 = vld [vmem:[#allocation2 + $0xbc] sm:$0x1]  ;;  %v6196_v2 = vrot.slane %v9028_v11, 9 }
 0x1af   : > { %v1795_v20 = vpop.f32.mrf.mxu1  ;;  %v1791_v1 = vadd.f32 %v6496_v29, %v9991_v60  ;;  %v9994_v29 = vld [vmem:[#allocation18_spill] sm:$0xff]  ;;  %v9074_v56 = vrot.slane %v4639_v50, 4  ;;  %v9076_v31 = vrot.slane %v4652_v13, 5 }
 0x1b0   : > { %v9030_v18 = vpop.f32.mrf.mxu0  ;;  %6744 = vmatmul.mubr.msk.bf16.gmra.mxu0 %vm1401_vm9, %v9988_v61  ;;  %v1804_v19 = vadd.f32 %v6499_v39, %v9994_v29  ;;  %v1796_v61 = vadd.f32 %v1795_v20, %v9995_v35  ;;  %v4649_v60 = vor.u32 %v4648_v30, %v9026_v0  ;;  %v4335_v25 = vld [vmem:[#allocation2 + $0xb4] sm:$0xf]  ;;  %v9082_v20 = vld [vmem:[#allocation2 + $0xc4] sm:$0xf]  ;;  %v9085_v30 = vadd.f32 %v8842_v57, %v1788_v46  ;;  %v5040_v46 = vld [vmem:[#allocation2 + $0xc0] sm:$0xe] }
 0x1b1   : > { %v6500_v6 = vpop.f32.mrf.mxu1  ;;  %6747 = vmatprep.mubr.msk.bf16.mxu0 %vm1401_vm9, %v9992_v40  ;;  %v9069_v40 = vld [vmem:[#allocation2 + $0xb8] sm:$0xf]  ;;  %v9091_v50 = vadd.f32 %v8878_v26, %v1791_v1  ;;  %v5190_v35 = vrot.slane %v9082_v20, 5 }
 0x1b2   : > { %v9054_v5 = vpop.f32.mrf.mxu0  ;;  %v1807_v58 = vadd.f32 %v6500_v6, %v9996_v36  ;;  %v5183_v39 = vrot.slane %v9069_v40, 5  ;;  %v5186_v6 = vrot.slane %v9062_v59, 5  ;;  %v9100_v36 = vadd.f32 %v8894_v24, %v1783_v8  ;;  %v9121_v8 = vld [vmem:[#allocation2 + $0xc8] sm:$0x1] }
 0x1b3   : > { %v1798_v28 = vpop.f32.mrf.mxu1  ;;  %v9106_v26 = vadd.f32 %v8926_v62, %v1796_v61  ;;  %v4650_v24 = vrot.slane %v4649_v60, 4  ;;  %v4338_v62 = vld [vmem:[#allocation2 + $0xc0] sm:$0xf]  ;;  %v5192_v60 = vrot.slane %v5190_v35, 4 }
 0x1b4   : > { %v1799_v16 = vadd.f32 %v1798_v28, %v8638_v52  ;;  %v9072_v7 = vpop.f32.mrf.mxu0  ;;  %v9088_v52 = vadd.f32 %v8872_v15, %v1780_v38  ;;  %v9103_v15 = vadd.f32 %v8910_v45, %v1804_v19  ;;  %v4660_v45 = vshll.u32 %v4335_v25, 16 }
 0x1b5   : > { %v6503_v11 = vpop.f32.mrf.mxu1  ;;  %6706 = vmatmul.mubr.msk.bf16.gmra.mxu1 %vm1401_vm9, %v8848_v14  ;;  %v4657_v14 = vshrl.u32 %v4335_v25, 16  ;;  %v9136_v17 = vsel %vm7643_vm15, %v6196_v2, %v5183_v39  ;;  %v5185_v54 = vrot.slane %v5183_v39, 4  ;;  %v4684_v2 = vshll.u32 %v4338_v62, 16  ;;  %v9999_v25 = vld [vmem:[#allocation29_spill] sm:$0xff] }
 0x1b6   : > { %v1820_v13 = vadd.f32 %v6503_v11, %v8678_v55  ;;  %6709 = vmatprep.mubr.msk.bf16.mxu1 %vm1401_vm9, %v8850_v33  ;;  %v9096_v29 = vpop.f32.mrf.mxu0  ;;  %v9109_v55 = vadd.f32 %v8939_v43, %v1807_v58  ;;  %v9112_v33 = vadd.f32 %v8951_v53, %v1799_v16  ;;  %v9997_v53 = vcombine.low %v8955_v42, %v8965_v22 }
 0x1b7   : > { %v1811_v57 = vpop.f32.mrf.mxu1  ;;  %v4670_v42 = vshrl.u32 %v9069_v40, 16  ;;  %v6197_v22 = vrot.slane %v5040_v46, 9 }
 0x1b8   : > { %v1812_v38 = vadd.f32 %v1811_v57, %v8698_v4  ;;  %v9115_v1 = vpop.f32.mrf.mxu0  ;;  %6748 = vmatmul.mubr.msk.bf16.gmra.mxu0 %vm1401_vm9, %v6208_v3  ;;  %v9124_v43 = vadd.f32 %v8967_v9, %v1820_v13  ;;  %v4645_v4 = vsel %vm7252_vm10, %v9074_v56, %v9026_v0  ;;  %v4666_v3 = vshll.u32 %v9069_v40, 16  ;;  %v9998_v9 = vld [vmem:[#allocation27_spill] sm:$0xff] }
 0x1b9   : > { %v6504_v19 = vpop.f32.mrf.mxu1  ;;  %6751 = vmatprep.mubr.msk.bf16.mxu0 %vm1401_vm9, %v9997_v53  ;;  %v5193_v0 = vrot.slane %v9121_v8, 5  ;;  %v4681_v56 = vshrl.u32 %v4338_v62, 16  ;;  %v4690_v13 = vshll.u32 %v9082_v20, 16  ;;  %v4694_v57 = vshrl.u32 %v9082_v20, 16  ;;  %v10002_v20 = vld [vmem:[#allocation42_spill] sm:$0xff] }
 0x1ba   : > { %v1823_v16 = vadd.f32 %v6504_v19, %v9998_v9  ;;  %v9140_v61 = vpop.f32.mrf.mxu0  ;;  %v9144_v58 = vadd.f32 %v8979_v12, %v1812_v38  ;;  %v10000_v12 = vld [vmem:[#allocation12_spill] sm:$0xff]  ;;  %v4655_v38 = vsel %vm7252_vm10, %v4650_v24, %v9076_v31  ;;  %v9162_v62 = vsel %vm7643_vm15, %v5185_v54, %v5186_v6  ;;  %v10001_v9 = vld [vmem:[#allocation31_spill] sm:$0xff]  ;;  %v10003_v54 = vld [vmem:[#allocation33_spill] sm:$0xff] }
 0x1bb   : > { %v1814_v28 = vpop.f32.mrf.mxu1  ;;  %v4659_v19 = vrot.slane %v4657_v14, 4  ;;  %v4662_v53 = vrot.slane %v4660_v45, 5  ;;  %v5191_v6 = vsel %vm7643_vm15, %v6197_v22, %v5190_v35  ;;  %v5194_v14 = vsel %vm7643_vm15, %v5192_v60, %v5193_v0 }
 0x1bc   : > { %v1815_v39 = vadd.f32 %v1814_v28, %v9999_v25  ;;  %v9148_v11 = vpop.f32.mrf.mxu0  ;;  %v9153_v40 = vadd.f32 %v8985_v44, %v1823_v16  ;;  %v9169_v16 = vrot.slane %v4666_v3, 5  ;;  %v4672_v25 = vrot.slane %v4670_v42, 4 }
 0x1bd   : > { %v6507_v46 = vpop.f32.mrf.mxu1  ;;  %6710 = vmatmul.mubr.msk.bf16.gmra.mxu1 %vm1401_vm9, %v10000_v12  ;;  %v4683_v24 = vrot.slane %v4681_v56, 4  ;;  %v4686_v45 = vrot.slane %v4684_v2, 5  ;;  %v10004_v3 = vcombine.low %v8991_v51, %v9002_v34  ;;  %v4696_v42 = vrot.slane %v4694_v57, 4  ;;  %v5041_v2 = vld [vmem:[#allocation2 + $0xcc] sm:$0xe]  ;;  %v10008_v57 = vld [vmem:[#allocation34_spill] sm:$0xff] }
 0x1be   : > { %v1836_v28 = vadd.f32 %v6507_v46, %v10001_v9  ;;  %6713 = vmatprep.mubr.msk.bf16.mxu1 %vm1401_vm9, %v10002_v20  ;;  %v9167_v44 = vpop.f32.mrf.mxu0  ;;  %v9172_v12 = vadd.f32 %v9008_v21, %v1815_v39  ;;  %v9185_v21 = vrot.slane %v4690_v13, 5  ;;  %v4342_v39 = vld [vmem:[#allocation2 + $0xd0] sm:$0xf]  ;;  %v10005_v60 = vsel %vm7252_vm10, %v9014_v48, %v9016_v23  ;;  %v4341_v20 = vld [vmem:[#allocation2 + $0xcc] sm:$0xf] }
 0x1bf   : > { %v1827_v31 = vpop.f32.mrf.mxu1  ;;  %v10006_v51 = vsel %vm7252_vm10, %v9004_v41, %v8957_v49  ;;  %v10007_v0 = vcombine.low %v9020_v27, %v9024_v63  ;;  %v4676_v56 = vshll.u32 %v9062_v59, 16  ;;  %v5197_v13 = vrot.slane %v4342_v39, 5 }
 0x1c0   : > { %v1828_v46 = vadd.f32 %v1827_v31, %v10003_v54  ;;  %v9179_v9 = vpop.f32.mrf.mxu0  ;;  %6752 = vmatmul.mubr.msk.bf16.gmra.mxu0 %vm1401_vm9, %v10004_v3  ;;  %v9188_v35 = vadd.f32 %v9030_v18, %v1836_v28  ;;  %v9200_v34 = vcombine.low %v10006_v51, %v10005_v60  ;;  %v9206_v18 = vcombine.low %v4645_v4, %v4655_v38  ;;  %v9214_v28 = vld [vmem:[#allocation2 + $0xd4] sm:$0x1]  ;;  %v10009_v54 = vld [vmem:[#allocation36_spill] sm:$0xff] }
 0x1c1   : > { %v6508_v22 = vpop.f32.mrf.mxu1  ;;  %6755 = vmatprep.mubr.msk.bf16.mxu0 %vm1401_vm9, %v10007_v0  ;;  %v6212_v49 = vcombine.low %v9136_v17, %v9162_v62  ;;  %v4663_v41 = vor.u32 %v4662_v53, %v4659_v19  ;;  %v4673_v4 = vor.u32 %v4672_v25, %v9169_v16  ;;  %v6213_v59 = vcombine.low %v5191_v6, %v5194_v14 }
 0x1c2   : > { %v1839_v48 = vadd.f32 %v6508_v22, %v10008_v57  ;;  %v9210_v23 = vpop.f32.mrf.mxu0  ;;  %v9217_v27 = vadd.f32 %v9054_v5, %v1828_v46  ;;  %v4687_v38 = vor.u32 %v4686_v45, %v4683_v24  ;;  %v4700_v31 = vshll.u32 %v9121_v8, 16  ;;  %v10010_v8 = vld [vmem:[#allocation17_spill] sm:$0xff] }
 0x1c3   : > { %v1830_v63 = vpop.f32.mrf.mxu1  ;;  %v4697_v17 = vor.u32 %v4696_v42, %v9185_v21  ;;  %v6198_v62 = vrot.slane %v5041_v2, 9  ;;  %v5199_v5 = vrot.slane %v5197_v13, 4  ;;  %v5200_v25 = vrot.slane %v9214_v28, 5  ;;  %v10011_v57 = vld [vmem:[#allocation21_spill] sm:$0xff] }
 0x1c4   : > { %v1831_v3 = vadd.f32 %v1830_v63, %v10009_v54  ;;  %v9222_v22 = vpop.f32.mrf.mxu0  ;;  %v9226_v19 = vadd.f32 %v9072_v7, %v1839_v48  ;;  %v4705_v6 = vshrl.u32 %v4341_v20, 16  ;;  %v4708_v14 = vshll.u32 %v4341_v20, 16  ;;  %v10012_v54 = vld [vmem:[#allocation20_spill] sm:$0xff] }
 0x1c5   : > { %v6511_v53 = vpop.f32.mrf.mxu1  ;;  %6714 = vmatmul.mubr.msk.bf16.gmra.mxu1 %vm1401_vm9, %v9010_v47  ;;  %v4714_v46 = vshll.u32 %v4342_v39, 16  ;;  %v4718_v42 = vshrl.u32 %v4342_v39, 16  ;;  %v4664_v51 = vrot.slane %v4663_v41, 4  ;;  %v4674_v47 = vrot.slane %v4673_v4, 4 }
 0x1c6   : > { %v1852_v24 = vadd.f32 %v6511_v53, %v10010_v8  ;;  %6717 = vmatprep.mubr.msk.bf16.mxu1 %vm1401_vm9, %v9036_v37  ;;  %v9234_v45 = vpop.f32.mrf.mxu0  ;;  %v9237_v7 = vadd.f32 %v9096_v29, %v1831_v3  ;;  %v4678_v0 = vrot.slane %v4676_v56, 5  ;;  %v4702_v2 = vrot.slane %v4700_v31, 5 }
 0x1c7   : > { %v1843_v60 = vpop.f32.mrf.mxu1  ;;  %v4688_v63 = vrot.slane %v4687_v38, 4  ;;  %v5198_v37 = vsel %vm7643_vm15, %v6198_v62, %v5197_v13  ;;  %v4698_v41 = vrot.slane %v4697_v17, 4  ;;  %v5201_v56 = vsel %vm7643_vm15, %v5199_v5, %v5200_v25 }
 0x1c8   : > { %v1844_v48 = vadd.f32 %v1843_v60, %v10011_v57  ;;  %v9240_v20 = vpop.f32.mrf.mxu0  ;;  %6756 = vmatmul.mubr.msk.bf16.gmra.mxu0 %vm1401_vm9, %v6212_v49  ;;  %v9246_v39 = vadd.f32 %v9115_v1, %v1852_v24  ;;  %v4707_v4 = vrot.slane %v4705_v6, 4  ;;  %v4710_v31 = vrot.slane %v4708_v14, 5  ;;  %v10013_v1 = vld [vmem:[#allocation23_spill] sm:$0xff]  ;;  %v10014_v24 = vld [vmem:[#allocation24_spill] sm:$0xff] }
 0x1c9   : > { %v6512_v29 = vpop.f32.mrf.mxu1  ;;  %6759 = vmatprep.mubr.msk.bf16.mxu0 %vm1401_vm9, %v6213_v59  ;;  %v4716_v49 = vrot.slane %v4714_v46, 5  ;;  %v4720_v38 = vrot.slane %v4718_v42, 4  ;;  %v4669_v59 = vsel %vm7252_vm10, %v4664_v51, %v9169_v16  ;;  %v6214_v10 = vcombine.low %v5198_v37, %v5201_v56 }
 0x1ca   : > { %v1855_v3 = vadd.f32 %v6512_v29, %v10012_v54  ;;  %v2304_v53 = vpop.f32.mrf.mxu0  ;;  %v9253_v8 = vadd.f32 %v9140_v61, %v1844_v48  ;;  %v4679_v61 = vsel %vm7252_vm10, %v4674_v47, %v4678_v0  ;;  %v4693_v6 = vsel %vm7252_vm10, %v4688_v63, %v9185_v21  ;;  %v10015_v47 = vld [vmem:[#allocation25_spill] sm:$0xff] }
 0x1cb   : > { %v1846_v13 = vpop.f32.mrf.mxu1  ;;  %v4703_v14 = vsel %vm7252_vm10, %v4698_v41, %v4702_v2  ;;  %v4724_v16 = vshll.u32 %v9214_v28, 16  ;;  %v4711_v42 = vor.u32 %v4710_v31, %v4707_v4  ;;  %v6163_v57 = vcombine.low %v4669_v59, %v4679_v61  ;;  %v10017_v31 = vld [vmem:[#allocation28_spill] sm:$0xff] }
 0x1cc   : > { %v1847_v62 = vadd.f32 %v1846_v13, %v10013_v1  ;;  %v6554_v17 = vpop.f32.mrf.mxu0  ;;  %v9260_v5 = vadd.f32 %v9148_v11, %v1855_v3  ;;  %v6164_v48 = vcombine.low %v4693_v6, %v4703_v14  ;;  %v10018_v13 = vld [vmem:[#allocation30_spill] sm:$0xff] }
 0x1cd   : > { %v6515_v25 = vpop.f32.mrf.mxu1  ;;  %6718 = vmatmul.mubr.msk.bf16.gmra.mxu1 %vm1401_vm9, %v9200_v34  ;;  %v4721_v34 = vor.u32 %v4720_v38, %v4716_v49  ;;  %v4726_v63 = vrot.slane %v4724_v16, 5  ;;  %v4712_v29 = vrot.slane %v4711_v42, 4 }
 0x1ce   : > { %v1868_v46 = vadd.f32 %v6515_v25, %v10014_v24  ;;  %6721 = vmatprep.mubr.msk.bf16.mxu1 %vm1401_vm9, %v9206_v18  ;;  %v2307_v11 = vpop.f32.mrf.mxu0  ;;  %v9276_v60 = vadd.f32 %v9167_v44, %v1847_v62  ;;  %v10016_v18 = vld [vmem:[#allocation26_spill] sm:$0xff] }
 0x1cf   : > { %v1859_v51 = vpop.f32.mrf.mxu1  ;;  %v4722_v41 = vrot.slane %v4721_v34, 4  ;;  %v4717_v62 = vsel %vm7252_vm10, %v4712_v29, %v4716_v49 }
 0x1d0   : > { %v1860_v0 = vadd.f32 %v1859_v51, %v10015_v47  ;;  %v6557_v21 = vpop.f32.mrf.mxu0  ;;  %6760 = vmatmul.mubr.msk.bf16.gmra.mxu0 %vm1401_vm9, %v6214_v10  ;;  %v9281_v2 = vadd.f32 %v9179_v9, %v1868_v46  ;;  %v10020_v46 = vld [vmem:[#allocation35_spill] sm:$0xff]  ;;  %v10021_v51 = vld [vmem:[#allocation37_spill] sm:$0xff] }
 0x1d1   : > { %v6516_v28 = vpop.f32.mrf.mxu1 }
 0x1d2   : > { %v1871_v37 = vadd.f32 %v6516_v28, %v10016_v18  ;;  %v2320_v56 = vpop.f32.mrf.mxu0  ;;  %v9285_v44 = vadd.f32 %v9210_v23, %v1860_v0  ;;  %v4727_v23 = vsel %vm7252_vm10, %v4722_v41, %v4726_v63 }
 0x1d3   : > { %v1862_v4 = vpop.f32.mrf.mxu1  ;;  %v6165_v24 = vcombine.low %v4717_v62, %v4727_v23 }
 0x1d4   : > { %v1863_v54 = vadd.f32 %v1862_v4, %v10017_v31  ;;  %v6558_v3 = vpop.f32.mrf.mxu0  ;;  %v9289_v38 = vadd.f32 %v9222_v22, %v1871_v37  ;;  %v10019_v22 = vld [vmem:[#allocation32_spill] sm:$0xff]  ;;  %v10023_v37 = vld [vmem:[#allocation39_spill] sm:$0xff] }
 0x1d5   : > { %v6519_v9 = vpop.f32.mrf.mxu1  ;;  %6722 = vmatmul.mubr.msk.bf16.gmra.mxu1 %vm1401_vm9, %v6163_v57  ;;  %v10022_v57 = vld [vmem:[#allocation38_spill] sm:$0xff]  ;;  %v10024_v31 = vld [vmem:[#allocation40_spill] sm:$0xff] }
 0x1d6   : > { %v1884_v1 = vadd.f32 %v6519_v9, %v10018_v13  ;;  %6725 = vmatprep.mubr.msk.bf16.mxu1 %vm1401_vm9, %v6164_v48  ;;  %v2323_v59 = vpop.f32.mrf.mxu0  ;;  %v9299_v10 = vadd.f32 %v9234_v45, %v1863_v54 }
 0x1d7   : > { %v1875_v25 = vpop.f32.mrf.mxu1 }
 0x1d8   : > { %v1876_v61 = vadd.f32 %v1875_v25, %v10019_v22  ;;  %v6597_v6 = vpop.f32.mrf.mxu0  ;;  %v9303_v14 = vadd.f32 %v9240_v20, %v1884_v1  ;;  %v10025_v1 = vld [vmem:[#allocation41_spill] sm:$0xff] }
 0x1d9   : > { %v6520_v16 = vpop.f32.mrf.mxu1 }
 0x1da   : > { %v1887_v42 = vadd.f32 %v6520_v16, %v10020_v46  ;;  %v3300_v34 = vpop.f32.mrf.mxu0  ;;  %v9306_v49 = vadd.f32 %v2304_v53, %v1876_v61 }
 0x1db   : > { %v1878_v32 = vpop.f32.mrf.mxu1 }
 0x1dc   : > { %v1879_v47 = vadd.f32 %v1878_v32, %v10021_v51  ;;  %v6598_v0 = vpop.f32.mrf.mxu0  ;;  %v9309_v45 = vadd.f32 %v6554_v17, %v1887_v42 }
 0x1dd   : > { %v6523_v28 = vpop.f32.mrf.mxu1  ;;  %6726 = vmatmul.mubr.msk.bf16.gmra.mxu1 %vm1401_vm9, %v6165_v24 }
 0x1de   : > { %v1900_v48 = vadd.f32 %v6523_v28, %v10022_v57  ;;  %v3303_v20 = vpop.f32.mrf.mxu0  ;;  %v9313_v63 = vadd.f32 %v2307_v11, %v1879_v47 }
 0x1df   : > { %v1891_v18 = vpop.f32.mrf.mxu1 }
 0x1e0   : > { %v1892_v29 = vadd.f32 %v1891_v18, %v10023_v37  ;;  %v6601_v41 = vpop.f32.mrf.mxu0  ;;  %v9316_v53 = vadd.f32 %v6557_v21, %v1900_v48 }
 0x1e1   : > { %v6524_v4 = vpop.f32.mrf.mxu1 }
 0x1e2   : > { %v1903_v54 = vadd.f32 %v6524_v4, %v10024_v31  ;;  %v3316_v9 = vpop.f32.mrf.mxu0  ;;  %v9319_v17 = vadd.f32 %v2320_v56, %v1892_v29 }
 0x1e3   : > { %v1894_v13 = vpop.f32.mrf.mxu1 }
 0x1e4   : > { %v1895_v62 = vadd.f32 %v1894_v13, %v10025_v1  ;;  %v6602_v23 = vpop.f32.mrf.mxu0  ;;  %v9322_v25 = vadd.f32 %v6558_v3, %v1903_v54 }
 0x1e5   : > { %v6563_v11 = vpop.f32.mrf.mxu1 }
 0x1e6   : > { %v2699_v22 = vadd.f32 %v6563_v11, %v9085_v30  ;;  %v3319_v61 = vpop.f32.mrf.mxu0  ;;  %v9325_v16 = vadd.f32 %v2323_v59, %v1895_v62 }
 0x1e7   : > { %v2570_v21 = vpop.f32.mrf.mxu1 }
 0x1e8   : > { %v2697_v24 = vadd.f32 %v2570_v21, %v9088_v52  ;;  %v6605_v46 = vpop.f32.mrf.mxu0  ;;  %v9328_v42 = vadd.f32 %v6597_v6, %v2699_v22 }
 0x1e9   : > { %v6564_v56 = vpop.f32.mrf.mxu1 }
 0x1ea   : > { %v2700_v32 = vadd.f32 %v6564_v56, %v9091_v50  ;;  %v3332_v51 = vpop.f32.mrf.mxu0  ;;  %v9331_v47 = vadd.f32 %v3300_v34, %v2697_v24 }
 0x1eb   : > { %v2573_v3 = vpop.f32.mrf.mxu1 }
 0x1ec   : > { %v2698_v28 = vadd.f32 %v2573_v3, %v9100_v36  ;;  %v6606_v57 = vpop.f32.mrf.mxu0  ;;  %v9334_v30 = vadd.f32 %v6598_v0, %v2700_v32 }
 0x1ed   : > { %v6567_v59 = vpop.f32.mrf.mxu1 }
 0x1ee   : > { %v2703_v48 = vadd.f32 %v6567_v59, %v9103_v15  ;;  %v3335_v18 = vpop.f32.mrf.mxu0  ;;  %v9337_v52 = vadd.f32 %v3303_v20, %v2698_v28 }
 0x1ef   : > { %v2586_v6 = vpop.f32.mrf.mxu1 }
 0x1f0   : > { %v2701_v37 = vadd.f32 %v2586_v6, %v9106_v26  ;;  %v6609_v29 = vpop.f32.mrf.mxu0  ;;  %v9340_v50 = vadd.f32 %v6601_v41, %v2703_v48 }
 0x1f1   : > { %v6568_v34 = vpop.f32.mrf.mxu1 }
 0x1f2   : > { %v2704_v4 = vadd.f32 %v6568_v34, %v9109_v55  ;;  %v3348_v31 = vpop.f32.mrf.mxu0  ;;  %v9343_v36 = vadd.f32 %v3316_v9, %v2701_v37 }
 0x1f3   : > { %v2589_v0 = vpop.f32.mrf.mxu1 }
 0x1f4   : > { %v2702_v54 = vadd.f32 %v2589_v0, %v9112_v33  ;;  %v6610_v13 = vpop.f32.mrf.mxu0  ;;  %v9346_v15 = vadd.f32 %v6602_v23, %v2704_v4 }
 0x1f5   : > { %v6571_v20 = vpop.f32.mrf.mxu1 }
 0x1f6   : > { %v2707_v1 = vadd.f32 %v6571_v20, %v9124_v43  ;;  %v3351_v62 = vpop.f32.mrf.mxu0  ;;  %v9349_v26 = vadd.f32 %v3319_v61, %v2702_v54 }
 0x1f7   : > { %v2602_v41 = vpop.f32.mrf.mxu1 }
 0x1f8   : > { %v2705_v11 = vadd.f32 %v2602_v41, %v9144_v58  ;;  %v6613_v22 = vpop.f32.mrf.mxu0  ;;  %v9352_v55 = vadd.f32 %v6605_v46, %v2707_v1 }
 0x1f9   : > { %v6572_v9 = vpop.f32.mrf.mxu1 }
 0x1fa   : > { %v2708_v21 = vadd.f32 %v6572_v9, %v9153_v40  ;;  %v3364_v24 = vpop.f32.mrf.mxu0  ;;  %v9355_v33 = vadd.f32 %v3332_v51, %v2705_v11 }
 0x1fb   : > { %v2605_v23 = vpop.f32.mrf.mxu1 }
 0x1fc   : > { %v2706_v56 = vadd.f32 %v2605_v23, %v9172_v12  ;;  %v6614_v32 = vpop.f32.mrf.mxu0  ;;  %v9358_v43 = vadd.f32 %v6606_v57, %v2708_v21 }
 0x1fd   : > { %v6575_v61 = vpop.f32.mrf.mxu1 }
 0x1fe   : > { %v2711_v3 = vadd.f32 %v6575_v61, %v9188_v35  ;;  %v3367_v28 = vpop.f32.mrf.mxu0  ;;  %v9361_v58 = vadd.f32 %v3335_v18, %v2706_v56 }
 0x1ff   : > { %v2618_v46 = vpop.f32.mrf.mxu1 }
 0x200   : > { %v2709_v59 = vadd.f32 %v2618_v46, %v9217_v27  ;;  %v6617_v48 = vpop.f32.mrf.mxu0  ;;  %v9364_v40 = vadd.f32 %v6609_v29, %v2711_v3 }
 0x201   : > { %v6576_v51 = vpop.f32.mrf.mxu1 }
 0x202   : > { %v2712_v6 = vadd.f32 %v6576_v51, %v9226_v19  ;;  %v3380_v37 = vpop.f32.mrf.mxu0  ;;  %v9367_v12 = vadd.f32 %v3348_v31, %v2709_v59 }
 0x203   : > { %v2621_v57 = vpop.f32.mrf.mxu1 }
 0x204   : > { %v2710_v34 = vadd.f32 %v2621_v57, %v9237_v7  ;;  %v6618_v4 = vpop.f32.mrf.mxu0  ;;  %v9370_v35 = vadd.f32 %v6610_v13, %v2712_v6 }
 0x205   : > { %v6579_v18 = vpop.f32.mrf.mxu1 }
 0x206   : > { %v2715_v0 = vadd.f32 %v6579_v18, %v9246_v39  ;;  %v3383_v54 = vpop.f32.mrf.mxu0  ;;  %v9373_v27 = vadd.f32 %v3351_v62, %v2710_v34 }
 0x207   : > { %v2634_v29 = vpop.f32.mrf.mxu1 }
 0x208   : > { %v2713_v20 = vadd.f32 %v2634_v29, %v9253_v8  ;;  %v6621_v1 = vpop.f32.mrf.mxu0  ;;  %v9376_v19 = vadd.f32 %v6613_v22, %v2715_v0 }
 0x209   : > { %v6580_v31 = vpop.f32.mrf.mxu1 }
 0x20a   : > { %v2716_v41 = vadd.f32 %v6580_v31, %v9260_v5  ;;  %v3396_v11 = vpop.f32.mrf.mxu0  ;;  %v9379_v7 = vadd.f32 %v3364_v24, %v2713_v20 }
 0x20b   : > { %v2637_v13 = vpop.f32.mrf.mxu1 }
 0x20c   : > { %10026 = vst [vmem:[#allocation13_spill] sm:$0xff] %v9379_v7  ;;  %v2714_v9 = vadd.f32 %v2637_v13, %v9276_v60  ;;  %v6622_v21 = vpop.f32.mrf.mxu0  ;;  %v9382_v39 = vadd.f32 %v6614_v32, %v2716_v41 }
 0x20d   : > { %v6583_v62 = vpop.f32.mrf.mxu1 }
 0x20e   : > { %10027 = vst [vmem:[#allocation15_spill] sm:$0xff] %v9382_v39  ;;  %v2719_v23 = vadd.f32 %v6583_v62, %v9281_v2  ;;  %v3399_v56 = vpop.f32.mrf.mxu0  ;;  %v9385_v8 = vadd.f32 %v3367_v28, %v2714_v9 }
 0x20f   : > { %v2650_v22 = vpop.f32.mrf.mxu1 }
 0x210   : > { %10028 = vst [vmem:[#allocation14_spill] sm:$0xff] %v9385_v8  ;;  %v2717_v61 = vadd.f32 %v2650_v22, %v9285_v44  ;;  %v6625_v3 = vpop.f32.mrf.mxu0  ;;  %v9388_v5 = vadd.f32 %v6617_v48, %v2719_v23 }
 0x211   : > { %v6584_v24 = vpop.f32.mrf.mxu1 }
 0x212   : > { %10029 = vst [vmem:[#allocation16_spill] sm:$0xff] %v9388_v5  ;;  %v2720_v46 = vadd.f32 %v6584_v24, %v9289_v38  ;;  %v3412_v59 = vpop.f32.mrf.mxu0  ;;  %v9391_v60 = vadd.f32 %v3380_v37, %v2717_v61 }
 0x213   : > { %v2653_v32 = vpop.f32.mrf.mxu1 }
 0x214   : > { %10030 = vst [vmem:[#allocation18_spill] sm:$0xff] %v9391_v60  ;;  %v2718_v51 = vadd.f32 %v2653_v32, %v9299_v10  ;;  %v6626_v6 = vpop.f32.mrf.mxu0  ;;  %v9394_v2 = vadd.f32 %v6618_v4, %v2720_v46 }
 0x215   : > { %v6587_v28 = vpop.f32.mrf.mxu1 }
 0x216   : > { %10031 = vst [vmem:[#allocation19_spill] sm:$0xff] %v9394_v2  ;;  %v2723_v57 = vadd.f32 %v6587_v28, %v9303_v14  ;;  %v3415_v34 = vpop.f32.mrf.mxu0  ;;  %v9397_v44 = vadd.f32 %v3383_v54, %v2718_v51 }
 0x217   : > { %v2666_v48 = vpop.f32.mrf.mxu1 }
 0x218   : > { %10032 = vst [vmem:[#allocation22_spill] sm:$0xff] %v9397_v44  ;;  %v2721_v18 = vadd.f32 %v2666_v48, %v9306_v49  ;;  %v9400_v0 = vpop.f32.mrf.mxu0  ;;  %v9402_v38 = vadd.f32 %v6621_v1, %v2723_v57 }
 0x219   : > { %v6588_v37 = vpop.f32.mrf.mxu1 }
 0x21a   : > { %10033 = vst [vmem:[#allocation27_spill] sm:$0xff] %v9402_v38  ;;  %v2724_v29 = vadd.f32 %v6588_v37, %v9309_v45  ;;  %v9405_v10 = vpop.f32.mrf.mxu0  ;;  %v9407_v4 = vadd.f32 %v3396_v11, %v2721_v18 }
 0x21b   : > { %v2669_v20 = vpop.f32.mrf.mxu1 }
 0x21c   : > { %10034 = vst [vmem:[#allocation29_spill] sm:$0xff] %v9407_v4  ;;  %v2722_v14 = vadd.f32 %v2669_v20, %v9313_v63  ;;  %v9410_v31 = vpop.f32.mrf.mxu0  ;;  %v9412_v54 = vadd.f32 %v6622_v21, %v2724_v29 }
 0x21d   : > { %v6591_v41 = vpop.f32.mrf.mxu1 }
 0x21e   : > { %10035 = vst [vmem:[#allocation12_spill] sm:$0xff] %v9412_v54  ;;  %v2727_v49 = vadd.f32 %v6591_v41, %v9316_v53  ;;  %v9415_v13 = vpop.f32.mrf.mxu0  ;;  %v9417_v1 = vadd.f32 %v3399_v56, %v2722_v14 }
 0x21f   : > { %v2682_v9 = vpop.f32.mrf.mxu1 }
 0x220   : > { %10036 = vst [vmem:[#allocation31_spill] sm:$0xff] %v9417_v1  ;;  %v2725_v45 = vadd.f32 %v2682_v9, %v9319_v17  ;;  %v9420_v62 = vpop.f32.mrf.mxu0  ;;  %v9422_v11 = vadd.f32 %v6625_v3, %v2727_v49 }
 0x221   : > { %v6592_v23 = vpop.f32.mrf.mxu1 }
 0x222   : > { %10037 = vst [vmem:[#allocation42_spill] sm:$0xff] %v9422_v11  ;;  %v2728_v63 = vadd.f32 %v6592_v23, %v9322_v25  ;;  %v9425_v22 = vpop.f32.mrf.mxu0  ;;  %v9427_v21 = vadd.f32 %v3412_v59, %v2725_v45 }
 0x223   : > { %v2685_v61 = vpop.f32.mrf.mxu1 }
 0x224   : > { %10038 = vst [vmem:[#allocation33_spill] sm:$0xff] %v9427_v21  ;;  %v2726_v53 = vadd.f32 %v2685_v61, %v9325_v16  ;;  %v9430_v24 = vpop.f32.mrf.mxu0  ;;  %v9432_v56 = vadd.f32 %v6626_v6, %v2728_v63 }
 0x225   : > { %v6631_v46 = vpop.f32.mrf.mxu1 }
 0x226   : > { %10039 = vst [vmem:[#allocation34_spill] sm:$0xff] %v9432_v56  ;;  %v9434_v17 = vpop.f32.mrf.mxu0  ;;  %v9436_v32 = vadd.f32 %v3415_v34, %v2726_v53 }
 0x227   : > { %v3774_v3 = vpop.f32.mrf.mxu1 }
 0x228   : > { %10040 = vst [vmem:[#allocation36_spill] sm:$0xff] %v9436_v32  ;;  %v9438_v51 = vpop.f32.mrf.mxu0 }
 0x229   : > { %v6632_v25 = vpop.f32.mrf.mxu1 }
 0x22a   : > { %v9440_v28 = vpop.f32.mrf.mxu0 }
 0x22b   : > { %v9442_v59 = vpop.f32.mrf.mxu1 }
 0x22c   : > { %v9444_v57 = vpop.f32.mrf.mxu0 }
 0x22d   : > { %v9446_v16 = vpop.f32.mrf.mxu1 }
 0x22e   : > { %v9448_v48 = vpop.f32.mrf.mxu0 }
 0x22f   : > { %v9450_v6 = vpop.f32.mrf.mxu1 }
 0x230   : > { %v9452_v18 = vpop.f32.mrf.mxu0 }
 0x231   : > { %v9454_v34 = vpop.f32.mrf.mxu1 }
 0x232   : > { %v9456_v37 = vpop.f32.mrf.mxu0 }
 0x233   : > { %v9458_v29 = vpop.f32.mrf.mxu1 }
 0x234   : > { %v9460_v20 = vpop.f32.mrf.mxu0 }
 0x235   : > { %10041 = vst [vmem:[#allocation17_spill] sm:$0xff] %v9460_v20  ;;  %v9462_v14 = vpop.f32.mrf.mxu1 }
 0x236   : > { %v9464_v41 = vpop.f32.mrf.mxu0 }
 0x237   : > { %10042 = vst [vmem:[#allocation21_spill] sm:$0xff] %v9464_v41  ;;  %v9466_v49 = vpop.f32.mrf.mxu1 }
 0x238   : > { %v9468_v9 = vpop.f32.mrf.mxu0 }
 0x239   : > { %10043 = vst [vmem:[#allocation20_spill] sm:$0xff] %v9468_v9  ;;  %v9470_v45 = vpop.f32.mrf.mxu1 }
 0x23a   : > { %v9472_v23 = vpop.f32.mrf.mxu0 }
 0x23b   : > { %10044 = vst [vmem:[#allocation23_spill] sm:$0xff] %v9472_v23  ;;  %v9474_v63 = vpop.f32.mrf.mxu1 }
 0x23c   : > { %v9476_v61 = vpop.f32.mrf.mxu0 }
 0x23d   : > { %10045 = vst [vmem:[#allocation24_spill] sm:$0xff] %v9476_v61  ;;  %v9478_v53 = vpop.f32.mrf.mxu1 }
 0x23e   : > { %v9480_v32 = vpop.f32.mrf.mxu0 }
 0x23f   : > { %10046 = vst [vmem:[#allocation25_spill] sm:$0xff] %v9480_v32  ;;  %v9482_v56 = vpop.f32.mrf.mxu1 }
 0x240   : > { %v9484_v21 = vpop.f32.mrf.mxu0 }
 0x241   : > { %10047 = vst [vmem:[#allocation26_spill] sm:$0xff] %v9484_v21  ;;  %v9486_v11 = vpop.f32.mrf.mxu1 }
 0x242   : > { %v9488_v1 = vpop.f32.mrf.mxu0 }
 0x243   : > { %10048 = vst [vmem:[#allocation28_spill] sm:$0xff] %v9488_v1  ;;  %v9490_v54 = vpop.f32.mrf.mxu1 }
 0x244   : > { %v9492_v4 = vpop.f32.mrf.mxu0 }
 0x245   : > { %10049 = vst [vmem:[#allocation30_spill] sm:$0xff] %v9492_v4  ;;  %v9494_v38 = vpop.f32.mrf.mxu1 }
 0x246   : > { %v9496_v44 = vpop.f32.mrf.mxu0 }
 0x247   : > { %10050 = vst [vmem:[#allocation32_spill] sm:$0xff] %v9496_v44  ;;  %v9498_v2 = vpop.f32.mrf.mxu1 }
 0x248   : > { %10051 = vst [vmem:[#allocation35_spill] sm:$0xff] %v9498_v2  ;;  %v9500_v60 = vpop.f32.mrf.mxu0 }
 0x249   : > { %10052 = vst [vmem:[#allocation37_spill] sm:$0xff] %v9500_v60  ;;  %v9502_v32 = vpop.f32.mrf.mxu1 }
 0x24a   : > { %10053 = vst [vmem:[#allocation38_spill] sm:$0xff] %v9502_v32  ;;  %v9504_v61 = vpop.f32.mrf.mxu0 }
 0x24b   : > { %10054 = vst [vmem:[#allocation39_spill] sm:$0xff] %v9504_v61  ;;  %v9506_v21 = vpop.f32.mrf.mxu1 }
 0x24c   : > { %10055 = vst [vmem:[#allocation40_spill] sm:$0xff] %v9506_v21  ;;  %v9508_v5 = vpop.f32.mrf.mxu0 }
 0x24d   : > { %10056 = vst [vmem:[#allocation41_spill] sm:$0xff] %v9508_v5  ;;  %v9510_v1 = vpop.f32.mrf.mxu1 }
 0x24e   : > { %10057 = vst [vmem:[#allocation43_spill] sm:$0xff] %v9510_v1  ;;  %v9512_v8 = vpop.f32.mrf.mxu0 }
 0x24f   : > { %10058 = vst [vmem:[#allocation44_spill] sm:$0xff] %v9512_v8  ;;  %v9514_v4 = vpop.f32.mrf.mxu1 }
 0x250   : > { %10059 = vst [vmem:[#allocation45_spill] sm:$0xff] %v9514_v4  ;;  %v9516_v23 = vpop.f32.mrf.mxu0 }
 0x251   : > { %10060 = vst [vmem:[#allocation46_spill] sm:$0xff] %v9516_v23  ;;  %v9518_v44 = vpop.f32.mrf.mxu1 }
 0x252   : > { %10061 = vst [vmem:[#allocation47_spill] sm:$0xff] %v9518_v44  ;;  %v9520_v9 = vpop.f32.mrf.mxu0 }
 0x253   : > { %10062 = vst [vmem:[#allocation48_spill] sm:$0xff] %v9520_v9  ;;  %v9522_v60 = vpop.f32.mrf.mxu1 }
 0x254   : > { %10063 = vst [vmem:[#allocation49_spill] sm:$0xff] %v9522_v60  ;;  %v9524_v32 = vpop.f32.mrf.mxu0 }
 0x255   : > { %10064 = vst [vmem:[#allocation50_spill] sm:$0xff] %v9524_v32  ;;  %v9526_v61 = vpop.f32.mrf.mxu1  ;;  %v3903_v32 = vadd.f32 %v6631_v46, %v9328_v42 }
 0x256   : > { %10065 = vst [vmem:[#allocation51_spill] sm:$0xff] %v9526_v61  ;;  %v9528_v21 = vpop.f32.mrf.mxu0 }
 0x257   : > { %10066 = vst [vmem:[#allocation52_spill] sm:$0xff] %v9528_v21  ;;  %v9530_v5 = vpop.f32.mrf.mxu1  ;;  %v3901_v21 = vadd.f32 %v3774_v3, %v9331_v47  ;;  %v9558_v47 = vld [vmem:[%s9856_s2] ss:$0 sm:$0xff] }
 0x258   : > { %10067 = vst [vmem:[#allocation53_spill] sm:$0xff] %v9530_v5  ;;  %v6733_v1 = vpop.f32.mrf.mxu0 }
 0x259   : > { %v9532_v8 = vpop.f32.mrf.mxu1  ;;  %v4264_v42 = vadd.f32 %v9405_v10, %v3901_v21 }
 0x25a   : > { %10068 = vst [vmem:[#allocation54_spill] sm:$0xff] %v9532_v8  ;;  %v5341_v4 = vpop.f32.mrf.mxu0  ;;  %v3904_v8 = vadd.f32 %v6632_v25, %v9334_v30 }
 0x25b   : > { %v9534_v39 = vpop.f32.mrf.mxu1 }
 0x25c   : > { %10069 = vst [vmem:[#allocation55_spill] sm:$0xff] %v9534_v39  ;;  %v6734_v23 = vpop.f32.mrf.mxu0  ;;  %v4266_v39 = vadd.f32 %v9400_v0, %v3903_v32  ;;  %v4267_v0 = vadd.f32 %v9410_v31, %v3904_v8 }
 0x25d   : > { %v9536_v44 = vpop.f32.mrf.mxu1 }
 0x25e   : > { %10070 = vst [vmem:[#allocation56_spill] sm:$0xff] %v9536_v44  ;;  %v5344_v9 = vpop.f32.mrf.mxu0 }
 0x25f   : > { %v9538_v41 = vpop.f32.mrf.mxu1 }
 0x260   : > { %10071 = vst [vmem:[#allocation57_spill] sm:$0xff] %v9538_v41  ;;  %v6737_v60 = vpop.f32.mrf.mxu0  ;;  %v3902_v41 = vadd.f32 %v9442_v59, %v9337_v52  ;;  %v3907_v52 = vadd.f32 %v9446_v16, %v9340_v50 }
 0x261   : > { %v9541_v61 = vpop.f32.mrf.mxu1 }
 0x262   : > { %10072 = vst [vmem:[#allocation58_spill] sm:$0xff] %v9541_v61  ;;  %v5357_v5 = vpop.f32.mrf.mxu0 }
 0x263   : > { %v9544_v20 = vpop.f32.mrf.mxu1 }
 0x264   : > { %10073 = vst [vmem:[#allocation59_spill] sm:$0xff] %v9544_v20  ;;  %v9548_v2 = vpop.f32.mrf.mxu0  ;;  %v4265_v20 = vadd.f32 %v9415_v13, %v3902_v41  ;;  %v4270_v13 = vadd.f32 %v9420_v62, %v3907_v52 }
 0x265   : > { %v6699_v44 = vpop.f32.mrf.mxu1 }
 0x266   : > { %v4996_v7 = vadd.f32 %v6699_v44, %v4266_v39  ;;  %v9553_v46 = vpop.f32.mrf.mxu0  ;;  %v3905_v39 = vadd.f32 %v9450_v6, %v9343_v36 }
 0x267   : > { %v4867_v3 = vpop.f32.mrf.mxu1 }
 0x268   : > { %v5470_v30 = vadd.f32 %v6733_v1, %v4996_v7  ;;  %v4994_v25 = vadd.f32 %v4867_v3, %v4264_v42  ;;  %v9561_v32 = vpop.f32.mrf.mxu0  ;;  %v3908_v7 = vadd.f32 %v9454_v34, %v9346_v15  ;;  %v4268_v41 = vadd.f32 %v9425_v22, %v3905_v39 }
 0x269   : > { %v6700_v44 = vpop.f32.mrf.mxu1 }
 0x26a   : > { %v5509_v10 = vadd.f32 %v9558_v47, %v5470_v30  ;;  %v5468_v21 = vadd.f32 %v5341_v4, %v4994_v25  ;;  %v4997_v59 = vadd.f32 %v6700_v44, %v4267_v0  ;;  %v9569_v61 = vpop.f32.mrf.mxu0  ;;  %v3906_v4 = vadd.f32 %v9458_v29, %v9349_v26 }
 0x26b   : > { %v4870_v8 = vpop.f32.mrf.mxu1  ;;  %v4271_v26 = vadd.f32 %v9430_v24, %v3908_v7  ;;  %v3912_v7 = vadd.f32 %v9470_v45, %v9358_v43 }
 0x26c   : > { %v5541_v31 = vmax.f32 %v5509_v10, 0.0  ;;  %v5507_v1 = vadd.f32 %v9558_v47, %v5468_v21  ;;  %v5471_v50 = vadd.f32 %v6734_v23, %v4997_v59  ;;  %v4995_v16 = vadd.f32 %v4870_v8, %v4265_v20  ;;  %v9574_v36 = vpop.f32.mrf.mxu0 }
 0x26d   : > { %v6703_v6 = vpop.f32.mrf.mxu1  ;;  %v3911_v20 = vadd.f32 %v9462_v14, %v9352_v55  ;;  %v4269_v52 = vadd.f32 %v9434_v17, %v3906_v4  ;;  %v3909_v59 = vadd.f32 %v9466_v49, %v9355_v33  ;;  %v3910_v33 = vadd.f32 %v9474_v63, %v9361_v58 }
 0x26e   : > { %v6273_v42 = vpack.c.bf16 %v5541_v31, %v5541_v31  ;;  %v5539_v15 = vmax.f32 %v5507_v1, 0.0  ;;  %v5510_v34 = vadd.f32 %v9558_v47, %v5471_v50  ;;  %v5469_v3 = vadd.f32 %v5344_v9, %v4995_v16  ;;  %v9581_v30 = vpop.f32.mrf.mxu0 }
 0x26f   : > { %v5000_v23 = vadd.f32 %v6703_v6, %v4270_v13  ;;  %v4883_v25 = vpop.f32.mrf.mxu1  ;;  %v4274_v17 = vadd.f32 %v9438_v51, %v3911_v20  ;;  %v4272_v58 = vadd.f32 %v9440_v28, %v3909_v59  ;;  %v4273_v28 = vadd.f32 %v9448_v48, %v3910_v33  ;;  %v10077_v33 = vld [vmem:[#allocation21_spill] sm:$0xff] }
 0x270   : > { %5702 = vst.msk [vmem:[%s9588_s24 + $0x8] sm:$0xf] %vm5699_vm0, %v6273_v42  ;;  %v6271_v62 = vpack.c.bf16 %v5539_v15, %v5539_v15  ;;  %v5542_v22 = vmax.f32 %v5510_v34, 0.0  ;;  %v5508_v29 = vadd.f32 %v9558_v47, %v5469_v3  ;;  %v4998_v9 = vadd.f32 %v4883_v25, %v4268_v41  ;;  %v9593_v0 = vpop.f32.mrf.mxu0 }
 0x271   : > { %v5474_v55 = vadd.f32 %v6737_v60, %v5000_v23  ;;  %v6704_v14 = vpop.f32.mrf.mxu1  ;;  %v4275_v42 = vadd.f32 %v9444_v57, %v3912_v7  ;;  %v3913_v23 = vadd.f32 %v9482_v56, %v9367_v12 }
 0x272   : > { %5700 = vst.msk [vmem:[%s9588_s24] sm:$0xf] %vm5699_vm0, %v6271_v62  ;;  %v6274_v24 = vpack.c.bf16 %v5542_v22, %v5542_v22  ;;  %v5540_v39 = vmax.f32 %v5508_v29, 0.0  ;;  %v5472_v44 = vadd.f32 %v5357_v5, %v4998_v9  ;;  %v5001_v10 = vadd.f32 %v6704_v14, %v4271_v26  ;;  %v9598_v21 = vpop.f32.mrf.mxu0 }
 0x273   : > { %v5513_v60 = vadd.f32 %v9558_v47, %v5474_v55  ;;  %v4886_v8 = vpop.f32.mrf.mxu1 }
 0x274   : > { %5703 = vst.msk [vmem:[%s9588_s24 + $0xc] sm:$0xf] %vm5699_vm0, %v6274_v24  ;;  %v6272_v31 = vpack.c.bf16 %v5540_v39, %v5540_v39  ;;  %v5511_v5 = vadd.f32 %v9558_v47, %v5472_v44  ;;  %v5475_v1 = vadd.f32 %v9548_v2, %v5001_v10  ;;  %v4999_v50 = vadd.f32 %v4886_v8, %v4269_v52  ;;  %v9610_v16 = vpop.f32.mrf.mxu0 }
 0x275   : > { %v5545_v49 = vmax.f32 %v5513_v60, 0.0  ;;  %v6707_v43 = vpop.f32.mrf.mxu1  ;;  %v3915_v2 = vadd.f32 %v9478_v53, %v9364_v40  ;;  %v3916_v52 = vadd.f32 %v9486_v11, %v9370_v35  ;;  %v3914_v24 = vadd.f32 %v9490_v54, %v9373_v27 }
 0x276   : > { %5701 = vst.msk [vmem:[%s9588_s24 + $0x4] sm:$0xf] %vm5699_vm0, %v6272_v31  ;;  %v5543_v45 = vmax.f32 %v5511_v5, 0.0  ;;  %v5514_v51 = vadd.f32 %v9558_v47, %v5475_v1  ;;  %v5473_v4 = vadd.f32 %v9553_v46, %v4999_v50  ;;  %v5004_v13 = vadd.f32 %v6707_v43, %v4274_v17  ;;  %v9618_v6 = vpop.f32.mrf.mxu0  ;;  %v10075_v31 = vld [vmem:[#allocation35_spill] sm:$0xff]  ;;  %v10076_v50 = vld [vmem:[#allocation17_spill] sm:$0xff] }
 0x277   : > { %v6277_v41 = vpack.c.bf16 %v5545_v49, %v5545_v49  ;;  %v4899_v63 = vpop.f32.mrf.mxu1  ;;  %v4278_v12 = vadd.f32 %v9452_v18, %v3915_v2  ;;  %v4276_v18 = vadd.f32 %v9456_v37, %v3913_v23  ;;  %v3919_v35 = vadd.f32 %v9494_v38, %v9376_v19  ;;  %v10079_v2 = vld [vmem:[#allocation38_spill] sm:$0xff] }
 0x278   : > { %v6275_v15 = vpack.c.bf16 %v5543_v45, %v5543_v45  ;;  %v5546_v34 = vmax.f32 %v5514_v51, 0.0  ;;  %v5512_v3 = vadd.f32 %v9558_v47, %v5473_v4  ;;  %v5478_v20 = vadd.f32 %v9561_v32, %v5004_v13  ;;  %v9626_v46 = vpop.f32.mrf.mxu0  ;;  %v10078_v13 = vld [vmem:[#allocation15_spill] sm:$0xff] }
 0x279   : > { %5706 = vst.msk [vmem:[%s9588_s24 + $0x18] sm:$0xf] %vm5699_vm0, %v6277_v41  ;;  %v5002_v40 = vadd.f32 %v4899_v63, %v4272_v58  ;;  %v6708_v53 = vpop.f32.mrf.mxu1  ;;  %v4279_v19 = vadd.f32 %v10076_v50, %v3916_v52  ;;  %v4277_v49 = vadd.f32 %v10077_v33, %v3914_v24  ;;  %v3920_v41 = vadd.f32 %v10079_v2, %v10078_v13  ;;  %v10091_v50 = vld [vmem:[#allocation25_spill] sm:$0xff]  ;;  %v10092_v33 = vld [vmem:[#allocation26_spill] sm:$0xff] }
 0x27a   : > { %5704 = vst.msk [vmem:[%s9588_s24 + $0x10] sm:$0xf] %vm5699_vm0, %v6275_v15  ;;  %v6278_v57 = vpack.c.bf16 %v5546_v34, %v5546_v34  ;;  %v5544_v25 = vmax.f32 %v5512_v3, 0.0  ;;  %v5517_v26 = vadd.f32 %v9558_v47, %v5478_v20  ;;  %v5005_v62 = vadd.f32 %v6708_v53, %v4275_v42  ;;  %v9636_v32 = vpop.f32.mrf.mxu0  ;;  %v10080_v42 = vld [vmem:[#allocation20_spill] sm:$0xff]  ;;  %v10093_v13 = vld [vmem:[#allocation22_spill] sm:$0xff] }
 0x27b   : > { %v5476_v22 = vadd.f32 %v9569_v61, %v5002_v40  ;;  %v4902_v29 = vpop.f32.mrf.mxu1  ;;  %v4282_v15 = vadd.f32 %v10080_v42, %v3919_v35 }
 0x27c   : > { %5707 = vst.msk [vmem:[%s9588_s24 + $0x1c] sm:$0xf] %vm5699_vm0, %v6278_v57  ;;  %v6276_v56 = vpack.c.bf16 %v5544_v25, %v5544_v25  ;;  %v5549_v9 = vmax.f32 %v5517_v26, 0.0  ;;  %v5479_v48 = vadd.f32 %v9574_v36, %v5005_v62  ;;  %v5003_v55 = vadd.f32 %v4902_v29, %v4273_v28  ;;  %v9643_v14 = vpop.f32.mrf.mxu0  ;;  %v10081_v28 = vld [vmem:[#allocation23_spill] sm:$0xff] }
 0x27d   : > { %v5515_v61 = vadd.f32 %v9558_v47, %v5476_v22  ;;  %v6711_v39 = vpop.f32.mrf.mxu1 }
 0x27e   : > { %5705 = vst.msk [vmem:[%s9588_s24 + $0x14] sm:$0xf] %vm5699_vm0, %v6276_v56  ;;  %v6281_v44 = vpack.c.bf16 %v5549_v9, %v5549_v9  ;;  %v5518_v36 = vadd.f32 %v9558_v47, %v5479_v48  ;;  %v5477_v10 = vadd.f32 %v9581_v30, %v5003_v55  ;;  %v5008_v59 = vadd.f32 %v6711_v39, %v4278_v12  ;;  %v9655_v7 = vpop.f32.mrf.mxu0  ;;  %v10074_v30 = vld [vmem:[#allocation13_spill] sm:$0xff]  ;;  %v10082_v12 = vld [vmem:[#allocation14_spill] sm:$0xff]  ;;  %v10083_v56 = vld [vmem:[#allocation40_spill] sm:$0xff] }
 0x27f   : > { %v5547_v11 = vmax.f32 %v5515_v61, 0.0  ;;  %v4915_v27 = vpop.f32.mrf.mxu1  ;;  %v3917_v5 = vadd.f32 %v10075_v31, %v10074_v30  ;;  %v3918_v9 = vadd.f32 %v10083_v56, %v10082_v12  ;;  %v10084_v48 = vld [vmem:[#allocation16_spill] sm:$0xff]  ;;  %v10085_v55 = vld [vmem:[#allocation43_spill] sm:$0xff] }
 0x280   : > { %5710 = vst.msk [vmem:[%s9588_s24 + $0x28] sm:$0xf] %vm5699_vm0, %v6281_v44  ;;  %v5550_v54 = vmax.f32 %v5518_v36, 0.0  ;;  %v5516_v37 = vadd.f32 %v9558_v47, %v5477_v10  ;;  %v5482_v60 = vadd.f32 %v9593_v0, %v5008_v59  ;;  %v5006_v8 = vadd.f32 %v4915_v27, %v4276_v18  ;;  %v9663_v17 = vpop.f32.mrf.mxu0  ;;  %v10086_v61 = vld [vmem:[#allocation24_spill] sm:$0xff]  ;;  %v10087_v10 = vld [vmem:[#allocation18_spill] sm:$0xff]  ;;  %v10088_v59 = vld [vmem:[#allocation45_spill] sm:$0xff] }
 0x281   : > { %v6279_v1 = vpack.c.bf16 %v5547_v11, %v5547_v11  ;;  %v6712_v38 = vpop.f32.mrf.mxu1  ;;  %v4280_v57 = vadd.f32 %v10081_v28, %v3917_v5  ;;  %v3923_v52 = vadd.f32 %v10085_v55, %v10084_v48  ;;  %v4283_v39 = vadd.f32 %v10086_v61, %v3920_v41  ;;  %v10089_v31 = vld [vmem:[#allocation19_spill] sm:$0xff]  ;;  %v10100_v48 = vld [vmem:[#allocation53_spill] sm:$0xff] }
 0x282   : > { %v6282_v43 = vpack.c.bf16 %v5550_v54, %v5550_v54  ;;  %v5548_v45 = vmax.f32 %v5516_v37, 0.0  ;;  %v5521_v51 = vadd.f32 %v9558_v47, %v5482_v60  ;;  %v5480_v4 = vadd.f32 %v9598_v21, %v5006_v8  ;;  %v9671_v0 = vpop.f32.mrf.mxu0  ;;  %v10090_v5 = vld [vmem:[#allocation47_spill] sm:$0xff] }
 0x283   : > { %5708 = vst.msk [vmem:[%s9588_s24 + $0x20] sm:$0xf] %vm5699_vm0, %v6279_v1  ;;  %v5009_v58 = vadd.f32 %v6712_v38, %v4279_v19  ;;  %v4918_v63 = vpop.f32.mrf.mxu1  ;;  %v3921_v35 = vadd.f32 %v10088_v59, %v10087_v10  ;;  %v4281_v19 = vadd.f32 %v10091_v50, %v3918_v9  ;;  %v10098_v12 = vld [vmem:[#allocation51_spill] sm:$0xff]  ;;  %v10099_v9 = vld [vmem:[#allocation29_spill] sm:$0xff] }
 0x284   : > { %5711 = vst.msk [vmem:[%s9588_s24 + $0x2c] sm:$0xf] %vm5699_vm0, %v6282_v43  ;;  %v6280_v34 = vpack.c.bf16 %v5548_v45, %v5548_v45  ;;  %v5553_v3 = vmax.f32 %v5521_v51, 0.0  ;;  %v5519_v20 = vadd.f32 %v9558_v47, %v5480_v4  ;;  %v5007_v23 = vadd.f32 %v4918_v63, %v4277_v49  ;;  %v9681_v21 = vpop.f32.mrf.mxu0  ;;  %v10095_v63 = vld [vmem:[#allocation28_spill] sm:$0xff]  ;;  %v10107_v50 = vld [vmem:[#allocation39_spill] sm:$0xff] }
 0x285   : > { %v5483_v40 = vadd.f32 %v9610_v16, %v5009_v58  ;;  %v6715_v53 = vpop.f32.mrf.mxu1  ;;  %v4286_v49 = vadd.f32 %v10092_v33, %v3923_v52  ;;  %v4284_v42 = vadd.f32 %v10095_v63, %v3921_v35  ;;  %v3925_v55 = vadd.f32 %v10100_v48, %v10099_v9  ;;  %v10116_v48 = vld [vmem:[#allocation46_spill] sm:$0xff] }
 0x286   : > { %5709 = vst.msk [vmem:[%s9588_s24 + $0x24] sm:$0xf] %vm5699_vm0, %v6280_v34  ;;  %v6285_v25 = vpack.c.bf16 %v5553_v3, %v5553_v3  ;;  %v5551_v26 = vmax.f32 %v5519_v20, 0.0  ;;  %v5481_v62 = vadd.f32 %v9618_v6, %v5007_v23  ;;  %v5012_v22 = vadd.f32 %v6715_v53, %v4282_v15  ;;  %v9688_v29 = vpop.f32.mrf.mxu0  ;;  %v10096_v53 = vld [vmem:[#allocation30_spill] sm:$0xff] }
 0x287   : > { %v5522_v16 = vadd.f32 %v9558_v47, %v5483_v40  ;;  %v4931_v24 = vpop.f32.mrf.mxu1 }
 0x288   : > { %5714 = vst.msk [vmem:[%s9588_s24 + $0x38] sm:$0xf] %vm5699_vm0, %v6285_v25  ;;  %v6283_v18 = vpack.c.bf16 %v5551_v26, %v5551_v26  ;;  %v5520_v6 = vadd.f32 %v9558_v47, %v5481_v62  ;;  %v5486_v44 = vadd.f32 %v9626_v46, %v5012_v22  ;;  %v5010_v36 = vadd.f32 %v4931_v24, %v4280_v57  ;;  %v9702_v54 = vpop.f32.mrf.mxu0  ;;  %v10097_v22 = vld [vmem:[#allocation27_spill] sm:$0xff] }
 0x289   : > { %v5554_v11 = vmax.f32 %v5522_v16, 0.0  ;;  %v6716_v27 = vpop.f32.mrf.mxu1  ;;  %v3924_v46 = vadd.f32 %v10090_v5, %v10089_v31  ;;  %v3927_v56 = vadd.f32 %v10098_v12, %v10097_v22  ;;  %v10101_v16 = vld [vmem:[#allocation32_spill] sm:$0xff]  ;;  %v10106_v5 = vld [vmem:[#allocation37_spill] sm:$0xff]  ;;  %v10114_v22 = vld [vmem:[#allocation34_spill] sm:$0xff] }
 0x28a   : > { %5712 = vst.msk [vmem:[%s9588_s24 + $0x30] sm:$0xf] %vm5699_vm0, %v6283_v18  ;;  %v5552_v37 = vmax.f32 %v5520_v6, 0.0  ;;  %v5525_v60 = vadd.f32 %v9558_v47, %v5486_v44  ;;  %v5484_v8 = vadd.f32 %v9636_v32, %v5010_v36  ;;  %v5013_v30 = vadd.f32 %v6716_v27, %v4283_v39  ;;  %v10094_v32 = vld [vmem:[#allocation49_spill] sm:$0xff]  ;;  %v5437_v15 = vpop.f32.mrf.mxu0  ;;  %v10102_v44 = vld [vmem:[#allocation12_spill] sm:$0xff]  ;;  %v10103_v36 = vld [vmem:[#allocation54_spill] sm:$0xff] }
 0x28b   : > { %v6286_v1 = vpack.c.bf16 %v5554_v11, %v5554_v11  ;;  %v4934_v38 = vpop.f32.mrf.mxu1  ;;  %v3922_v2 = vadd.f32 %v10094_v32, %v10093_v13  ;;  %v4287_v28 = vadd.f32 %v10096_v53, %v3924_v46  ;;  %v3928_v10 = vadd.f32 %v10103_v36, %v10102_v44  ;;  %v10115_v12 = vld [vmem:[#allocation58_spill] sm:$0xff] }
 0x28c   : > { %v6284_v43 = vpack.c.bf16 %v5552_v37, %v5552_v37  ;;  %v5557_v45 = vmax.f32 %v5525_v60, 0.0  ;;  %v5523_v51 = vadd.f32 %v9558_v47, %v5484_v8  ;;  %v5487_v4 = vadd.f32 %v9643_v14, %v5013_v30  ;;  %v6758_v61 = vpop.f32.mrf.mxu0  ;;  %v10104_v8 = vld [vmem:[#allocation31_spill] sm:$0xff] }
 0x28d   : > { %5715 = vst.msk [vmem:[%s9588_s24 + $0x3c] sm:$0xf] %vm5699_vm0, %v6286_v1  ;;  %v5011_v41 = vadd.f32 %v4934_v38, %v4281_v19  ;;  %v6719_v58 = vpop.f32.mrf.mxu1  ;;  %v4285_v24 = vadd.f32 %v10101_v16, %v3922_v2  ;;  %v10105_v30 = vld [vmem:[#allocation55_spill] sm:$0xff]  ;;  %v4290_v46 = vadd.f32 %v10106_v5, %v3927_v56  ;;  %v4288_v19 = vadd.f32 %v10107_v50, %v3925_v55  ;;  %v10110_v2 = vld [vmem:[#allocation41_spill] sm:$0xff] }
 0x28e   : > { %5713 = vst.msk [vmem:[%s9588_s24 + $0x34] sm:$0xf] %vm5699_vm0, %v6284_v43  ;;  %v6289_v34 = vpack.c.bf16 %v5557_v45, %v5557_v45  ;;  %v5555_v3 = vmax.f32 %v5523_v51, 0.0  ;;  %v5526_v20 = vadd.f32 %v9558_v47, %v5487_v4  ;;  %v5016_v23 = vadd.f32 %v6719_v58, %v4286_v49  ;;  %v5440_v38 = vpop.f32.mrf.mxu0  ;;  %v10109_v51 = vld [vmem:[#allocation56_spill] sm:$0xff] }
 0x28f   : > { %v5485_v14 = vadd.f32 %v9655_v7, %v5011_v41  ;;  %v4947_v40 = vpop.f32.mrf.mxu1  ;;  %v3926_v31 = vadd.f32 %v10105_v30, %v10104_v8  ;;  %v4291_v41 = vadd.f32 %v10110_v2, %v3928_v10  ;;  %v3932_v56 = vadd.f32 %v10115_v12, %v10114_v22 }
 0x290   : > { %5718 = vst.msk [vmem:[%s9588_s24 + $0x48] sm:$0xf] %vm5699_vm0, %v6289_v34  ;;  %v6287_v57 = vpack.c.bf16 %v5555_v3, %v5555_v3  ;;  %v5558_v25 = vmax.f32 %v5526_v20, 0.0  ;;  %v5490_v26 = vadd.f32 %v9663_v17, %v5016_v23  ;;  %v5014_v62 = vadd.f32 %v4947_v40, %v4284_v42  ;;  %v10111_v20 = vld [vmem:[#allocation44_spill] sm:$0xff] }
 0x291   : > { %v5524_v52 = vadd.f32 %v9558_v47, %v5485_v14  ;;  %v6720_v7 = vpop.f32.mrf.mxu1  ;;  %v4289_v23 = vadd.f32 %v10111_v20, %v3926_v31  ;;  %v6761_v14 = vpop.f32.mrf.mxu0 }
 0x292   : > { %5716 = vst.msk [vmem:[%s9588_s24 + $0x40] sm:$0xf] %vm5699_vm0, %v6287_v57  ;;  %v6290_v39 = vpack.c.bf16 %v5558_v25, %v5558_v25  ;;  %v5529_v18 = vadd.f32 %v9558_v47, %v5490_v26  ;;  %v5488_v17 = vadd.f32 %v9671_v0, %v5014_v62  ;;  %v5017_v6 = vadd.f32 %v6720_v7, %v4287_v28  ;;  %v10112_v25 = vld [vmem:[#allocation33_spill] sm:$0xff] }
 0x293   : > { %v5556_v59 = vmax.f32 %v5524_v52, 0.0  ;;  %v4950_v35 = vpop.f32.mrf.mxu1  ;;  %v10113_v26 = vld [vmem:[#allocation57_spill] sm:$0xff]  ;;  %v5453_v44 = vpop.f32.mrf.mxu0 }
 0x294   : > { %5719 = vst.msk [vmem:[%s9588_s24 + $0x4c] sm:$0xf] %vm5699_vm0, %v6290_v39  ;;  %v5561_v11 = vmax.f32 %v5529_v18, 0.0  ;;  %v5527_v27 = vadd.f32 %v9558_v47, %v5488_v17  ;;  %v5491_v37 = vadd.f32 %v9681_v21, %v5017_v6  ;;  %v5015_v60 = vadd.f32 %v4950_v35, %v4285_v24  ;;  %v10108_v21 = vld [vmem:[#allocation42_spill] sm:$0xff]  ;;  %v10117_v24 = vld [vmem:[#allocation36_spill] sm:$0xff]  ;;  %v10118_v39 = vld [vmem:[#allocation59_spill] sm:$0xff] }
 0x295   : > { %v6288_v0 = vpack.c.bf16 %v5556_v59, %v5556_v59  ;;  %v6723_v1 = vpop.f32.mrf.mxu1  ;;  %v3931_v4 = vadd.f32 %v10109_v51, %v10108_v21  ;;  %v3929_v62 = vadd.f32 %v10113_v26, %v10112_v25  ;;  %v3930_v18 = vadd.f32 %v10118_v39, %v10117_v24 }
 0x296   : > { %v6293_v33 = vpack.c.bf16 %v5561_v11, %v5561_v11  ;;  %v5559_v49 = vmax.f32 %v5527_v27, 0.0  ;;  %v5530_v43 = vadd.f32 %v9558_v47, %v5491_v37  ;;  %v5489_v45 = vadd.f32 %v9688_v29, %v5015_v60  ;;  %v10119_v27 = vld [vmem:[#allocation48_spill] sm:$0xff]  ;;  %v10120_v60 = vld [vmem:[#allocation50_spill] sm:$0xff] }
 0x297   : > { %5717 = vst.msk [vmem:[%s9588_s24 + $0x44] sm:$0xf] %vm5699_vm0, %v6288_v0  ;;  %v5020_v13 = vadd.f32 %v6723_v1, %v4290_v46  ;;  %v4963_v32 = vpop.f32.mrf.mxu1  ;;  %v4294_v55 = vadd.f32 %v10116_v48, %v3931_v4  ;;  %v4292_v37 = vadd.f32 %v10119_v27, %v3929_v62  ;;  %v4295_v8 = vadd.f32 %v10120_v60, %v3932_v56  ;;  %v6762_v1 = vpop.f32.mrf.mxu0 }
 0x298   : > { %5722 = vst.msk [vmem:[%s9588_s24 + $0x58] sm:$0xf] %vm5699_vm0, %v6293_v33  ;;  %v6291_v58 = vpack.c.bf16 %v5559_v49, %v5559_v49  ;;  %v5562_v63 = vmax.f32 %v5530_v43, 0.0  ;;  %v5528_v42 = vadd.f32 %v9558_v47, %v5489_v45  ;;  %v5018_v34 = vadd.f32 %v4963_v32, %v4288_v19  ;;  %v10121_v19 = vld [vmem:[#allocation52_spill] sm:$0xff] }
 0x299   : > { %v5494_v3 = vadd.f32 %v9702_v54, %v5020_v13  ;;  %v6724_v29 = vpop.f32.mrf.mxu1 }
 0x29a   : > { %5720 = vst.msk [vmem:[%s9588_s24 + $0x50] sm:$0xf] %vm5699_vm0, %v6291_v58  ;;  %v6294_v40 = vpack.c.bf16 %v5562_v63, %v5562_v63  ;;  %v5560_v53 = vmax.f32 %v5528_v42, 0.0  ;;  %v5492_v28 = vadd.f32 %v5437_v15, %v5018_v34  ;;  %v5021_v57 = vadd.f32 %v6724_v29, %v4291_v41  ;;  %v5456_v58 = vpop.f32.mrf.mxu0 }
 0x29b   : > { %v5533_v9 = vadd.f32 %v9558_v47, %v5494_v3  ;;  %v4966_v54 = vpop.f32.mrf.mxu1 }
 0x29c   : > { %5723 = vst.msk [vmem:[%s9588_s24 + $0x5c] sm:$0xf] %vm5699_vm0, %v6294_v40  ;;  %v6292_v52 = vpack.c.bf16 %v5560_v53, %v5560_v53  ;;  %v5531_v7 = vadd.f32 %v9558_v47, %v5492_v28  ;;  %v5495_v16 = vadd.f32 %v6758_v61, %v5021_v57  ;;  %v5019_v15 = vadd.f32 %v4966_v54, %v4289_v23 }
 0x29d   : > { %v5565_v17 = vmax.f32 %v5533_v9, 0.0  ;;  %v6727_v6 = vpop.f32.mrf.mxu1 }
 0x29e   : > { %5721 = vst.msk [vmem:[%s9588_s24 + $0x54] sm:$0xf] %vm5699_vm0, %v6292_v52  ;;  %v5563_v36 = vmax.f32 %v5531_v7, 0.0  ;;  %v5534_v10 = vadd.f32 %v9558_v47, %v5495_v16  ;;  %v5493_v59 = vadd.f32 %v5440_v38, %v5019_v15  ;;  %v5024_v35 = vadd.f32 %v6727_v6, %v4294_v55 }
 0x29f   : > { %v6297_v11 = vpack.c.bf16 %v5565_v17, %v5565_v17  ;;  %v4979_v61 = vpop.f32.mrf.mxu1  ;;  %v4293_v38 = vadd.f32 %v10121_v19, %v3930_v18 }
 0x2a0   : > { %v6295_v30 = vpack.c.bf16 %v5563_v36, %v5563_v36  ;;  %v5566_v31 = vmax.f32 %v5534_v10, 0.0  ;;  %v5532_v0 = vadd.f32 %v9558_v47, %v5493_v59  ;;  %v5498_v5 = vadd.f32 %v6761_v14, %v5024_v35 }
 0x2a1   : > { %5726 = vst.msk [vmem:[%s9588_s24 + $0x68] sm:$0xf] %vm5699_vm0, %v6297_v11  ;;  %v5022_v46 = vadd.f32 %v4979_v61, %v4292_v37  ;;  %v6728_v50 = vpop.f32.mrf.mxu1 }
 0x2a2   : > { %5724 = vst.msk [vmem:[%s9588_s24 + $0x60] sm:$0xf] %vm5699_vm0, %v6295_v30  ;;  %v6298_v33 = vpack.c.bf16 %v5566_v31, %v5566_v31  ;;  %v5564_v49 = vmax.f32 %v5532_v0, 0.0  ;;  %v5537_v43 = vadd.f32 %v9558_v47, %v5498_v5  ;;  %v5025_v45 = vadd.f32 %v6728_v50, %v4295_v8 }
 0x2a3   : > { %v5496_v21 = vadd.f32 %v5453_v44, %v5022_v46  ;;  %v4982_v51 = vpop.f32.mrf.mxu1 }
 0x2a4   : > { %5727 = vst.msk [vmem:[%s9588_s24 + $0x6c] sm:$0xf] %vm5699_vm0, %v6298_v33  ;;  %v6296_v4 = vpack.c.bf16 %v5564_v49, %v5564_v49  ;;  %v5569_v13 = vmax.f32 %v5537_v43, 0.0  ;;  %v5499_v32 = vadd.f32 %v6762_v1, %v5025_v45  ;;  %v5023_v2 = vadd.f32 %v4982_v51, %v4293_v38 }
 0x2a5   : > { %v5535_v41 = vadd.f32 %v9558_v47, %v5496_v21 }
 0x2a6   : > { %5725 = vst.msk [vmem:[%s9588_s24 + $0x64] sm:$0xf] %vm5699_vm0, %v6296_v4  ;;  %v6301_v63 = vpack.c.bf16 %v5569_v13, %v5569_v13  ;;  %v5538_v42 = vadd.f32 %v9558_v47, %v5499_v32  ;;  %v5497_v34 = vadd.f32 %v5456_v58, %v5023_v2 }
 0x2a7   : > { %v5567_v3 = vmax.f32 %v5535_v41, 0.0 }
 0x2a8   : > { %5730 = vst.msk [vmem:[%s9588_s24 + $0x78] sm:$0xf] %vm5699_vm0, %v6301_v63  ;;  %v5570_v29 = vmax.f32 %v5538_v42, 0.0  ;;  %v5536_v20 = vadd.f32 %v9558_v47, %v5497_v34 }
 0x2a9   : > { %v6299_v23 = vpack.c.bf16 %v5567_v3, %v5567_v3 }
 0x2aa   : > { %v6302_v14 = vpack.c.bf16 %v5570_v29, %v5570_v29  ;;  %v5568_v40 = vmax.f32 %v5536_v20, 0.0 }
 0x2ab   : > { %5728 = vst.msk [vmem:[%s9588_s24 + $0x70] sm:$0xf] %vm5699_vm0, %v6299_v23 }
 0x2ac   : > { %5731 = vst.msk [vmem:[%s9588_s24 + $0x7c] sm:$0xf] %vm5699_vm0, %v6302_v14  ;;  %v6300_v47 = vpack.c.bf16 %v5568_v40, %v5568_v40 }
 0x2ae   : > { %5729 = vst.msk [vmem:[%s9588_s24 + $0x74] sm:$0xf] %vm5699_vm0, %v6300_v47 }
 0x2af   : > { %6974 = shalt.err (!%p6971_p5)
}
 0x2b0   : > { %s6975_s18 = scalar_lea.hbm %s9800_s21, 2048  ;;  %s6979_s27 = scalar_lea.hbm %s9857_s3, 4096 }
 0x2b1   : > { %p6976_p7 = scmp.ne.s32.totalorder %s9800_s21, %s6975_s18  ;;  %p6980_p9 = scmp.lt.s32.totalorder %s9800_s21, %s9857_s3 }
 0x2b2   : > { %p6981_p11 = scmp.lt.s32.totalorder %s6979_s27, %s6975_s18 }
 0x2b3   : > { %p6977_p4 = pnand %p6976_p7, %p7165_p13 }
 0x2b4   : > { %p6982_p10 = por %p6981_p11, %p6980_p9 }
 0x2b5   : > { %p6978_p6 = pneg %p6977_p4 }
 0x2b7   : > { %p6983_p1 = pnand %p6982_p10, %p6978_p6 }
 0x2b9   : > { %6986 = shalt.err (!%p6983_p1)
}
 0x2ba   : > { %s7053_s24 = smov 64   ;;  %s7054_s30 = smov 4  }
 0x2bb   : > { %6771 = dma.vmem_to_hbm [thread:$0]  (%p7165_p13), %s9802_s29, 2048, %s9800_s21, %s5733_s15, %s7053_s24, %s7053_s24, %s7054_s30  }
 0x2bc PF: > { %s5765_s5 = sand.u32 1, %s7025_s12   ;;  %p10122_p8 = scmp.ne.s32.totalorder %s9876_s23, 0 }
 0x2bd   : > { %p10123_p12 = scmp.ge.s32.totalorder %s7045_s17, 2  ;;  %s5766_s6 = scalar_lea.sflag [#allocation5], %s5765_s5 }
 0x2bf   : > { %p6782_p0 = pnand %p10123_p12, %p10122_p8 }
 0x2c1   : > { %p6783_p2 = pneg %p6782_p0 }
 0x2c3   : > { %7020 = dma.done.wait (%p6783_p2), %s5766_s6, 2048  }
 0x2c4   : > { %7022 = vsyncadd (%p6783_p2), %s5766_s6, 4294965248  ;;  %s20_s17 = sadd.s32 1, %s7045_s17   ;;  %s10124_s12 = smov %s7029_s13 }
 0x2c5   : > { %p17_p3 = scmp.ge.s32.totalorder %s20_s17, 4   ;;  %s10125_s13 = smov %s7033_s14 }
 0x2c6   : > { %s10126_s14 = smov %s7174_s19  ;;  %s10127_s15 = smov %s7041_s16 }
 0x2c7   : > { %s10128_s16 = smov %s10130_s28  ;;  %19 = sbr.rel (!%p17_p3) target bundleno = 7 (0x7), region = 107 }
 0x2cc   :  { %5771 = vsyncpa [#allocation4], 1 }
 0x2cd   :  { %5773 = vsyncpa [#allocation4 + $0x1], 1 }
 0x2ce   :  { %5774 = vsyncpa [#allocation7], 1 }
 0x2cf   :  { %5775 = vsyncpa [#allocation5], 1 }
 0x2d0   :  { %5777 = vsyncpa [#allocation5 + $0x1], 1 }

</bundles_post_ra>
